<compile_context>
chip_gen: v6e
topology: v6e:2x2x1
jax: 0.10.0
libtpu: 0.0.40
codegen_flags: <defaults>
</compile_context>

<pallas_src>
import functools

import jax
import jax.numpy as jnp
from jax import lax
from jax.experimental import pallas as pl
from jax.experimental.pallas import tpu as pltpu


# ------------------------------ Pallas kernel ------------------------------ #

def _fused_basic_block_kernel(xb_ref, xres_ref, mask_ref, w1_ref, b1_ref,
                              w2_ref, b2_ref, o_ref, y1_scr, *, H, W):
    # xb_ref  : (Pp, Cp)   bf16  flattened spatially-padded image, rows >= (H+2)(W+2) are 0
    # xres_ref: (Hp, Cp)   f32   residual rows (aligned), Hp = H*(W+2)
    # mask_ref: (Hp, Cp)   f32   1.0 on valid output columns, 0.0 on wrapped-halo columns
    # w*_ref  : (9, Cp, Cp) bf16 conv weights, BN scale folded, tap-major (kh, kw)
    # b*_ref  : (1, Cp)    f32   BN shift
    # o_ref   : (Hp, Cp)   f32   output rows r = i*(W+2)+j (columns j >= W are garbage)
    # y1_scr  : (Pp, Cp)   bf16  conv1 activation laid out in padded coordinates
    Wp = W + 2
    Hp = H * Wp
    Cp = o_ref.shape[-1]
    base = Wp + 1                       # flat offset of output pixel (0, 0) in padded coords
    Pp = y1_scr.shape[0]

    # Zero the y1 halo rows the bulk store below never touches (tiny stores; done every
    # step so correctness does not depend on which TensorCore runs which grid step).
    y1_scr[0:base, :] = jnp.zeros((base, Cp), jnp.bfloat16)
    y1_scr[base + Hp:, :] = jnp.zeros((Pp - (base + Hp), Cp), jnp.bfloat16)

    def conv3x3(src_ref, w_ref):
        # 9 shifted MXU matmuls over contiguous row windows, value-accumulated
        # (no scratch read-modify-write).
        acc = None
        for t in range(9):
            kh, kw = t // 3, t % 3
            s = kh * Wp + kw
            part = jnp.dot(src_ref[s:s + Hp, :], w_ref[t],
                           preferred_element_type=jnp.float32)
            acc = part if acc is None else acc + part
        return acc

    # ---- conv1 (+ folded bn1 scale) -> shift -> relu -> mask halo cols -> bf16 ----
    y1 = jnp.maximum(conv3x3(xb_ref, w1_ref) + b1_ref[...], 0.0) * mask_ref[...]
    y1_scr[base:base + Hp, :] = y1.astype(jnp.bfloat16)        # single store

    # ---- conv2 (+ folded bn2 scale) -> shift -> + identity (exact f32) -> relu ----
    out = conv3x3(y1_scr, w2_ref) + b2_ref[...] + xres_ref[...]
    o_ref[...] = jnp.maximum(out, 0.0)                          # single store


# ------------------------------- JAX glue ---------------------------------- #

def _round_up(x, m):
    return ((x + m - 1) // m) * m


def _fold_bn(gamma, beta, mean, var, eps=1e-5):
    scale = gamma / jnp.sqrt(var + eps)
    shift = beta - mean * scale
    return scale, shift


def _prep_weight(w_oihw, bn_scale, cp):
    """PyTorch (Cout, Cin, 3, 3) -> (9, cp, cp) bf16, BN scale folded into columns."""
    cout, cin = w_oihw.shape[0], w_oihw.shape[1]
    w = w_oihw * bn_scale[:, None, None, None]                  # fold bn scale
    w = jnp.transpose(w, (2, 3, 1, 0)).reshape(9, cin, cout)    # tap-major (kh, kw)
    w = jnp.pad(w, ((0, 0), (0, cp - cin), (0, cp - cout)))     # lane-dense pad
    return w.astype(jnp.bfloat16)


def _prep_shift(shift, cp):
    return jnp.pad(shift, (0, cp - shift.shape[0])).reshape(1, cp).astype(jnp.float32)


def basic_block_forward(x_nchw, params):
    """BasicBlock forward (stride=1, downsample=None). Input/output: NCHW f32."""
    N, C, H, W = x_nchw.shape
    Cout = params["w1"].shape[0]
    assert Cout == C, "identity path requires in_channel == out_channel"
    Cp = _round_up(max(C, Cout), 128)        # lane-dense channel width
    Wp = W + 2
    Hp = H * Wp                              # rows of the "top-left aligned" output layout
    P = (H + 2) * Wp                         # rows of the flattened padded image
    Pp = _round_up(P + 2, 8)                 # +2: garbage-row tap windows peek past P
    base = Wp + 1                            # flat offset of pixel (0,0) in padded coords

    s1, b1 = _fold_bn(params["bn1_gamma"], params["bn1_beta"],
                      params["bn1_mean"], params["bn1_var"])
    s2, b2 = _fold_bn(params["bn2_gamma"], params["bn2_beta"],
                      params["bn2_mean"], params["bn2_var"])

    w1 = _prep_weight(params["w1"], s1, Cp)
    w2 = _prep_weight(params["w2"], s2, Cp)
    b1p = _prep_shift(b1, Cp)
    b2p = _prep_shift(b2, Cp)

    # NCHW -> NHWC, 1-px zero halo + channel pad to Cp, flatten spatial, pad rows to Pp.
    x_nhwc = jnp.transpose(x_nchw, (0, 2, 3, 1)).astype(jnp.float32)
    xpad = jnp.pad(x_nhwc, ((0, 0), (1, 1), (1, 1), (0, Cp - C)))
    xflat = jnp.pad(xpad.reshape(N, P, Cp), ((0, 0), (0, Pp - P), (0, 0)))

    xb = xflat.astype(jnp.bfloat16)                       # bf16 matmul operand stream
    xres = xflat[:, base:base + Hp, :]                    # exact f32 residual, aligned

    # 1.0 where the output column is a real pixel (j < W), 0.0 on wrapped-halo columns.
    mask = jnp.broadcast_to(
        ((jnp.arange(Hp) % Wp) < W).astype(jnp.float32)[:, None], (Hp, Cp))

    kernel = functools.partial(_fused_basic_block_kernel, H=H, W=W)

    # Per-step VMEM footprint (double-buffered I/O + scratch + accumulator headroom).
    vmem_bytes = (2 * Pp * Cp * 2            # xb block
                  + 2 * Hp * Cp * 4          # xres block
                  + 2 * Hp * Cp * 4          # mask block
                  + 2 * 2 * 9 * Cp * Cp * 2  # w1 + w2 blocks
                  + 2 * 2 * Cp * 4           # shifts
                  + 2 * Hp * Cp * 4          # output block
                  + Pp * Cp * 2              # y1 scratch
                  + 6 * Hp * Cp * 4)         # value-accumulator / slice temporaries
    vmem_limit = int(min(max(2 * vmem_bytes, 16 * 2 ** 20), 48 * 2 ** 20))

    flops = 2 * 2 * 9 * N * Hp * Cp * Cp
    bytes_accessed = (N * Pp * Cp * 2 + N * Hp * Cp * 4 + Hp * Cp * 4
                      + 2 * 9 * Cp * Cp * 2 + 2 * Cp * 4 + N * Hp * Cp * 4)

    out = pl.pallas_call(
        kernel,
        out_shape=jax.ShapeDtypeStruct((N, Hp, Cp), jnp.float32),
        grid_spec=pltpu.PrefetchScalarGridSpec(
            num_scalar_prefetch=0,
            grid=(N,),
            in_specs=[
                pl.BlockSpec((None, Pp, Cp), lambda n: (n, 0, 0)),   # xb (bf16)
                pl.BlockSpec((None, Hp, Cp), lambda n: (n, 0, 0)),   # xres (f32)
                pl.BlockSpec((Hp, Cp), lambda n: (0, 0)),            # mask
                pl.BlockSpec((9, Cp, Cp), lambda n: (0, 0, 0)),      # w1
                pl.BlockSpec((1, Cp), lambda n: (0, 0)),             # b1
                pl.BlockSpec((9, Cp, Cp), lambda n: (0, 0, 0)),      # w2
                pl.BlockSpec((1, Cp), lambda n: (0, 0)),             # b2
            ],
            out_specs=pl.BlockSpec((None, Hp, Cp), lambda n: (n, 0, 0)),
            scratch_shapes=[
                pltpu.VMEM((Pp, Cp), jnp.bfloat16),                  # y1 (padded coords)
            ],
        ),
        compiler_params=pltpu.CompilerParams(
            dimension_semantics=("parallel",),
            vmem_limit_bytes=vmem_limit),
        cost_estimate=pl.CostEstimate(flops=flops, transcendentals=0,
                                      bytes_accessed=bytes_accessed),
    )(xb, xres, mask, w1, b1p, w2, b2p)

    # (N, Hp, Cp) -> (N, H, W+2, Cp) -> drop halo columns / channel padding -> NCHW.
    out = out.reshape(N, H, Wp, Cp)[:, :, :W, :Cout]
    return jnp.transpose(out, (0, 3, 1, 2))


# --------------------------- pure-JAX reference ----------------------------- #

def basic_block_reference(x_nchw, params):
    def conv3x3(x, w):
        return lax.conv_general_dilated(
            x, w, window_strides=(1, 1), padding=((1, 1), (1, 1)),
            dimension_numbers=("NCHW", "OIHW", "NCHW"))

    s1, b1 = _fold_bn(params["bn1_gamma"], params["bn1_beta"],
                      params["bn1_mean"], params["bn1_var"])
    s2, b2 = _fold_bn(params["bn2_gamma"], params["bn2_beta"],
                      params["bn2_mean"], params["bn2_var"])
    out = conv3x3(x_nchw, params["w1"])
    out = out * s1[None, :, None, None] + b1[None, :, None, None]
    out = jnp.maximum(out, 0.0)
    out = conv3x3(out, params["w2"])
    out = out * s2[None, :, None, None] + b2[None, :, None, None]
    out = out + x_nchw
    return jnp.maximum(out, 0.0)


# --------------------------------- main ------------------------------------ #

if __name__ == "__main__":
    N, C, H, W = 2, 4, 16, 16  # in_channel == out_channel, stride=1

    key = jax.random.PRNGKey(0)
    keys = jax.random.split(key, 9)
    params = {
        "w1": 0.2 * jax.random.normal(keys[0], (C, C, 3, 3), jnp.float32),
        "w2": 0.2 * jax.random.normal(keys[1], (C, C, 3, 3), jnp.float32),
        "bn1_gamma": 1.0 + 0.1 * jax.random.normal(keys[2], (C,), jnp.float32),
        "bn1_beta": 0.1 * jax.random.normal(keys[3], (C,), jnp.float32),
        "bn1_mean": 0.1 * jax.random.normal(keys[4], (C,), jnp.float32),
        "bn1_var": 0.5 + jnp.abs(jax.random.normal(keys[5], (C,), jnp.float32)),
        "bn2_gamma": 1.0 + 0.1 * jax.random.normal(keys[6], (C,), jnp.float32),
        "bn2_beta": 0.1 * jax.random.normal(keys[7], (C,), jnp.float32),
        "bn2_mean": jnp.zeros((C,), jnp.float32),
        "bn2_var": jnp.ones((C,), jnp.float32),
    }
    x = jax.random.normal(keys[8], (N, C, H, W), jnp.float32)

    out = jax.jit(basic_block_forward)(x, params)
    out = jax.block_until_ready(out)

    ref = jax.block_until_ready(basic_block_reference(x, params))
    assert out.shape == (N, C, H, W) and out.dtype == jnp.float32
    # bf16 matmul operands + bf16 conv1 activation (f32 accumulation, exact f32 residual):
    # looser tolerance than a pure-f32 pipeline.
    assert jnp.allclose(out, ref, rtol=2e-2, atol=5e-2), "mismatch vs reference"

    print("KERNEL_OK")
</pallas_src>

<mosaic_0001>
module attributes {stable_mosaic.version = 11 : i64} {
  func.func @_fused_basic_block_kernel(%arg0: i32, %arg1: memref<1x328x128xbf16, #tpu.memory_space<vmem>>, %arg2: memref<1x288x128xf32, #tpu.memory_space<vmem>>, %arg3: memref<288x128xf32, #tpu.memory_space<vmem>>, %arg4: memref<9x128x128xbf16, #tpu.memory_space<vmem>>, %arg5: memref<1x128xf32, #tpu.memory_space<vmem>>, %arg6: memref<9x128x128xbf16, #tpu.memory_space<vmem>>, %arg7: memref<1x128xf32, #tpu.memory_space<vmem>>, %arg8: memref<1x288x128xf32, #tpu.memory_space<vmem>>, %arg9: memref<328x128xbf16, #tpu.memory_space<vmem>>) attributes {dimension_semantics = [#tpu.dimension_semantics<parallel>], iteration_bounds = array<i64: 2>, scalar_prefetch = 0 : i64, scratch_operands = 1 : i64, tpu.core_type = #tpu.core_type<tc>, window_params = [{transform_indices = @transform_0, window_bounds = array<i64: 1, 328, 128>}, {transform_indices = @transform_1, window_bounds = array<i64: 1, 288, 128>}, {pipeline_mode = #tpu.pipeline_mode<synchronous>, transform_indices = @transform_2, window_bounds = array<i64: 288, 128>}, {pipeline_mode = #tpu.pipeline_mode<synchronous>, transform_indices = @transform_3, window_bounds = array<i64: 9, 128, 128>}, {pipeline_mode = #tpu.pipeline_mode<synchronous>, transform_indices = @transform_4, window_bounds = array<i64: 1, 128>}, {pipeline_mode = #tpu.pipeline_mode<synchronous>, transform_indices = @transform_5, window_bounds = array<i64: 9, 128, 128>}, {pipeline_mode = #tpu.pipeline_mode<synchronous>, transform_indices = @transform_6, window_bounds = array<i64: 1, 128>}, {transform_indices = @transform_7, window_bounds = array<i64: 1, 288, 128>}]} {
    %cst = arith.constant 0.000000e+00 : bf16
    %0 = vector.broadcast %cst : bf16 to vector<19x128xbf16>
    %c0 = arith.constant 0 : index
    %c0_0 = arith.constant 0 : index
    %1 = vector.load %arg9[%c0, %c0_0] : memref<328x128xbf16, #tpu.memory_space<vmem>>, vector<19x128xbf16>
    tpu.vector_store %arg9[%c0, %c0_0], %0 {strides = array<i32>} : memref<328x128xbf16, #tpu.memory_space<vmem>>, vector<19x128xbf16>,
    %cst_1 = arith.constant 0.000000e+00 : bf16
    %2 = vector.broadcast %cst_1 : bf16 to vector<21x128xbf16>
    %c307 = arith.constant 307 : index
    %c0_2 = arith.constant 0 : index
    %3 = vector.load %arg9[%c307, %c0_2] : memref<328x128xbf16, #tpu.memory_space<vmem>>, vector<21x128xbf16>
    tpu.vector_store %arg9[%c307, %c0_2], %2 {strides = array<i32>} : memref<328x128xbf16, #tpu.memory_space<vmem>>, vector<21x128xbf16>,
    %c0_3 = arith.constant 0 : index
    %c0_4 = arith.constant 0 : index
    %c0_5 = arith.constant 0 : index
    %4 = vector.load %arg1[%c0_3, %c0_4, %c0_5] : memref<1x328x128xbf16, #tpu.memory_space<vmem>>, vector<1x288x128xbf16>
    %5 = vector.shape_cast %4 : vector<1x288x128xbf16> to vector<288x128xbf16>
    %c0_6 = arith.constant 0 : index
    %c0_7 = arith.constant 0 : index
    %c0_8 = arith.constant 0 : index
    %6 = vector.load %arg4[%c0_6, %c0_7, %c0_8] : memref<9x128x128xbf16, #tpu.memory_space<vmem>>, vector<1x128x128xbf16>
    %7 = vector.shape_cast %6 : vector<1x128x128xbf16> to vector<128x128xbf16>
    %cst_9 = arith.constant dense<0.000000e+00> : vector<288x128xf32>
    %8 = tpu.matmul %5, %7, %cst_9 {dimension_numbers = #tpu.dot_dimension_numbers<[1], [0], [0], [1], [0, 0, 1, 1], [], []>} : vector<288x128xbf16>, vector<128x128xbf16>, vector<288x128xf32> -> vector<288x128xf32>
    %c0_10 = arith.constant 0 : index
    %c1 = arith.constant 1 : index
    %c0_11 = arith.constant 0 : index
    %9 = vector.load %arg1[%c0_10, %c1, %c0_11] : memref<1x328x128xbf16, #tpu.memory_space<vmem>>, vector<1x288x128xbf16>
    %10 = vector.shape_cast %9 : vector<1x288x128xbf16> to vector<288x128xbf16>
    %c1_12 = arith.constant 1 : index
    %c0_13 = arith.constant 0 : index
    %c0_14 = arith.constant 0 : index
    %11 = vector.load %arg4[%c1_12, %c0_13, %c0_14] : memref<9x128x128xbf16, #tpu.memory_space<vmem>>, vector<1x128x128xbf16>
    %12 = vector.shape_cast %11 : vector<1x128x128xbf16> to vector<128x128xbf16>
    %cst_15 = arith.constant dense<0.000000e+00> : vector<288x128xf32>
    %13 = tpu.matmul %10, %12, %cst_15 {dimension_numbers = #tpu.dot_dimension_numbers<[1], [0], [0], [1], [0, 0, 1, 1], [], []>} : vector<288x128xbf16>, vector<128x128xbf16>, vector<288x128xf32> -> vector<288x128xf32>
    %14 = arith.addf %8, %13 : vector<288x128xf32>
    %c0_16 = arith.constant 0 : index
    %c2 = arith.constant 2 : index
    %c0_17 = arith.constant 0 : index
    %15 = vector.load %arg1[%c0_16, %c2, %c0_17] : memref<1x328x128xbf16, #tpu.memory_space<vmem>>, vector<1x288x128xbf16>
    %16 = vector.shape_cast %15 : vector<1x288x128xbf16> to vector<288x128xbf16>
    %c2_18 = arith.constant 2 : index
    %c0_19 = arith.constant 0 : index
    %c0_20 = arith.constant 0 : index
    %17 = vector.load %arg4[%c2_18, %c0_19, %c0_20] : memref<9x128x128xbf16, #tpu.memory_space<vmem>>, vector<1x128x128xbf16>
    %18 = vector.shape_cast %17 : vector<1x128x128xbf16> to vector<128x128xbf16>
    %cst_21 = arith.constant dense<0.000000e+00> : vector<288x128xf32>
    %19 = tpu.matmul %16, %18, %cst_21 {dimension_numbers = #tpu.dot_dimension_numbers<[1], [0], [0], [1], [0, 0, 1, 1], [], []>} : vector<288x128xbf16>, vector<128x128xbf16>, vector<288x128xf32> -> vector<288x128xf32>
    %20 = arith.addf %14, %19 : vector<288x128xf32>
    %c0_22 = arith.constant 0 : index
    %c18 = arith.constant 18 : index
    %c0_23 = arith.constant 0 : index
    %21 = vector.load %arg1[%c0_22, %c18, %c0_23] : memref<1x328x128xbf16, #tpu.memory_space<vmem>>, vector<1x288x128xbf16>
    %22 = vector.shape_cast %21 : vector<1x288x128xbf16> to vector<288x128xbf16>
    %c3 = arith.constant 3 : index
    %c0_24 = arith.constant 0 : index
    %c0_25 = arith.constant 0 : index
    %23 = vector.load %arg4[%c3, %c0_24, %c0_25] : memref<9x128x128xbf16, #tpu.memory_space<vmem>>, vector<1x128x128xbf16>
    %24 = vector.shape_cast %23 : vector<1x128x128xbf16> to vector<128x128xbf16>
    %cst_26 = arith.constant dense<0.000000e+00> : vector<288x128xf32>
    %25 = tpu.matmul %22, %24, %cst_26 {dimension_numbers = #tpu.dot_dimension_numbers<[1], [0], [0], [1], [0, 0, 1, 1], [], []>} : vector<288x128xbf16>, vector<128x128xbf16>, vector<288x128xf32> -> vector<288x128xf32>
    %26 = arith.addf %20, %25 : vector<288x128xf32>
    %c0_27 = arith.constant 0 : index
    %c19 = arith.constant 19 : index
    %c0_28 = arith.constant 0 : index
    %27 = vector.load %arg1[%c0_27, %c19, %c0_28] : memref<1x328x128xbf16, #tpu.memory_space<vmem>>, vector<1x288x128xbf16>
    %28 = vector.shape_cast %27 : vector<1x288x128xbf16> to vector<288x128xbf16>
    %c4 = arith.constant 4 : index
    %c0_29 = arith.constant 0 : index
    %c0_30 = arith.constant 0 : index
    %29 = vector.load %arg4[%c4, %c0_29, %c0_30] : memref<9x128x128xbf16, #tpu.memory_space<vmem>>, vector<1x128x128xbf16>
    %30 = vector.shape_cast %29 : vector<1x128x128xbf16> to vector<128x128xbf16>
    %cst_31 = arith.constant dense<0.000000e+00> : vector<288x128xf32>
    %31 = tpu.matmul %28, %30, %cst_31 {dimension_numbers = #tpu.dot_dimension_numbers<[1], [0], [0], [1], [0, 0, 1, 1], [], []>} : vector<288x128xbf16>, vector<128x128xbf16>, vector<288x128xf32> -> vector<288x128xf32>
    %32 = arith.addf %26, %31 : vector<288x128xf32>
    %c0_32 = arith.constant 0 : index
    %c20 = arith.constant 20 : index
    %c0_33 = arith.constant 0 : index
    %33 = vector.load %arg1[%c0_32, %c20, %c0_33] : memref<1x328x128xbf16, #tpu.memory_space<vmem>>, vector<1x288x128xbf16>
    %34 = vector.shape_cast %33 : vector<1x288x128xbf16> to vector<288x128xbf16>
    %c5 = arith.constant 5 : index
    %c0_34 = arith.constant 0 : index
    %c0_35 = arith.constant 0 : index
    %35 = vector.load %arg4[%c5, %c0_34, %c0_35] : memref<9x128x128xbf16, #tpu.memory_space<vmem>>, vector<1x128x128xbf16>
    %36 = vector.shape_cast %35 : vector<1x128x128xbf16> to vector<128x128xbf16>
    %cst_36 = arith.constant dense<0.000000e+00> : vector<288x128xf32>
    %37 = tpu.matmul %34, %36, %cst_36 {dimension_numbers = #tpu.dot_dimension_numbers<[1], [0], [0], [1], [0, 0, 1, 1], [], []>} : vector<288x128xbf16>, vector<128x128xbf16>, vector<288x128xf32> -> vector<288x128xf32>
    %38 = arith.addf %32, %37 : vector<288x128xf32>
    %c0_37 = arith.constant 0 : index
    %c36 = arith.constant 36 : index
    %c0_38 = arith.constant 0 : index
    %39 = vector.load %arg1[%c0_37, %c36, %c0_38] : memref<1x328x128xbf16, #tpu.memory_space<vmem>>, vector<1x288x128xbf16>
    %40 = vector.shape_cast %39 : vector<1x288x128xbf16> to vector<288x128xbf16>
    %c6 = arith.constant 6 : index
    %c0_39 = arith.constant 0 : index
    %c0_40 = arith.constant 0 : index
    %41 = vector.load %arg4[%c6, %c0_39, %c0_40] : memref<9x128x128xbf16, #tpu.memory_space<vmem>>, vector<1x128x128xbf16>
    %42 = vector.shape_cast %41 : vector<1x128x128xbf16> to vector<128x128xbf16>
    %cst_41 = arith.constant dense<0.000000e+00> : vector<288x128xf32>
    %43 = tpu.matmul %40, %42, %cst_41 {dimension_numbers = #tpu.dot_dimension_numbers<[1], [0], [0], [1], [0, 0, 1, 1], [], []>} : vector<288x128xbf16>, vector<128x128xbf16>, vector<288x128xf32> -> vector<288x128xf32>
    %44 = arith.addf %38, %43 : vector<288x128xf32>
    %c0_42 = arith.constant 0 : index
    %c37 = arith.constant 37 : index
    %c0_43 = arith.constant 0 : index
    %45 = vector.load %arg1[%c0_42, %c37, %c0_43] : memref<1x328x128xbf16, #tpu.memory_space<vmem>>, vector<1x288x128xbf16>
    %46 = vector.shape_cast %45 : vector<1x288x128xbf16> to vector<288x128xbf16>
    %c7 = arith.constant 7 : index
    %c0_44 = arith.constant 0 : index
    %c0_45 = arith.constant 0 : index
    %47 = vector.load %arg4[%c7, %c0_44, %c0_45] : memref<9x128x128xbf16, #tpu.memory_space<vmem>>, vector<1x128x128xbf16>
    %48 = vector.shape_cast %47 : vector<1x128x128xbf16> to vector<128x128xbf16>
    %cst_46 = arith.constant dense<0.000000e+00> : vector<288x128xf32>
    %49 = tpu.matmul %46, %48, %cst_46 {dimension_numbers = #tpu.dot_dimension_numbers<[1], [0], [0], [1], [0, 0, 1, 1], [], []>} : vector<288x128xbf16>, vector<128x128xbf16>, vector<288x128xf32> -> vector<288x128xf32>
    %50 = arith.addf %44, %49 : vector<288x128xf32>
    %c0_47 = arith.constant 0 : index
    %c38 = arith.constant 38 : index
    %c0_48 = arith.constant 0 : index
    %51 = vector.load %arg1[%c0_47, %c38, %c0_48] : memref<1x328x128xbf16, #tpu.memory_space<vmem>>, vector<1x288x128xbf16>
    %52 = vector.shape_cast %51 : vector<1x288x128xbf16> to vector<288x128xbf16>
    %c8 = arith.constant 8 : index
    %c0_49 = arith.constant 0 : index
    %c0_50 = arith.constant 0 : index
    %53 = vector.load %arg4[%c8, %c0_49, %c0_50] : memref<9x128x128xbf16, #tpu.memory_space<vmem>>, vector<1x128x128xbf16>
    %54 = vector.shape_cast %53 : vector<1x128x128xbf16> to vector<128x128xbf16>
    %cst_51 = arith.constant dense<0.000000e+00> : vector<288x128xf32>
    %55 = tpu.matmul %52, %54, %cst_51 {dimension_numbers = #tpu.dot_dimension_numbers<[1], [0], [0], [1], [0, 0, 1, 1], [], []>} : vector<288x128xbf16>, vector<128x128xbf16>, vector<288x128xf32> -> vector<288x128xf32>
    %56 = arith.addf %50, %55 : vector<288x128xf32>
    %c0_52 = arith.constant 0 : index
    %c0_53 = arith.constant 0 : index
    %57 = vector.load %arg5[%c0_52, %c0_53] : memref<1x128xf32, #tpu.memory_space<vmem>>, vector<1x128xf32>
    %58 = vector.broadcast %57 : vector<1x128xf32> to vector<288x128xf32>
    %59 = arith.addf %56, %58 : vector<288x128xf32>
    %cst_54 = arith.constant 0.000000e+00 : f32
    %60 = vector.broadcast %cst_54 : f32 to vector<288x128xf32>
    %61 = arith.maximumf %59, %60 : vector<288x128xf32>
    %c0_55 = arith.constant 0 : index
    %c0_56 = arith.constant 0 : index
    %62 = vector.load %arg3[%c0_55, %c0_56] : memref<288x128xf32, #tpu.memory_space<vmem>>, vector<288x128xf32>
    %63 = arith.mulf %61, %62 : vector<288x128xf32>
    %64 = arith.truncf %63 : vector<288x128xf32> to vector<288x128xbf16>
    %c19_57 = arith.constant 19 : index
    %c0_58 = arith.constant 0 : index
    %65 = vector.load %arg9[%c19_57, %c0_58] : memref<328x128xbf16, #tpu.memory_space<vmem>>, vector<288x128xbf16>
    tpu.vector_store %arg9[%c19_57, %c0_58], %64 {strides = array<i32>} : memref<328x128xbf16, #tpu.memory_space<vmem>>, vector<288x128xbf16>,
    %c0_59 = arith.constant 0 : index
    %c0_60 = arith.constant 0 : index
    %66 = vector.load %arg9[%c0_59, %c0_60] : memref<328x128xbf16, #tpu.memory_space<vmem>>, vector<288x128xbf16>
    %c0_61 = arith.constant 0 : index
    %c0_62 = arith.constant 0 : index
    %c0_63 = arith.constant 0 : index
    %67 = vector.load %arg6[%c0_61, %c0_62, %c0_63] : memref<9x128x128xbf16, #tpu.memory_space<vmem>>, vector<1x128x128xbf16>
    %68 = vector.shape_cast %67 : vector<1x128x128xbf16> to vector<128x128xbf16>
    %cst_64 = arith.constant dense<0.000000e+00> : vector<288x128xf32>
    %69 = tpu.matmul %66, %68, %cst_64 {dimension_numbers = #tpu.dot_dimension_numbers<[1], [0], [0], [1], [0, 0, 1, 1], [], []>} : vector<288x128xbf16>, vector<128x128xbf16>, vector<288x128xf32> -> vector<288x128xf32>
    %c1_65 = arith.constant 1 : index
    %c0_66 = arith.constant 0 : index
    %70 = vector.load %arg9[%c1_65, %c0_66] : memref<328x128xbf16, #tpu.memory_space<vmem>>, vector<288x128xbf16>
    %c1_67 = arith.constant 1 : index
    %c0_68 = arith.constant 0 : index
    %c0_69 = arith.constant 0 : index
    %71 = vector.load %arg6[%c1_67, %c0_68, %c0_69] : memref<9x128x128xbf16, #tpu.memory_space<vmem>>, vector<1x128x128xbf16>
    %72 = vector.shape_cast %71 : vector<1x128x128xbf16> to vector<128x128xbf16>
    %cst_70 = arith.constant dense<0.000000e+00> : vector<288x128xf32>
    %73 = tpu.matmul %70, %72, %cst_70 {dimension_numbers = #tpu.dot_dimension_numbers<[1], [0], [0], [1], [0, 0, 1, 1], [], []>} : vector<288x128xbf16>, vector<128x128xbf16>, vector<288x128xf32> -> vector<288x128xf32>
    %74 = arith.addf %69, %73 : vector<288x128xf32>
    %c2_71 = arith.constant 2 : index
    %c0_72 = arith.constant 0 : index
    %75 = vector.load %arg9[%c2_71, %c0_72] : memref<328x128xbf16, #tpu.memory_space<vmem>>, vector<288x128xbf16>
    %c2_73 = arith.constant 2 : index
    %c0_74 = arith.constant 0 : index
    %c0_75 = arith.constant 0 : index
    %76 = vector.load %arg6[%c2_73, %c0_74, %c0_75] : memref<9x128x128xbf16, #tpu.memory_space<vmem>>, vector<1x128x128xbf16>
    %77 = vector.shape_cast %76 : vector<1x128x128xbf16> to vector<128x128xbf16>
    %cst_76 = arith.constant dense<0.000000e+00> : vector<288x128xf32>
    %78 = tpu.matmul %75, %77, %cst_76 {dimension_numbers = #tpu.dot_dimension_numbers<[1], [0], [0], [1], [0, 0, 1, 1], [], []>} : vector<288x128xbf16>, vector<128x128xbf16>, vector<288x128xf32> -> vector<288x128xf32>
    %79 = arith.addf %74, %78 : vector<288x128xf32>
    %c18_77 = arith.constant 18 : index
    %c0_78 = arith.constant 0 : index
    %80 = vector.load %arg9[%c18_77, %c0_78] : memref<328x128xbf16, #tpu.memory_space<vmem>>, vector<288x128xbf16>
    %c3_79 = arith.constant 3 : index
    %c0_80 = arith.constant 0 : index
    %c0_81 = arith.constant 0 : index
    %81 = vector.load %arg6[%c3_79, %c0_80, %c0_81] : memref<9x128x128xbf16, #tpu.memory_space<vmem>>, vector<1x128x128xbf16>
    %82 = vector.shape_cast %81 : vector<1x128x128xbf16> to vector<128x128xbf16>
    %cst_82 = arith.constant dense<0.000000e+00> : vector<288x128xf32>
    %83 = tpu.matmul %80, %82, %cst_82 {dimension_numbers = #tpu.dot_dimension_numbers<[1], [0], [0], [1], [0, 0, 1, 1], [], []>} : vector<288x128xbf16>, vector<128x128xbf16>, vector<288x128xf32> -> vector<288x128xf32>
    %84 = arith.addf %79, %83 : vector<288x128xf32>
    %c19_83 = arith.constant 19 : index
    %c0_84 = arith.constant 0 : index
    %85 = vector.load %arg9[%c19_83, %c0_84] : memref<328x128xbf16, #tpu.memory_space<vmem>>, vector<288x128xbf16>
    %c4_85 = arith.constant 4 : index
    %c0_86 = arith.constant 0 : index
    %c0_87 = arith.constant 0 : index
    %86 = vector.load %arg6[%c4_85, %c0_86, %c0_87] : memref<9x128x128xbf16, #tpu.memory_space<vmem>>, vector<1x128x128xbf16>
    %87 = vector.shape_cast %86 : vector<1x128x128xbf16> to vector<128x128xbf16>
    %cst_88 = arith.constant dense<0.000000e+00> : vector<288x128xf32>
    %88 = tpu.matmul %85, %87, %cst_88 {dimension_numbers = #tpu.dot_dimension_numbers<[1], [0], [0], [1], [0, 0, 1, 1], [], []>} : vector<288x128xbf16>, vector<128x128xbf16>, vector<288x128xf32> -> vector<288x128xf32>
    %89 = arith.addf %84, %88 : vector<288x128xf32>
    %c20_89 = arith.constant 20 : index
    %c0_90 = arith.constant 0 : index
    %90 = vector.load %arg9[%c20_89, %c0_90] : memref<328x128xbf16, #tpu.memory_space<vmem>>, vector<288x128xbf16>
    %c5_91 = arith.constant 5 : index
    %c0_92 = arith.constant 0 : index
    %c0_93 = arith.constant 0 : index
    %91 = vector.load %arg6[%c5_91, %c0_92, %c0_93] : memref<9x128x128xbf16, #tpu.memory_space<vmem>>, vector<1x128x128xbf16>
    %92 = vector.shape_cast %91 : vector<1x128x128xbf16> to vector<128x128xbf16>
    %cst_94 = arith.constant dense<0.000000e+00> : vector<288x128xf32>
    %93 = tpu.matmul %90, %92, %cst_94 {dimension_numbers = #tpu.dot_dimension_numbers<[1], [0], [0], [1], [0, 0, 1, 1], [], []>} : vector<288x128xbf16>, vector<128x128xbf16>, vector<288x128xf32> -> vector<288x128xf32>
    %94 = arith.addf %89, %93 : vector<288x128xf32>
    %c36_95 = arith.constant 36 : index
    %c0_96 = arith.constant 0 : index
    %95 = vector.load %arg9[%c36_95, %c0_96] : memref<328x128xbf16, #tpu.memory_space<vmem>>, vector<288x128xbf16>
    %c6_97 = arith.constant 6 : index
    %c0_98 = arith.constant 0 : index
    %c0_99 = arith.constant 0 : index
    %96 = vector.load %arg6[%c6_97, %c0_98, %c0_99] : memref<9x128x128xbf16, #tpu.memory_space<vmem>>, vector<1x128x128xbf16>
    %97 = vector.shape_cast %96 : vector<1x128x128xbf16> to vector<128x128xbf16>
    %cst_100 = arith.constant dense<0.000000e+00> : vector<288x128xf32>
    %98 = tpu.matmul %95, %97, %cst_100 {dimension_numbers = #tpu.dot_dimension_numbers<[1], [0], [0], [1], [0, 0, 1, 1], [], []>} : vector<288x128xbf16>, vector<128x128xbf16>, vector<288x128xf32> -> vector<288x128xf32>
    %99 = arith.addf %94, %98 : vector<288x128xf32>
    %c37_101 = arith.constant 37 : index
    %c0_102 = arith.constant 0 : index
    %100 = vector.load %arg9[%c37_101, %c0_102] : memref<328x128xbf16, #tpu.memory_space<vmem>>, vector<288x128xbf16>
    %c7_103 = arith.constant 7 : index
    %c0_104 = arith.constant 0 : index
    %c0_105 = arith.constant 0 : index
    %101 = vector.load %arg6[%c7_103, %c0_104, %c0_105] : memref<9x128x128xbf16, #tpu.memory_space<vmem>>, vector<1x128x128xbf16>
    %102 = vector.shape_cast %101 : vector<1x128x128xbf16> to vector<128x128xbf16>
    %cst_106 = arith.constant dense<0.000000e+00> : vector<288x128xf32>
    %103 = tpu.matmul %100, %102, %cst_106 {dimension_numbers = #tpu.dot_dimension_numbers<[1], [0], [0], [1], [0, 0, 1, 1], [], []>} : vector<288x128xbf16>, vector<128x128xbf16>, vector<288x128xf32> -> vector<288x128xf32>
    %104 = arith.addf %99, %103 : vector<288x128xf32>
    %c38_107 = arith.constant 38 : index
    %c0_108 = arith.constant 0 : index
    %105 = vector.load %arg9[%c38_107, %c0_108] : memref<328x128xbf16, #tpu.memory_space<vmem>>, vector<288x128xbf16>
    %c8_109 = arith.constant 8 : index
    %c0_110 = arith.constant 0 : index
    %c0_111 = arith.constant 0 : index
    %106 = vector.load %arg6[%c8_109, %c0_110, %c0_111] : memref<9x128x128xbf16, #tpu.memory_space<vmem>>, vector<1x128x128xbf16>
    %107 = vector.shape_cast %106 : vector<1x128x128xbf16> to vector<128x128xbf16>
    %cst_112 = arith.constant dense<0.000000e+00> : vector<288x128xf32>
    %108 = tpu.matmul %105, %107, %cst_112 {dimension_numbers = #tpu.dot_dimension_numbers<[1], [0], [0], [1], [0, 0, 1, 1], [], []>} : vector<288x128xbf16>, vector<128x128xbf16>, vector<288x128xf32> -> vector<288x128xf32>
    %109 = arith.addf %104, %108 : vector<288x128xf32>
    %c0_113 = arith.constant 0 : index
    %c0_114 = arith.constant 0 : index
    %110 = vector.load %arg7[%c0_113, %c0_114] : memref<1x128xf32, #tpu.memory_space<vmem>>, vector<1x128xf32>
    %111 = vector.broadcast %110 : vector<1x128xf32> to vector<288x128xf32>
    %112 = arith.addf %109, %111 : vector<288x128xf32>
    %c0_115 = arith.constant 0 : index
    %c0_116 = arith.constant 0 : index
    %c0_117 = arith.constant 0 : index
    %113 = vector.load %arg2[%c0_115, %c0_116, %c0_117] : memref<1x288x128xf32, #tpu.memory_space<vmem>>, vector<1x288x128xf32>
    %114 = vector.shape_cast %113 : vector<1x288x128xf32> to vector<288x128xf32>
    %115 = arith.addf %112, %114 : vector<288x128xf32>
    %cst_118 = arith.constant 0.000000e+00 : f32
    %116 = vector.broadcast %cst_118 : f32 to vector<288x128xf32>
    %117 = arith.maximumf %115, %116 : vector<288x128xf32>
    %c0_119 = arith.constant 0 : index
    %c0_120 = arith.constant 0 : index
    %c0_121 = arith.constant 0 : index
    %118 = vector.load %arg8[%c0_119, %c0_120, %c0_121] : memref<1x288x128xf32, #tpu.memory_space<vmem>>, vector<1x288x128xf32>
    %119 = vector.shape_cast %118 : vector<1x288x128xf32> to vector<288x128xf32>
    %120 = vector.shape_cast %117 : vector<288x128xf32> to vector<1x288x128xf32>
    tpu.vector_store %arg8[%c0_119, %c0_120, %c0_121], %120 {strides = array<i32>} : memref<1x288x128xf32, #tpu.memory_space<vmem>>, vector<1x288x128xf32>,
    return
  }
  func.func @transform_0(%arg0: i32) -> (i32, i32, i32) {
    %c0_i32 = arith.constant 0 : i32
    %c0_i32_0 = arith.constant 0 : i32
    %c0_i32_1 = arith.constant 0 : i32
    return %arg0, %c0_i32, %c0_i32_0 : i32, i32, i32
  }
  func.func @transform_1(%arg0: i32) -> (i32, i32, i32) {
    %c0_i32 = arith.constant 0 : i32
    %c0_i32_0 = arith.constant 0 : i32
    %c0_i32_1 = arith.constant 0 : i32
    return %arg0, %c0_i32, %c0_i32_0 : i32, i32, i32
  }
  func.func @transform_2(%arg0: i32) -> (i32, i32) {
    %c0_i32 = arith.constant 0 : i32
    %c0_i32_0 = arith.constant 0 : i32
    %c0_i32_1 = arith.constant 0 : i32
    return %c0_i32, %c0_i32_0 : i32, i32
  }
  func.func @transform_3(%arg0: i32) -> (i32, i32, i32) {
    %c0_i32 = arith.constant 0 : i32
    %c0_i32_0 = arith.constant 0 : i32
    %c0_i32_1 = arith.constant 0 : i32
    %c0_i32_2 = arith.constant 0 : i32
    return %c0_i32, %c0_i32_0, %c0_i32_1 : i32, i32, i32
  }
  func.func @transform_4(%arg0: i32) -> (i32, i32) {
    %c0_i32 = arith.constant 0 : i32
    %c0_i32_0 = arith.constant 0 : i32
    %c0_i32_1 = arith.constant 0 : i32
    return %c0_i32, %c0_i32_0 : i32, i32
  }
  func.func @transform_5(%arg0: i32) -> (i32, i32, i32) {
    %c0_i32 = arith.constant 0 : i32
    %c0_i32_0 = arith.constant 0 : i32
    %c0_i32_1 = arith.constant 0 : i32
    %c0_i32_2 = arith.constant 0 : i32
    return %c0_i32, %c0_i32_0, %c0_i32_1 : i32, i32, i32
  }
  func.func @transform_6(%arg0: i32) -> (i32, i32) {
    %c0_i32 = arith.constant 0 : i32
    %c0_i32_0 = arith.constant 0 : i32
    %c0_i32_1 = arith.constant 0 : i32
    return %c0_i32, %c0_i32_0 : i32, i32
  }
  func.func @transform_7(%arg0: i32) -> (i32, i32, i32) {
    %c0_i32 = arith.constant 0 : i32
    %c0_i32_0 = arith.constant 0 : i32
    %c0_i32_1 = arith.constant 0 : i32
    return %arg0, %c0_i32, %c0_i32_0 : i32, i32, i32
  }
}

</mosaic_0001>

<bundles_post_ra>
// kernel: basic_block_forward.1
= control target key start
LH: loop header
LB: loop body
LE: loop exit
PB: predicated region body
PF: predicated region fallthrough
CT: control target
= control target key end

     0   :  { %s10972_s24 = smov 0   ;;  %s14704_s0 = inlined_call_operand.vmem [shape: bf16[2,328,128], index: 0, kind: input, shape index: {}]   ;;  %s14705_s1 = inlined_call_operand.vmem [shape: f32[2,288,128], index: 1, kind: input, shape index: {}]   ;;  %s14706_s2 = inlined_call_operand.vmem [shape: f32[288,128], index: 2, kind: input, shape index: {}]   ;;  %s14707_s3 = inlined_call_operand.vmem [shape: bf16[9,128,128], index: 3, kind: input, shape index: {}]   ;;  %s14708_s4 = inlined_call_operand.vmem [shape: f32[1,128], index: 4, kind: input, shape index: {}]   ;;  %s14709_s5 = inlined_call_operand.vmem [shape: bf16[9,128,128], index: 5, kind: input, shape index: {}]   ;;  %s14710_s6 = inlined_call_operand.vmem [shape: f32[1,128], index: 6, kind: input, shape index: {}]   ;;  %s14711_s7 = inlined_call_operand.vmem [shape: f32[2,288,128], index: 7, kind: output, shape index: {}]  }
   0x1 LB: > { %s8622_s25 = sadd.s32 4294967295, %s10929_s24   ;;  %p8626_p0 = scmp.ge.s32.totalorder %s10929_s24, 1  ;;  %s10929_s24 = sphi %s10972_s24, %s17_s24  }
   0x2   : > { %p247_p1 = scmp.lt.s32.totalorder %s10929_s24, 3 }
   0x4   : > { %p248_p2 = pnand %p8626_p0, %p247_p1 }
   0x6   : > { %251 = sbr.rel (%p248_p2) target bundleno = 1178 (0x49a), region = 48 }
   0xb   : > { %v10645_v0 = vld [vmem:[%s14707_s3 + $0x78] sm:$0xff]   ;;  %p284_p3 = scmp.lt.s32.totalorder %s8622_s25, 1  ;;  %v10647_v2 = vld [vmem:[%s14707_s3 + $0x70] sm:$0xff]   ;;  %v10649_v4 = vld [vmem:[%s14707_s3 + $0x68] sm:$0xff]   ;;  %vm479_vm0 = vsmask.f32 7424 }
   0xc   : > { %v10646_v1 = vld [vmem:[%s14707_s3 + $0x38] sm:$0xff]   ;;  %9698 = vmatprep.subr.bf16.mxu0 %v10645_v0  ;;  %v10648_v3 = vld [vmem:[%s14707_s3 + $0x30] sm:$0xff]   ;;  %v10650_v5 = vld [vmem:[%s14707_s3 + $0x28] sm:$0xff]   ;;  %vm1135_vm1 = vcmask 1046528   ;;  %vm1936_vm2 = vsmask.f32 6400 }
   0xd   : > { %9750 = vmatprep.subr.bf16.mxu1 %v10646_v1  ;;  %9699 = vmatpush3.bf16.msra.mxu0 %v10645_v0  ;;  %s14949_s25 = smov (!%p284_p3, %s8622_s25), 1  ;;  %v10651_v6 = vld [vmem:[%s14707_s3 + $0x60] sm:$0xff]   ;;  %v10653_v8 = vld [vmem:[%s14707_s3 + $0x58] sm:$0xff]   ;;  %v10655_v10 = vld [vmem:[%s14707_s3 + $0x50] sm:$0xff]   ;;  %vm2407_vm3 = vcmask 1045504   ;;  %vm3679_vm4 = vcmask 1044480  }
   0xe   : > { %9751 = vmatpush3.bf16.msra.mxu1 %v10646_v1  ;;  %9700 = vmatprep.subr.bf16.mxu0 %v10647_v2  ;;  %v10652_v7 = vld [vmem:[%s14707_s3 + $0x20] sm:$0xff]   ;;  %s10634_s19 = smul.u32 164, %s14949_s25  ;;  %v10654_v9 = vld [vmem:[%s14707_s3 + $0x18] sm:$0xff]   ;;  %v10656_v13 = vld [vmem:[%s14707_s3 + $0x10] sm:$0xff]   ;;  %vm3208_vm5 = vsmask.f32 5376 }
   0xf   : > { %9752 = vmatprep.subr.bf16.mxu1 %v10648_v3  ;;  %v10657_v20 = vld [vmem:[%s14707_s3 + $0x48] sm:$0xff]   ;;  %v10659_v25 = vld [vmem:[%s14707_s3 + $0x40] sm:$0xff]   ;;  %v10664_v36 = vld [vmem:[%s14707_s3 + $0xb8] sm:$0xff]   ;;  %vm302_vm6 = vcmask 1041408   ;;  %vm303_vm7 = vsmask.f32 1280 }
  0x10   : > { %s11016_s28 = scalar_lea.vmem %s14704_s0, %s10634_s19  ;;  %v10658_v21 = vld [vmem:[%s14707_s3 + $0x8] sm:$0xff]   ;;  %v10660_v29 = vld [vmem:[%s14707_s3] sm:$0xff]   ;;  %v10667_v46 = vld [vmem:[%s14707_s3 + $0xb0] sm:$0xff]   ;;  %vm308_vm9 = vcmask 1043457   ;;  %vm309_vm10 = vsmask.f32 7942 }
  0x11   : > { %9701 = vmatpush3.bf16.msra.mxu0 %v10647_v2  ;;  %v316_v11 = vld [vmem:[%s11016_s28] sm:$0xf]  ;;  %v11023_v12 = vld [vmem:[%s11016_s28 + $0x4] sm:$0xf]  ;;  %v11030_v15 = vld [vmem:[%s11016_s28 + $0x8] sm:$0xff]   ;;  %s10635_s21 = smul.u32 288, %s14949_s25 }
  0x12   : > { %9753 = vmatpush3.bf16.msra.mxu1 %v10648_v3  ;;  %9702 = vmatprep.subr.bf16.mxu0 %v10649_v4  ;;  %v8646_v14 = vcombine.low %v316_v11, %v11023_v12  ;;  %v488_v18 = vshll.u32 %v11030_v15, 16  ;;  %v11034_v19 = vld [vmem:[%s11016_s28 + $0x10] sm:$0xff]   ;;  %v11043_v24 = vld [vmem:[%s11016_s28 + $0x18] sm:$0xff]   ;;  %v492_v27 = vshrl.u32 %v11030_v15, 16  ;;  %v11057_v33 = vld [vmem:[%s11016_s28 + $0x20] sm:$0xff]  }
  0x13   : > { %9754 = vmatprep.subr.bf16.mxu1 %v10650_v5  ;;  %v496_v28 = vshll.u32 %v11034_v19, 16  ;;  %v500_v31 = vshrl.u32 %v11034_v19, 16  ;;  %v504_v32 = vshll.u32 %v11043_v24, 16  ;;  %v11063_v37 = vld [vmem:[%s11016_s28 + $0x28] sm:$0xff]   ;;  %v512_v40 = vshll.u32 %v11057_v33, 16  ;;  %v11075_v48 = vld [vmem:[%s11016_s28 + $0x30] sm:$0xff]   ;;  %vm12217_vm8 = vmand %vm302_vm6, %vm303_vm7  ;;  %s14496_s26 = scalar_lea.vmem %s14705_s1, %s10635_s21  ;;  %s14520_s8 = scalar_lea.vmem %s14711_s7, %s10635_s21 }
  0x14   : > { %v481_v16 = vshrl.u32 %v8646_v14, 16  ;;  %v483_v17 = vshll.u32 %v8646_v14, 16  ;;  %9766 = vmatprep.mubr.bf16.mxu1 %v8646_v14  ;;  %v490_v23 = vrot.slane %v488_v18, 1  ;;  %v508_v42 = vshrl.u32 %v11043_v24, 16  ;;  %v10670_v50 = vld [vmem:[%s14707_s3 + $0xa8] sm:$0xff]   ;;  %v11083_v53 = vld [vmem:[%s11016_s28 + $0x38] sm:$0xff]   ;;  %vm12236_vm11 = vmand %vm308_vm9, %vm309_vm10 }
  0x15   : > { %9703 = vmatpush3.bf16.msra.mxu0 %v10649_v4  ;;  %v498_v35 = vrot.slane %v496_v28, 1  ;;  %v506_v39 = vrot.slane %v504_v32, 1  ;;  %v516_v43 = vshrl.u32 %v11057_v33, 16  ;;  %v520_v44 = vshll.u32 %v11063_v37, 16  ;;  %v10679_v54 = vld [vmem:[%s14707_s3 + $0xf8] sm:$0xff]   ;;  %v10681_v59 = vld [vmem:[%s14707_s3 + $0xf0] sm:$0xff]  }
  0x16   : > { %9755 = vmatpush3.bf16.msra.mxu1 %v10650_v5  ;;  %9704 = vmatprep.subr.bf16.mxu0 %v10651_v6  ;;  %v485_v22 = vrot.slane %v483_v17, 1  ;;  %v494_v34 = vor.u32 %v492_v27, %v490_v23  ;;  %v514_v47 = vrot.slane %v512_v40, 1  ;;  %v524_v55 = vshrl.u32 %v11063_v37, 16  ;;  %v11098_v62 = vld [vmem:[%s11016_s28 + $0x40] sm:$0xff]   ;;  %v11104_v1 = vld [vmem:[%s11016_s28 + $0x48] sm:$0xff]   ;;  %v11126_v18 = vld [vmem:[%s11016_s28 + $0x50] sm:$0xff]  }
  0x17   : > { %9756 = vmatprep.subr.bf16.mxu1 %v10652_v7  ;;  %v502_v38 = vor.u32 %v500_v31, %v498_v35  ;;  %v510_v49 = vor.u32 %v508_v42, %v506_v39  ;;  %v522_v52 = vrot.slane %v520_v44, 1  ;;  %v528_v56 = vshll.u32 %v11075_v48, 16  ;;  %v10673_v63 = vld [vmem:[%s14707_s3 + $0xa0] sm:$0xff]   ;;  %v10684_v4 = vld [vmem:[%s14707_s3 + $0xe8] sm:$0xff]  }
  0x18   : > { %v486_v26 = vor.u32 %v485_v22, %v481_v16  ;;  %v499_v41 = vsel %vm479_vm0, %v494_v34, %v498_v35  ;;  %v518_v51 = vor.u32 %v516_v43, %v514_v47  ;;  %v532_v58 = vshrl.u32 %v11075_v48, 16  ;;  %v10686_v11 = vld [vmem:[%s14707_s3 + $0xe0] sm:$0xff]   ;;  %v10680_v22 = vld [vmem:[%s14707_s3 + $0x90] sm:$0xff]   ;;  %v11152_v34 = vld [vmem:[%s11016_s28 + $0x68] sm:$0xff]  }
  0x19   : > { %9705 = vmatpush3.bf16.msra.mxu0 %v10651_v6  ;;  %v507_v45 = vsel %vm479_vm0, %v502_v38, %v506_v39  ;;  %v515_v57 = vsel %vm479_vm0, %v510_v49, %v514_v47  ;;  %v536_v61 = vshll.u32 %v11083_v53, 16  ;;  %v530_v0 = vrot.slane %v528_v56, 1  ;;  %v11148_v31 = vld [vmem:[%s11016_s28 + $0x60] sm:$0xff]   ;;  %v10685_v35 = vld [vmem:[%s14707_s3 + $0x88] sm:$0xff]   ;;  %v10690_v38 = vld [vmem:[%s14707_s3 + $0xd0] sm:$0xff]  }
  0x1a   : > { %9757 = vmatpush3.bf16.msra.mxu1 %v10652_v7  ;;  %9706 = vmatprep.subr.bf16.mxu0 %v10653_v8  ;;  %v491_v30 = vsel %vm479_vm0, %v486_v26, %v490_v23  ;;  %v523_v60 = vsel %vm479_vm0, %v518_v51, %v522_v52  ;;  %v526_v2 = vor.u32 %v524_v55, %v522_v52  ;;  %v540_v3 = vshrl.u32 %v11083_v53, 16 }
  0x1b   : > { %9758 = vmatprep.subr.bf16.mxu1 %v10654_v9  ;;  %9714 = vmatprep.mubr.bf16.mxu0 %v491_v30  ;;  %v534_v5 = vor.u32 %v532_v58, %v530_v0  ;;  %v538_v6 = vrot.slane %v536_v61, 1  ;;  %v544_v7 = vshll.u32 %v11098_v62, 16  ;;  %v552_v14 = vshll.u32 %v11104_v1, 16  ;;  %v11183_v58 = vld [vmem:[%s11016_s28 + $0x78] sm:$0xff]  }
  0x1c   : > { %v1139_v16 = vrot.slane %v11034_v19, 1  ;;  %v556_v28 = vshrl.u32 %v11104_v1, 16  ;;  %v564_v32 = vshrl.u32 %v11126_v18, 16  ;;  %v576_v44 = vshll.u32 %v11148_v31, 16 }
  0x1d   : > { %9707 = vmatpush3.bf16.msra.mxu0 %v10653_v8  ;;  %v10676_v8 = vld [vmem:[%s14707_s3 + $0x98] sm:$0xff]   ;;  %v539_v17 = vsel %vm479_vm0, %v534_v5, %v538_v6  ;;  %v554_v27 = vrot.slane %v552_v14, 1  ;;  %v580_v49 = vshrl.u32 %v11148_v31, 16  ;;  %v1141_v52 = vrot.slane %v11043_v24, 1  ;;  %v11225_v14 = vld [vmem:[%s11016_s28 + $0x88] sm:$0xff]  }
  0x1e   : > { %9759 = vmatpush3.bf16.msra.mxu1 %v10654_v9  ;;  %9708 = vmatprep.subr.bf16.mxu0 %v10655_v10  ;;  %v1137_v9 = vrot.slane %v11030_v15, 1  ;;  %v584_v55 = vshll.u32 %v11152_v34, 16  ;;  %v1143_v56 = vrot.slane %v11057_v33, 1  ;;  %v1145_v61 = vrot.slane %v11063_v37, 1 }
  0x1f   : > { %9760 = vmatprep.subr.bf16.mxu1 %v10656_v13  ;;  %vm4255_vm12 = vsmask.f32 5392 }
  0x20   : > { %v11137_v23 = vsel %vm1135_vm1, %v1137_v9, %v1139_v16  ;;  %v11212_v5 = vsel %vm1135_vm1, %v1143_v56, %v1145_v61  ;;  %vm12720_vm13 = vmor %vm303_vm7, %vm4255_vm12 }
  0x21   : > { %9709 = vmatpush3.bf16.msra.mxu0 %v10655_v10  ;;  %v548_v10 = vshrl.u32 %v11098_v62, 16 }
  0x22   : > { %9761 = vmatpush3.bf16.msra.mxu1 %v10656_v13  ;;  %9710 = vmatprep.subr.bf16.mxu0 %v10657_v20  ;;  %v531_v13 = vsel %vm479_vm0, %v526_v2, %v530_v0  ;;  %v10695_v0 = vld [vmem:[%s14707_s3 + $0xc0] sm:$0xff]   ;;  %v1147_v2 = vrot.slane %v11075_v48, 1 }
  0x23   : > { %9762 = vmatprep.subr.bf16.mxu1 %v10658_v21 }
  0x25   : > { %9711 = vmatpush3.bf16.msra.mxu0 %v10657_v20  ;;  %v11129_v20 = vld [vmem:[%s11016_s28 + $0x58] sm:$0xff]  }
  0x26   : > { %9763 = vmatpush3.bf16.msra.mxu1 %v10658_v21  ;;  %9712 = vmatprep.subr.bf16.mxu0 %v10659_v25  ;;  %v546_v21 = vrot.slane %v544_v7, 1  ;;  %v568_v30 = vshll.u32 %v11129_v20, 16 }
  0x27   : > { %9764 = vmatprep.subr.bf16.mxu1 %v10660_v29 }
  0x28   : > { %v550_v26 = vor.u32 %v548_v10, %v546_v21  ;;  %v570_v43 = vrot.slane %v568_v30, 1  ;;  %v600_v10 = vshll.u32 %v11183_v58, 16 }
  0x29   : > { %9713 = vmatpush3.bf16.msra.mxu0 %v10659_v25  ;;  %v542_v25 = vor.u32 %v540_v3, %v538_v6  ;;  %v586_v6 = vrot.slane %v584_v55, 1 }
  0x2a   : > { %9765 = vmatpush3.bf16.msra.mxu1 %v10660_v29  ;;  %9802 = vmatprep.subr.bf16.mxu0 %v10664_v36  ;;  %v560_v29 = vshll.u32 %v11126_v18, 16  ;;  %v555_v40 = vsel %vm479_vm0, %v550_v26, %v554_v27 }
  0x2b   : > { %9854 = vmatprep.subr.bf16.mxu1 %v10679_v54  ;;  %v547_v39 = vsel %vm479_vm0, %v542_v25, %v546_v21  ;;  %v11236_v21 = vld [vmem:[%s11016_s28 + $0x90] ss:$0 sps:$4 sm:$0x11]   ;;  %v604_v25 = vshrl.u32 %v11183_v58, 16 }
  0x2c   : > { %9715 = vmatmul.mubr.bf16.vlgmr.msra.gmra.mxu0 %v499_v41  ;;  %v1114_v41 = vld [vmem:[%s11016_s28] sm:$0xe]  ;;  %v562_v42 = vrot.slane %v560_v29, 1 }
  0x2d   : > { %9767 = vmatmul.mubr.bf16.vlgmr.msra.gmra.mxu1 %v11030_v15  ;;  %9803 = vmatpush3.bf16.msra.mxu0 %v10664_v36  ;;  %v572_v36 = vshrl.u32 %v11129_v20, 16  ;;  %v8697_v47 = vcombine.low %v1114_v41, %v11023_v12  ;;  %v11203_v15 = vld [vmem:[%s11016_s28 + $0x80] sm:$0xff]   ;;  %v624_v41 = vshll.u32 %v11236_v21, 16 }
  0x2e   : > { %9718 = vmatprep.mubr.bf16.mxu0 %v507_v45  ;;  %9770 = vmatprep.mubr.bf16.mxu1 %v11034_v19  ;;  %v10689_v19 = vld [vmem:[%s14707_s3 + $0xd8] sm:$0xff]   ;;  %v11166_v45 = vld [vmem:[%s11016_s28 + $0x70] sm:$0xff]   ;;  %v566_v12 = vor.u32 %v564_v32, %v562_v42 }
  0x2f   : > { %9804 = vmatprep.subr.bf16.mxu0 %v10667_v46  ;;  %9855 = vmatpush3.bf16.msra.mxu1 %v10679_v54  ;;  %v1136_v51 = vrot.slane %v8697_v47, 1  ;;  %v558_v54 = vor.u32 %v556_v28, %v554_v27  ;;  %v602_v27 = vrot.slane %v600_v10, 1  ;;  %v612_v28 = vshrl.u32 %v11203_v15, 16  ;;  %v11270_v47 = vld [vmem:[%s11016_s28 + $0xc] sm:$0xf] }
  0x30   : > { %9856 = vmatprep.subr.bf16.mxu1 %v10681_v59 }
  0x31   : > { %9805 = vmatpush3.bf16.msra.mxu0 %v10667_v46  ;;  %v10692_v46 = vld [vmem:[%s14707_s3 + $0x80] sm:$0xff]   ;;  %v563_v3 = vsel %vm479_vm0, %v558_v54, %v562_v42  ;;  %v1452_v42 = vld [vmem:[%s11016_s28 + $0x8] sm:$0xe]  ;;  %v1165_v54 = vrot.slane %v11183_v58, 1  ;;  %v606_v10 = vor.u32 %v604_v25, %v602_v27 }
  0x32   : > { %9806 = vmatprep.subr.bf16.mxu0 %v10670_v50 }
  0x33   : > { %9857 = vmatpush3.bf16.msra.mxu1 %v10681_v59  ;;  %v11191_v59 = vsel %vm1135_vm1, %v1139_v16, %v1141_v52 }
  0x34   : > { %9719 = vmatmul.mubr.bf16.gmra.mxu0 %v515_v57  ;;  %9858 = vmatprep.subr.bf16.mxu1 %v10684_v4  ;;  %v592_v57 = vshll.u32 %v11166_v45, 16 }
  0x35   : > { %9771 = vmatmul.mubr.bf16.gmra.mxu1 %v11043_v24  ;;  %9722 = vmatprep.mubr.bf16.mxu0 %v523_v60  ;;  %v11188_v24 = vsel %vm1135_vm1, %v1136_v51, %v1137_v9  ;;  %v11199_v60 = vsel %vm1135_vm1, %v1141_v52, %v1143_v56  ;;  %v1151_v9 = vrot.slane %v11098_v62, 1  ;;  %v11277_v51 = vld [vmem:[%s11016_s28 + $0x10] sm:$0xff]   ;;  %v1163_v52 = vrot.slane %v11166_v45, 1 }
  0x36   : > { %9774 = vmatprep.mubr.bf16.mxu1 %v11057_v33  ;;  %9807 = vmatpush3.bf16.msra.mxu0 %v10670_v50  ;;  %v10694_v50 = vld [vmem:[%s14707_s3 + $0xc8] sm:$0xff]   ;;  %v11196_v33 = vld [vmem:[%s14707_s3 + $0x138] sm:$0xff]   ;;  %v594_v7 = vrot.slane %v592_v57, 1  ;;  %v626_v57 = vrot.slane %v624_v41, 1 }
  0x37   : > { %9808 = vmatprep.subr.bf16.mxu0 %v10673_v63  ;;  %9859 = vmatpush3.bf16.msra.mxu1 %v10684_v4  ;;  %v571_v4 = vsel %vm479_vm0, %v566_v12, %v570_v43  ;;  %v11283_v12 = vld [vmem:[%s11016_s28 + $0x18] sm:$0xff]  }
  0x38   : > { %9860 = vmatprep.subr.bf16.mxu1 %v10686_v11 }
  0x3a   : > { %9809 = vmatpush3.bf16.msra.mxu0 %v10673_v63  ;;  %v578_v63 = vrot.slane %v576_v44, 1  ;;  %v11266_v44 = vld [vmem:[%s14707_s3 + $0x178] sm:$0xff]  }
  0x3b   : > { %9810 = vmatprep.subr.bf16.mxu0 %v10676_v8  ;;  %9861 = vmatpush3.bf16.msra.mxu1 %v10686_v11  ;;  %v608_v11 = vshll.u32 %v11203_v15, 16 }
  0x3c   : > { %9723 = vmatmul.mubr.bf16.gmra.mxu0 %v531_v13  ;;  %9862 = vmatprep.subr.bf16.mxu1 %v10689_v19  ;;  %v574_v13 = vor.u32 %v572_v36, %v570_v43  ;;  %v1159_v36 = vrot.slane %v11148_v31, 1 }
  0x3d   : > { %9775 = vmatmul.mubr.bf16.gmra.mxu1 %v11063_v37  ;;  %9726 = vmatprep.mubr.bf16.mxu0 %v539_v17  ;;  %v588_v37 = vshrl.u32 %v11152_v34, 16  ;;  %v610_v30 = vrot.slane %v608_v11, 1 }
  0x3e   : > { %9778 = vmatprep.mubr.bf16.mxu1 %v11075_v48  ;;  %9811 = vmatpush3.bf16.msra.mxu0 %v10676_v8  ;;  %v11216_v8 = vsel %vm1135_vm1, %v1145_v61, %v1147_v2  ;;  %v1149_v48 = vrot.slane %v11083_v53, 1  ;;  %v579_v29 = vsel %vm479_vm0, %v574_v13, %v578_v63  ;;  %v8722_v61 = vcombine.low %v1452_v42, %v11270_v47  ;;  %v11315_v13 = vld [vmem:[%s11016_s28 + $0x40] sm:$0xff]  }
  0x3f   : > { %9812 = vmatprep.subr.bf16.mxu0 %v10680_v22  ;;  %9863 = vmatpush3.bf16.msra.mxu1 %v10689_v19  ;;  %v596_v19 = vshrl.u32 %v11166_v45, 16 }
  0x40   : > { %9864 = vmatprep.subr.bf16.mxu1 %v10690_v38  ;;  %v11228_v16 = vsel %vm1135_vm1, %v1147_v2, %v1149_v48  ;;  %v11231_v17 = vsel %vm1135_vm1, %v1149_v48, %v1151_v9  ;;  %v11310_v48 = vld [vmem:[%s11016_s28 + $0x38] sm:$0xff]   ;;  %v1599_v11 = vrot.slane %v8722_v61, 1 }
  0x42   : > { %9813 = vmatpush3.bf16.msra.mxu0 %v10680_v22  ;;  %v1155_v22 = vrot.slane %v11126_v18, 1 }
  0x43   : > { %9814 = vmatprep.subr.bf16.mxu0 %v10685_v35  ;;  %9865 = vmatpush3.bf16.msra.mxu1 %v10690_v38  ;;  %v620_v38 = vshrl.u32 %v11225_v14, 16 }
  0x44   : > { %9727 = vmatmul.mubr.bf16.gmra.mxu0 %v547_v39  ;;  %9866 = vmatprep.subr.bf16.mxu1 %v10694_v50 }
  0x45   : > { %9779 = vmatmul.mubr.bf16.gmra.mxu1 %v11083_v53  ;;  %9730 = vmatprep.mubr.bf16.mxu0 %v555_v40  ;;  %v1153_v53 = vrot.slane %v11104_v1, 1  ;;  %v1161_v40 = vrot.slane %v11152_v34, 1 }
  0x46   : > { %9782 = vmatprep.mubr.bf16.mxu1 %v11098_v62  ;;  %9815 = vmatpush3.bf16.msra.mxu0 %v10685_v35  ;;  %v582_v62 = vor.u32 %v580_v49, %v578_v63  ;;  %v616_v35 = vshll.u32 %v11225_v14, 16  ;;  %v11292_v63 = vld [vmem:[%s11016_s28 + $0x20] sm:$0xff]  }
  0x47   : > { %9816 = vmatprep.subr.bf16.mxu0 %v10692_v46  ;;  %9867 = vmatpush3.bf16.msra.mxu1 %v10694_v50  ;;  %v11242_v26 = vsel %vm1135_vm1, %v1151_v9, %v1153_v53  ;;  %v11273_v49 = vsel %vm1135_vm1, %v1159_v36, %v1161_v40  ;;  %v598_v50 = vor.u32 %v596_v19, %v594_v7  ;;  %v1171_v9 = vrot.slane %v11236_v21, 1 }
  0x48   : > { %9868 = vmatprep.subr.bf16.mxu1 %v10695_v0  ;;  %v587_v32 = vsel %vm479_vm0, %v582_v62, %v586_v6  ;;  %v11286_v55 = vsel %vm1135_vm1, %v1161_v40, %v1163_v52  ;;  %v614_v62 = vor.u32 %v612_v28, %v610_v30  ;;  %v1941_v28 = vshll.u32 %v8722_v61, 16 }
  0x49   : > { %v603_v2 = vsel %vm479_vm0, %v598_v50, %v602_v27 }
  0x4a   : > { %9817 = vmatpush3.bf16.msra.mxu0 %v10692_v46  ;;  %v590_v46 = vor.u32 %v588_v37, %v586_v6  ;;  %v11306_v37 = vld [vmem:[%s11016_s28 + $0x30] sm:$0xff]   ;;  %v1943_v50 = vrot.slane %v1941_v28, 2 }
  0x4b   : > { %9906 = vmatprep.subr.bf16.mxu0 %v11196_v33  ;;  %9869 = vmatpush3.bf16.msra.mxu1 %v10695_v0  ;;  %v11295_v0 = vsel %vm1135_vm1, %v1163_v52, %v1165_v54  ;;  %v1608_v27 = vrot.slane %v11306_v37, 1 }
  0x4c   : > { %9731 = vmatmul.mubr.bf16.gmra.mxu0 %v563_v3  ;;  %9958 = vmatprep.subr.bf16.mxu1 %v11266_v44  ;;  %v595_v56 = vsel %vm479_vm0, %v590_v46, %v594_v7  ;;  %v1600_v3 = vrot.slane %v11277_v51, 1  ;;  %v1169_v7 = vrot.slane %v11225_v14, 1 }
  0x4d   : > { %9783 = vmatmul.mubr.bf16.gmra.mxu1 %v11104_v1  ;;  %9734 = vmatprep.mubr.bf16.mxu0 %v571_v4  ;;  %v11246_v1 = vsel %vm1135_vm1, %v1153_v53, %v1155_v22  ;;  %v11300_v4 = vld [vmem:[%s11016_s28 + $0x28] sm:$0xff]  }
  0x4e   : > { %9786 = vmatprep.mubr.bf16.mxu1 %v11126_v18  ;;  %v1157_v18 = vrot.slane %v11129_v20, 1  ;;  %v11323_v19 = vsel %vm1135_vm1, %v1169_v7, %v1171_v9  ;;  %v1606_v25 = vrot.slane %v11300_v4, 1 }
  0x50   : > { %v11255_v39 = vsel %vm1135_vm1, %v1155_v22, %v1157_v18  ;;  %v11261_v43 = vsel %vm1135_vm1, %v1157_v18, %v1159_v36  ;;  %v1602_v22 = vrot.slane %v11283_v12, 1  ;;  %v1610_v18 = vrot.slane %v11310_v48, 1 }
  0x52   : > { %v11335_v41 = vsel %vm1135_vm1, %v1600_v3, %v1602_v22  ;;  %v11348_v52 = vsel %vm1135_vm1, %v1608_v27, %v1610_v18 }
  0x54   : > { %9735 = vmatmul.mubr.bf16.gmra.mxu0 %v579_v29  ;;  %v1938_v29 = vshrl.u32 %v8722_v61, 16 }
  0x55   : > { %9787 = vmatmul.mubr.bf16.gmra.mxu1 %v11129_v20  ;;  %9738 = vmatprep.mubr.bf16.mxu0 %v587_v32  ;;  %v618_v20 = vrot.slane %v616_v35, 1  ;;  %v611_v32 = vsel %vm479_vm0, %v606_v10, %v610_v30  ;;  %v11344_v30 = vsel %vm1135_vm1, %v1606_v25, %v1608_v27 }
  0x56   : > { %9790 = vmatprep.mubr.bf16.mxu1 %v11148_v31  ;;  %v1167_v31 = vrot.slane %v11203_v15, 1  ;;  %v1940_v36 = vrot.slane %v1938_v29, 1  ;;  %v1967_v29 = vshll.u32 %v11292_v63, 16 }
  0x57   : > { %v622_v21 = vor.u32 %v620_v38, %v618_v20  ;;  %v619_v35 = vsel %vm479_vm0, %v614_v62, %v618_v20  ;;  %v1601_v38 = vsel %vm1135_vm1, %v1599_v11, %v1600_v3  ;;  %v2386_v3 = vld [vmem:[%s11016_s28 + $0x8] sm:$0xc]  ;;  %v2411_v62 = vrot.slane %v11283_v12, 2 }
  0x58   : > { %v11303_v6 = vsel %vm1135_vm1, %v1165_v54, %v1167_v31  ;;  %v11318_v53 = vsel %vm1135_vm1, %v1167_v31, %v1169_v7  ;;  %v1946_v54 = vshrl.u32 %v11277_v51, 16  ;;  %v1949_v31 = vshll.u32 %v11277_v51, 16 }
  0x59   : > { %v627_v40 = vsel %vm479_vm0, %v622_v21, %v626_v57  ;;  %v1955_v57 = vshrl.u32 %v11283_v12, 16  ;;  %v2409_v7 = vrot.slane %v11277_v51, 2  ;;  %v8790_v11 = vcombine.low %v2386_v3, %v11270_v47  ;;  %v11398_v3 = vld [vmem:[%s11016_s28 + $0x48] sm:$0xff]  }
  0x5a   : > { %v1948_v61 = vrot.slane %v1946_v54, 1  ;;  %v1973_v21 = vshrl.u32 %v11300_v4, 16  ;;  %v1976_v51 = vshll.u32 %v11300_v4, 16 }
  0x5b   : > { %v1957_v9 = vrot.slane %v1955_v57, 1  ;;  %v11368_v27 = vsel %vm2407_vm3, %v2409_v7, %v2411_v62 }
  0x5c   : > { %9739 = vmatmul.mubr.bf16.gmra.mxu0 %v595_v56  ;;  %v1944_v56 = vor.u32 %v1943_v50, %v1940_v36  ;;  %v1978_v36 = vrot.slane %v1976_v51, 2  ;;  %v2413_v50 = vrot.slane %v11292_v63, 2  ;;  %v2012_v51 = vshll.u32 %v11398_v3, 16 }
  0x5d   : > { %9791 = vmatmul.mubr.bf16.gmra.mxu1 %v11152_v34  ;;  %9742 = vmatprep.mubr.bf16.mxu0 %v603_v2  ;;  %v1604_v34 = vrot.slane %v11292_v63, 1  ;;  %v1951_v2 = vrot.slane %v1949_v31, 2  ;;  %v2415_v31 = vrot.slane %v11300_v4, 2 }
  0x5e   : > { %9794 = vmatprep.mubr.bf16.mxu1 %v11166_v45  ;;  %v14712_v45 = vrot.slane %v11315_v13, 1 }
  0x5f   : > { %v11338_v42 = vsel %vm1135_vm1, %v1602_v22, %v1604_v34  ;;  %v11341_v46 = vsel %vm1135_vm1, %v1604_v34, %v1606_v25  ;;  %v1952_v22 = vor.u32 %v1951_v2, %v1948_v61  ;;  %v2408_v25 = vrot.slane %v8790_v11, 2  ;;  %v10702_v11 = vld [vmem:[%s14707_s3 + $0x130] sm:$0xff]  }
  0x60   : > { %v11353_v20 = vsel %vm1135_vm1, %v1610_v18, %v14712_v45  ;;  %v1991_v61 = vshrl.u32 %v11310_v48, 16 }
  0x61   : > { %v11372_v18 = vsel %vm1936_vm2, %v1944_v56, %v1952_v22  ;;  %v1982_v56 = vshrl.u32 %v11306_v37, 16 }
  0x63   : > { %v1984_v4 = vrot.slane %v1982_v56, 1 }
  0x64   : > { %9743 = vmatmul.mubr.bf16.gmra.mxu0 %v611_v32  ;;  %v1969_v32 = vrot.slane %v1967_v29, 2  ;;  %v2003_v29 = vshll.u32 %v11315_v13, 16 }
  0x65   : > { %9795 = vmatmul.mubr.bf16.gmra.mxu1 %v11183_v58  ;;  %9746 = vmatprep.mubr.bf16.mxu0 %v619_v35  ;;  %v1958_v58 = vshll.u32 %v11283_v12, 16  ;;  %v1975_v12 = vrot.slane %v1973_v21, 1  ;;  %v11378_v35 = vsel %vm2407_vm3, %v2408_v25, %v2409_v7  ;;  %v1993_v7 = vrot.slane %v1991_v61, 1 }
  0x66   : > { %9798 = vmatprep.mubr.bf16.mxu1 %v11203_v15  ;;  %v1964_v15 = vshrl.u32 %v11292_v63, 16  ;;  %v1994_v63 = vshll.u32 %v11310_v48, 16  ;;  %v2009_v25 = vshrl.u32 %v11398_v3, 16 }
  0x67   : > { %v1960_v10 = vrot.slane %v1958_v58, 2  ;;  %v1979_v57 = vor.u32 %v1978_v36, %v1975_v12  ;;  %v11387_v58 = vsel %vm2407_vm3, %v2411_v62, %v2413_v50  ;;  %v2005_v36 = vrot.slane %v2003_v29, 2 }
  0x68   : > { %v1966_v47 = vrot.slane %v1964_v15, 1  ;;  %v2000_v15 = vshrl.u32 %v11315_v13, 16  ;;  %v2011_v56 = vrot.slane %v2009_v25, 1 }
  0x69   : > { %v1961_v34 = vor.u32 %v1960_v10, %v1957_v9  ;;  %v1996_v9 = vrot.slane %v1994_v63, 2  ;;  %v2417_v10 = vrot.slane %v11306_v37, 2  ;;  %v2423_v63 = vrot.slane %v11398_v3, 2 }
  0x6a   : > { %v1970_v54 = vor.u32 %v1969_v32, %v1966_v47  ;;  %v11419_v47 = vld [vmem:[%s11016_s28 + $0x58] sm:$0xff]   ;;  %v2002_v12 = vrot.slane %v2000_v15, 1 }
  0x6b   : > { %v11375_v28 = vsel %vm1936_vm2, %v1952_v22, %v1961_v34  ;;  %v2419_v22 = vrot.slane %v11310_v48, 2  ;;  %v1997_v21 = vor.u32 %v1996_v9, %v1993_v7  ;;  %v11451_v7 = vld [vmem:[%s11016_s28 + $0x68] sm:$0xff]  }
  0x6c   : > { %9747 = vmatmul.mubr.bf16.gmra.mxu0 %v627_v40  ;;  %v1985_v40 = vshll.u32 %v11306_v37, 16  ;;  %v11416_v37 = vld [vmem:[%s11016_s28 + $0x50] sm:$0xff]   ;;  %v2006_v61 = vor.u32 %v2005_v36, %v2002_v12  ;;  %v2427_v12 = vrot.slane %v11419_v47, 2 }
  0x6d   : > { %9799 = vmatmul.mubr.bf16.gmra.mxu1 %v11225_v14  ;;  %9818 = vmatprep.mubr.bf16.mxu0 %v11188_v24  ;;  %v11392_v14 = vsel %vm1936_vm2, %v1961_v34, %v1970_v54  ;;  %v11395_v24 = vsel %vm2407_vm3, %v2413_v50, %v2415_v31  ;;  %v11411_v34 = vsel %vm2407_vm3, %v2415_v31, %v2417_v10  ;;  %v11431_v50 = vld [vmem:[%s14707_s3 + $0x128] sm:$0xff]  }
  0x6e   : > { %9870 = vmatprep.mubr.bf16.mxu1 %v1601_v38  ;;  %v1987_v2 = vrot.slane %v1985_v40, 2  ;;  %v11401_v38 = vsel %vm1936_vm2, %v1970_v54, %v1979_v57  ;;  %v11425_v48 = vsel %vm2407_vm3, %v2417_v10, %v2419_v22  ;;  %v10717_v54 = vld [vmem:[%s14707_s3 + $0x170] sm:$0xff]   ;;  %v2014_v40 = vrot.slane %v2012_v51, 2 }
  0x6f   : > { %v2030_v10 = vshll.u32 %v11419_v47, 16 }
  0x70   : > { %v1988_v62 = vor.u32 %v1987_v2, %v1984_v4  ;;  %v2018_v4 = vshrl.u32 %v11416_v37, 16  ;;  %v2021_v2 = vshll.u32 %v11416_v37, 16  ;;  %v2015_v9 = vor.u32 %v2014_v40, %v2011_v56 }
  0x72   : > { %v11422_v32 = vsel %vm1936_vm2, %v1979_v57, %v1988_v62  ;;  %v11437_v31 = vsel %vm1936_vm2, %v1988_v62, %v1997_v21  ;;  %v2421_v57 = vrot.slane %v11315_v13, 2  ;;  %v11460_v62 = vsel %vm1936_vm2, %v1997_v21, %v2006_v61 }
  0x73   : > { %v2023_v15 = vrot.slane %v2021_v2, 2  ;;  %v11469_v29 = vsel %vm1936_vm2, %v2006_v61, %v2015_v9  ;;  %v2425_v21 = vrot.slane %v11416_v37, 2  ;;  %v2045_v61 = vshrl.u32 %v11451_v7, 16  ;;  %v11485_v2 = vld [vmem:[%s11016_s28 + $0x70] sm:$0xff]  }
  0x74   : > { %9819 = vmatmul.mubr.bf16.vlgmr.msra.gmra.mxu0 %v11137_v23  ;;  %v11443_v23 = vld [vmem:[%s11016_s28 + $0x60] sm:$0xff]  }
  0x75   : > { %9907 = vmatpush3.bf16.msra.mxu0 %v11196_v33  ;;  %9871 = vmatmul.mubr.bf16.vlgmr.msra.gmra.mxu1 %v11335_v41  ;;  %v11454_v33 = vsel %vm2407_vm3, %v2419_v22, %v2421_v57  ;;  %v2027_v41 = vshrl.u32 %v11419_v47, 16  ;;  %v10720_v22 = vld [vmem:[%s14707_s3 + $0x168] sm:$0xff]   ;;  %v2036_v36 = vshrl.u32 %v11443_v23, 16  ;;  %v2039_v56 = vshll.u32 %v11443_v23, 16 }
  0x76   : > { %9822 = vmatprep.mubr.bf16.mxu0 %v11191_v59  ;;  %9874 = vmatprep.mubr.bf16.mxu1 %v11338_v42  ;;  %v11463_v59 = vsel %vm2407_vm3, %v2421_v57, %v2423_v63  ;;  %v2020_v42 = vrot.slane %v2018_v4, 1  ;;  %v11477_v57 = vsel %vm2407_vm3, %v2423_v63, %v2425_v21  ;;  %v2048_v4 = vshll.u32 %v11451_v7, 16 }
  0x77   : > { %9908 = vmatprep.subr.bf16.mxu0 %v10702_v11  ;;  %9959 = vmatpush3.bf16.msra.mxu1 %v11266_v44  ;;  %v2029_v25 = vrot.slane %v2027_v41, 1  ;;  %v2032_v44 = vrot.slane %v2030_v10, 2  ;;  %v11488_v41 = vld [vmem:[%s11016_s28 + $0x78] sm:$0xff]   ;;  %v2038_v63 = vrot.slane %v2036_v36, 1  ;;  %v2054_v36 = vshrl.u32 %v11485_v2, 16 }
  0x78   : > { %9960 = vmatprep.subr.bf16.mxu1 %v10717_v54  ;;  %v2024_v51 = vor.u32 %v2023_v15, %v2020_v42  ;;  %v11494_v42 = vsel %vm2407_vm3, %v2425_v21, %v2427_v12  ;;  %v2041_v15 = vrot.slane %v2039_v56, 2  ;;  %v2050_v45 = vrot.slane %v2048_v4, 2 }
  0x79   : > { %9909 = vmatpush3.bf16.msra.mxu0 %v10702_v11  ;;  %v2033_v40 = vor.u32 %v2032_v44, %v2029_v25  ;;  %v10709_v11 = vld [vmem:[%s14707_s3 + $0x120] sm:$0xff]   ;;  %14730 = vst [vmem:[#allocation3_spill] sm:$0xff] %v11494_v42  ;;  %v2047_v44 = vrot.slane %v2045_v61, 1  ;;  %v2057_v56 = vshll.u32 %v11485_v2, 16  ;;  %v2066_v4 = vshll.u32 %v11488_v41, 16 }
  0x7a   : > { %9910 = vmatprep.subr.bf16.mxu0 %v11431_v50  ;;  %v11491_v10 = vsel %vm1936_vm2, %v2015_v9, %v2024_v51  ;;  %v10722_v25 = vld [vmem:[%s14707_s3 + $0x160] sm:$0xff]   ;;  %v2429_v9 = vrot.slane %v11443_v23, 2  ;;  %v2042_v21 = vor.u32 %v2041_v15, %v2038_v63  ;;  %v11523_v15 = vld [vmem:[%s11016_s28 + $0x88] sm:$0xff]  }
  0x7b   : > { %9961 = vmatpush3.bf16.msra.mxu1 %v10717_v54  ;;  %v11501_v54 = vsel %vm1936_vm2, %v2024_v51, %v2033_v40  ;;  %v2051_v51 = vor.u32 %v2050_v45, %v2047_v44  ;;  %v11520_v63 = vld [vmem:[%s11016_s28 + $0x80] sm:$0xff]   ;;  %v10725_v44 = vld [vmem:[%s14707_s3 + $0x158] sm:$0xff]   ;;  %v2068_v42 = vrot.slane %v2066_v4, 2  ;;  %v11550_v4 = vld [vmem:[%s11016_s28 + $0x90] sm:$0xff]  }
  0x7c   : > { %9823 = vmatmul.mubr.bf16.gmra.mxu0 %v11199_v60  ;;  %9962 = vmatprep.subr.bf16.mxu1 %v10720_v22  ;;  %14731 = vst [vmem:[#allocation4_spill] sm:$0xff] %v11501_v54  ;;  %v2431_v60 = vrot.slane %v11451_v7, 2  ;;  %v11512_v61 = vsel %vm2407_vm3, %v2427_v12, %v2429_v9  ;;  %v2059_v12 = vrot.slane %v2057_v56, 2  ;;  %v2433_v54 = vrot.slane %v11485_v2, 2 }
  0x7d   : > { %9875 = vmatmul.mubr.bf16.gmra.mxu1 %v11341_v46  ;;  %9826 = vmatprep.mubr.bf16.mxu0 %v11212_v5  ;;  %14732 = vst [vmem:[#allocation5_spill] sm:$0xff] %v11512_v61  ;;  %v2063_v46 = vshrl.u32 %v11488_v41, 16  ;;  %v10712_v5 = vld [vmem:[%s14707_s3 + $0x118] sm:$0xff]   ;;  %v11535_v61 = vsel %vm1936_vm2, %v2042_v21, %v2051_v51 }
  0x7e   : > { %9878 = vmatprep.mubr.bf16.mxu1 %v11344_v30  ;;  %9911 = vmatpush3.bf16.msra.mxu0 %v11431_v50  ;;  %v11526_v30 = vsel %vm1936_vm2, %v2033_v40, %v2042_v21  ;;  %v11529_v45 = vsel %vm2407_vm3, %v2429_v9, %v2431_v60  ;;  %v2056_v50 = vrot.slane %v2054_v36, 1  ;;  %14735 = vst [vmem:[#allocation8_spill] sm:$0xff] %v11535_v61  ;;  %v2072_v9 = vshrl.u32 %v11520_v63, 16 }
  0x7f   : > { %9912 = vmatprep.subr.bf16.mxu0 %v10709_v11  ;;  %9963 = vmatpush3.bf16.msra.mxu1 %v10720_v22  ;;  %14733 = vst [vmem:[#allocation6_spill] sm:$0xff] %v11526_v30  ;;  %14734 = vst [vmem:[#allocation7_spill] sm:$0xff] %v11529_v45  ;;  %v2065_v22 = vrot.slane %v2063_v46, 1  ;;  %v2435_v30 = vrot.slane %v11488_v41, 2  ;;  %v2075_v36 = vshll.u32 %v11520_v63, 16  ;;  %v11542_v45 = vsel %vm2407_vm3, %v2431_v60, %v2433_v54  ;;  %v10716_v46 = vld [vmem:[%s14707_s3 + $0x110] sm:$0xff]  }
  0x80   : > { %9964 = vmatprep.subr.bf16.mxu1 %v10722_v25  ;;  %v2060_v40 = vor.u32 %v2059_v12, %v2056_v50  ;;  %14736 = vst [vmem:[#allocation9_spill] sm:$0xff] %v11542_v45  ;;  %v2081_v21 = vshrl.u32 %v11523_v15, 16  ;;  %v2084_v61 = vshll.u32 %v11523_v15, 16  ;;  %v10726_v12 = vld [vmem:[%s14707_s3 + $0x150] sm:$0xff]  }
  0x81   : > { %v2069_v56 = vor.u32 %v2068_v42, %v2065_v22  ;;  %v2074_v42 = vrot.slane %v2072_v9, 1  ;;  %v2077_v60 = vrot.slane %v2075_v36, 2  ;;  %v2439_v9 = vrot.slane %v11523_v15, 2 }
  0x82   : > { %9913 = vmatpush3.bf16.msra.mxu0 %v10709_v11  ;;  %v11553_v50 = vsel %vm1936_vm2, %v2051_v51, %v2060_v40  ;;  %v11556_v11 = vsel %vm2407_vm3, %v2433_v54, %v2435_v30  ;;  %v2086_v45 = vrot.slane %v2084_v61, 2  ;;  %v2437_v51 = vrot.slane %v11520_v63, 2 }
  0x83   : > { %9914 = vmatprep.subr.bf16.mxu0 %v10712_v5  ;;  %9965 = vmatpush3.bf16.msra.mxu1 %v10722_v25  ;;  %v11563_v22 = vsel %vm1936_vm2, %v2060_v40, %v2069_v56  ;;  %v2083_v25 = vrot.slane %v2081_v21, 1  ;;  %v2078_v54 = vor.u32 %v2077_v60, %v2074_v42  ;;  %v2093_v36 = vshll.u32 %v11550_v4, 16 }
  0x84   : > { %9827 = vmatmul.mubr.bf16.gmra.mxu0 %v11216_v8  ;;  %9966 = vmatprep.subr.bf16.mxu1 %v10725_v44  ;;  %v2090_v8 = vshrl.u32 %v11550_v4, 16  ;;  %v1614_v40 = vrot.slane %v11398_v3, 1  ;;  %v1616_v21 = vrot.slane %v11416_v37, 1  ;;  %v10730_v37 = vld [vmem:[%s14707_s3 + $0x148] sm:$0xff]  }
  0x85   : > { %9879 = vmatmul.mubr.bf16.gmra.mxu1 %v11348_v52  ;;  %9830 = vmatprep.mubr.bf16.mxu0 %v11228_v16  ;;  %v10721_v52 = vld [vmem:[%s14707_s3 + $0x108] sm:$0xff]   ;;  %v2087_v61 = vor.u32 %v2086_v45, %v2083_v25  ;;  %v11578_v16 = vsel %vm2407_vm3, %v2435_v30, %v2437_v51  ;;  %v11581_v42 = vsel %vm1936_vm2, %v2069_v56, %v2078_v54  ;;  %v2095_v60 = vrot.slane %v2093_v36, 2 }
  0x86   : > { %9882 = vmatprep.mubr.bf16.mxu1 %v11353_v20  ;;  %9915 = vmatpush3.bf16.msra.mxu0 %v10712_v5  ;;  %v11584_v20 = vsel %vm2407_vm3, %v2437_v51, %v2439_v9  ;;  %v2092_v3 = vrot.slane %v2090_v8, 1  ;;  %v2441_v30 = vrot.slane %v11550_v4, 2  ;;  %v1617_v51 = vsel %vm1135_vm1, %v1614_v40, %v1616_v21 }
  0x87   : > { %9916 = vmatprep.subr.bf16.mxu0 %v10716_v46  ;;  %9967 = vmatpush3.bf16.msra.mxu1 %v10725_v44  ;;  %v11590_v5 = vsel %vm1936_vm2, %v2078_v54, %v2087_v61  ;;  %v14737_v44 = vrot.slane %v11315_v13, 1  ;;  %v10727_v54 = vld [vmem:[%s14707_s3 + $0x100] sm:$0xff]  }
  0x88   : > { %9968 = vmatprep.subr.bf16.mxu1 %v10726_v12  ;;  %v11593_v45 = vor.u32 %v2095_v60, %v2092_v3  ;;  %v11601_v25 = vsel %vm2407_vm3, %v2439_v9, %v2441_v30  ;;  %v10731_v13 = vld [vmem:[%s14707_s3 + $0x140] sm:$0xff]   ;;  %v10738_v9 = vld [vmem:[%s14707_s3 + $0x1f8] sm:$0xff]   ;;  %v10745_v60 = vld [vmem:[%s14707_s3 + $0x1d0] sm:$0xff]  }
  0x89   : > { %v1615_v56 = vsel %vm1135_vm1, %v14737_v44, %v1614_v40 }
  0x8a   : > { %9917 = vmatpush3.bf16.msra.mxu0 %v10716_v46  ;;  %v11609_v8 = vsel %vm1936_vm2, %v2087_v61, %v11593_v45  ;;  %v1618_v46 = vrot.slane %v11419_v47, 1  ;;  %v1622_v47 = vrot.slane %v11451_v7, 1  ;;  %v10729_v61 = vld [vmem:[%s11016_s28 + $0x98] ss:$0 sps:$4 sm:$0x11]  }
  0x8b   : > { %9918 = vmatprep.subr.bf16.mxu0 %v10721_v52  ;;  %9969 = vmatpush3.bf16.msra.mxu1 %v10726_v12  ;;  %v1620_v12 = vrot.slane %v11443_v23, 1  ;;  %v1624_v23 = vrot.slane %v11485_v2, 1  ;;  %v1632_v2 = vrot.slane %v11550_v4, 1 }
  0x8c   : > { %9831 = vmatmul.mubr.bf16.gmra.mxu0 %v11231_v17  ;;  %9970 = vmatprep.subr.bf16.mxu1 %v10730_v37  ;;  %v10732_v17 = vld [vmem:[%s14707_s3 + $0x1b8] sm:$0xff]   ;;  %v1619_v36 = vsel %vm1135_vm1, %v1616_v21, %v1618_v46 }
  0x8d   : > { %9883 = vmatmul.mubr.bf16.gmra.mxu1 %v1615_v56  ;;  %9834 = vmatprep.mubr.bf16.mxu0 %v11242_v26  ;;  %v1621_v26 = vsel %vm1135_vm1, %v1618_v46, %v1620_v12  ;;  %v1623_v40 = vsel %vm1135_vm1, %v1620_v12, %v1622_v47  ;;  %v1625_v21 = vsel %vm1135_vm1, %v1622_v47, %v1624_v23  ;;  %v14744_v46 = vld [vmem:[#allocation9_spill] sm:$0xff]  ;;  %v2724_v12 = vld [vmem:[%s11016_s28 + $0x10] sm:$0xc] }
  0x8e   : > { %9886 = vmatprep.mubr.bf16.mxu1 %v1617_v51  ;;  %9919 = vmatpush3.bf16.msra.mxu0 %v10721_v52  ;;  %v10742_v51 = vld [vmem:[%s14707_s3 + $0x188] sm:$0xff]  }
  0x8f   : > { %9920 = vmatprep.subr.bf16.mxu0 %v10727_v54  ;;  %9971 = vmatpush3.bf16.msra.mxu1 %v10730_v37 }
  0x90   : > { %9972 = vmatprep.subr.bf16.mxu1 %v10731_v13 }
  0x92   : > { %9921 = vmatpush3.bf16.msra.mxu0 %v10727_v54  ;;  %v14741_v54 = vld [vmem:[#allocation5_spill] sm:$0xff] }
  0x93   : > { %9973 = vmatpush3.bf16.msra.mxu1 %v10731_v13  ;;  %10010 = vmatprep.subr.bf16.mxu0 %v10732_v17  ;;  %v14742_v13 = vld [vmem:[#allocation8_spill] sm:$0xff] }
  0x94   : > { %9835 = vmatmul.mubr.bf16.gmra.mxu0 %v11246_v1  ;;  %10062 = vmatprep.subr.bf16.mxu1 %v10738_v9  ;;  %v1626_v1 = vrot.slane %v11488_v41, 1 }
  0x95   : > { %9887 = vmatmul.mubr.bf16.gmra.mxu1 %v1619_v36  ;;  %9838 = vmatprep.mubr.bf16.mxu0 %v11255_v39  ;;  %v1628_v39 = vrot.slane %v11520_v63, 1 }
  0x96   : > { %9890 = vmatprep.mubr.bf16.mxu1 %v1621_v26  ;;  %v1627_v52 = vsel %vm1135_vm1, %v1624_v23, %v1626_v1 }
  0x97   : > { %v1629_v7 = vsel %vm1135_vm1, %v1626_v1, %v1628_v39 }
  0x9c   : > { %9839 = vmatmul.mubr.bf16.gmra.mxu0 %v11261_v43  ;;  %v1630_v43 = vrot.slane %v11523_v15, 1  ;;  %v3658_v15 = vld [vmem:[%s11016_s28 + $0x10] sm:$0x8] }
  0x9d   : > { %9891 = vmatmul.mubr.bf16.gmra.mxu1 %v1623_v40  ;;  %9842 = vmatprep.mubr.bf16.mxu0 %v11273_v49 }
  0x9e   : > { %9894 = vmatprep.mubr.bf16.mxu1 %v1625_v21  ;;  %v1631_v49 = vsel %vm1135_vm1, %v1628_v39, %v1630_v43  ;;  %v1633_v41 = vsel %vm1135_vm1, %v1630_v43, %v1632_v2 }
  0xa4   : > { %9843 = vmatmul.mubr.bf16.gmra.mxu0 %v11286_v55  ;;  %v1634_v55 = vrot.slane %v10729_v61, 1 }
  0xa5   : > { %9895 = vmatmul.mubr.bf16.gmra.mxu1 %v1627_v52  ;;  %9846 = vmatprep.mubr.bf16.mxu0 %v11295_v0  ;;  %v10734_v0 = vld [vmem:[%s14707_s3 + $0x1b0] sm:$0xff]  }
  0xa6   : > { %9898 = vmatprep.mubr.bf16.mxu1 %v1629_v7  ;;  %v1635_v63 = vsel %vm1135_vm1, %v1632_v2, %v1634_v55 }
  0xac   : > { %9847 = vmatmul.mubr.bf16.gmra.mxu0 %v11303_v6  ;;  %v10740_v6 = vld [vmem:[%s14707_s3 + $0x1f0] sm:$0xff]  }
  0xad   : > { %9899 = vmatmul.mubr.bf16.gmra.mxu1 %v1631_v49  ;;  %9850 = vmatprep.mubr.bf16.mxu0 %v11318_v53  ;;  %v10735_v53 = vld [vmem:[%s14707_s3 + $0x1a8] sm:$0xff]  }
  0xae   : > { %9902 = vmatprep.mubr.bf16.mxu1 %v1633_v41 }
  0xb4   : > { %9851 = vmatmul.mubr.bf16.gmra.mxu0 %v11323_v19  ;;  %v10741_v19 = vld [vmem:[%s14707_s3 + $0x1e8] sm:$0xff]  }
  0xb5   : > { %9903 = vmatmul.mubr.bf16.gmra.mxu1 %v1635_v63  ;;  %9922 = vmatprep.mubr.bf16.mxu0 %v11372_v18  ;;  %v10743_v18 = vld [vmem:[%s14707_s3 + $0x1e0] sm:$0xff]  }
  0xb6   : > { %9974 = vmatprep.mubr.bf16.mxu1 %v11378_v35  ;;  %v10737_v35 = vld [vmem:[%s14707_s3 + $0x198] sm:$0xff]  }
  0xbc   : > { %9923 = vmatmul.mubr.bf16.vlgmr.msra.gmra.mxu0 %v11375_v28  ;;  %v11675_v28 = vld [vmem:[%s11016_s28 + $0x14] sm:$0xf] }
  0xbd   : > { %10011 = vmatpush3.bf16.msra.mxu0 %v10732_v17  ;;  %9975 = vmatmul.mubr.bf16.vlgmr.msra.gmra.mxu1 %v11368_v27  ;;  %v10736_v27 = vld [vmem:[%s14707_s3 + $0x1a0] sm:$0xff]   ;;  %v10747_v17 = vld [vmem:[%s11016_s28 + $0x98] ss:$0 sps:$4 sm:$0x33]  }
  0xbe   : > { %9926 = vmatprep.mubr.bf16.mxu0 %v11392_v14  ;;  %9978 = vmatprep.mubr.bf16.mxu1 %v11387_v58  ;;  %v11683_v58 = vld [vmem:[%s11016_s28 + $0x18] sm:$0xff]   ;;  %v2099_v47 = vshrl.u32 %v10747_v17, 16  ;;  %v2102_v23 = vshll.u32 %v10747_v17, 16 }
  0xbf   : > { %10012 = vmatprep.subr.bf16.mxu0 %v10734_v0  ;;  %10063 = vmatpush3.bf16.msra.mxu1 %v10738_v9  ;;  %v10744_v14 = vld [vmem:[%s14707_s3 + $0x1d8] sm:$0xff]   ;;  %v8815_v9 = vcombine.low %v2724_v12, %v11675_v28  ;;  %v3218_v52 = vshrl.u32 %v11683_v58, 16 }
  0xc0   : > { %10064 = vmatprep.subr.bf16.mxu1 %v10740_v6  ;;  %v2104_v2 = vrot.slane %v2102_v23, 2 }
  0xc1   : > { %10013 = vmatpush3.bf16.msra.mxu0 %v10734_v0  ;;  %v3210_v1 = vshrl.u32 %v8815_v9, 16  ;;  %v3213_v39 = vshll.u32 %v8815_v9, 16  ;;  %v3220_v63 = vrot.slane %v3218_v52, 2 }
  0xc2   : > { %10014 = vmatprep.subr.bf16.mxu0 %v10735_v53 }
  0xc3   : > { %10065 = vmatpush3.bf16.msra.mxu1 %v10740_v6  ;;  %v3212_v55 = vrot.slane %v3210_v1, 2  ;;  %v11760_v6 = vld [vmem:[%s11016_s28 + $0x28] sm:$0xff]  }
  0xc4   : > { %9927 = vmatmul.mubr.bf16.gmra.mxu0 %v11401_v38  ;;  %10066 = vmatprep.subr.bf16.mxu1 %v10741_v19  ;;  %v11690_v38 = vld [vmem:[%s11016_s28 + $0x20] sm:$0xff]  }
  0xc5   : > { %9979 = vmatmul.mubr.bf16.gmra.mxu1 %v11395_v24  ;;  %9930 = vmatprep.mubr.bf16.mxu0 %v11422_v32  ;;  %v8883_v24 = vcombine.low %v3658_v15, %v11675_v28  ;;  %v10739_v32 = vld [vmem:[%s14707_s3 + $0x190] sm:$0xff]   ;;  %v14713_v37 = vrot.slane %v11690_v38, 3  ;;  %v2443_v28 = vrot.slane %v10747_v17, 2 }
  0xc6   : > { %9982 = vmatprep.mubr.bf16.mxu1 %v11411_v34  ;;  %10015 = vmatpush3.bf16.msra.mxu0 %v10735_v53  ;;  %v3681_v34 = vrot.slane %v11683_v58, 3 }
  0xc7   : > { %10016 = vmatprep.subr.bf16.mxu0 %v10736_v27  ;;  %10067 = vmatpush3.bf16.msra.mxu1 %v10741_v19  ;;  %v3680_v3 = vrot.slane %v8883_v24, 3  ;;  %v2871_v24 = vrot.slane %v8815_v9, 2  ;;  %v11790_v9 = vld [vmem:[%s11016_s28 + $0x38] sm:$0xff]  }
  0xc8   : > { %10068 = vmatprep.subr.bf16.mxu1 %v10743_v18  ;;  %v11709_v56 = vsel %vm3679_vm4, %v3681_v34, %v14713_v37 }
  0xc9   : > { %v11703_v44 = vsel %vm3679_vm4, %v3680_v3, %v3681_v34  ;;  %v3230_v3 = vshll.u32 %v11690_v38, 16 }
  0xca   : > { %10017 = vmatpush3.bf16.msra.mxu0 %v10736_v27 }
  0xcb   : > { %10018 = vmatprep.subr.bf16.mxu0 %v10737_v35  ;;  %10069 = vmatpush3.bf16.msra.mxu1 %v10743_v18 }
  0xcc   : > { %9931 = vmatmul.mubr.bf16.gmra.mxu0 %v11437_v31  ;;  %10070 = vmatprep.subr.bf16.mxu1 %v10744_v14  ;;  %v10748_v31 = vld [vmem:[%s14707_s3 + $0x1c8] sm:$0xff]  }
  0xcd   : > { %9983 = vmatmul.mubr.bf16.gmra.mxu1 %v11425_v48  ;;  %9934 = vmatprep.mubr.bf16.mxu0 %v11460_v62  ;;  %v10746_v48 = vld [vmem:[%s14707_s3 + $0x180] sm:$0xff]  }
  0xce   : > { %9986 = vmatprep.mubr.bf16.mxu1 %v11454_v33  ;;  %10019 = vmatpush3.bf16.msra.mxu0 %v10737_v35  ;;  %v10749_v62 = vld [vmem:[%s14707_s3 + $0x1c0] sm:$0xff]   ;;  %v11732_v33 = vld [vmem:[%s14707_s3 + $0x238] sm:$0xff]   ;;  %v2872_v35 = vrot.slane %v11683_v58, 2 }
  0xcf   : > { %10020 = vmatprep.subr.bf16.mxu0 %v10739_v32  ;;  %10071 = vmatpush3.bf16.msra.mxu1 %v10744_v14 }
  0xd0   : > { %10072 = vmatprep.subr.bf16.mxu1 %v10745_v60 }
  0xd2   : > { %10021 = vmatpush3.bf16.msra.mxu0 %v10739_v32  ;;  %v3227_v32 = vshrl.u32 %v11690_v38, 16 }
  0xd3   : > { %10022 = vmatprep.subr.bf16.mxu0 %v10742_v51  ;;  %10073 = vmatpush3.bf16.msra.mxu1 %v10745_v60  ;;  %v3239_v60 = vshll.u32 %v11760_v6, 16 }
  0xd4   : > { %9935 = vmatmul.mubr.bf16.gmra.mxu0 %v11469_v29  ;;  %10074 = vmatprep.subr.bf16.mxu1 %v10748_v31  ;;  %v14739_v29 = vld [vmem:[#allocation3_spill] sm:$0xff] }
  0xd5   : > { %9987 = vmatmul.mubr.bf16.gmra.mxu1 %v11463_v59  ;;  %9938 = vmatprep.mubr.bf16.mxu0 %v11491_v10  ;;  %v14738_v59 = vld [vmem:[#allocation4_spill] sm:$0xff]  ;;  %v14740_v10 = vld [vmem:[#allocation6_spill] sm:$0xff]  ;;  %v3241_v17 = vrot.slane %v3239_v60, 3 }
  0xd6   : > { %9990 = vmatprep.mubr.bf16.mxu1 %v11477_v57  ;;  %10023 = vmatpush3.bf16.msra.mxu0 %v10742_v51  ;;  %v14743_v57 = vld [vmem:[#allocation7_spill] sm:$0xff] }
  0xd7   : > { %10024 = vmatprep.subr.bf16.mxu0 %v10746_v48  ;;  %10075 = vmatpush3.bf16.msra.mxu1 %v10748_v31 }
  0xd8   : > { %10076 = vmatprep.subr.bf16.mxu1 %v10749_v62 }
  0xda   : > { %10025 = vmatpush3.bf16.msra.mxu0 %v10746_v48  ;;  %v2444_v48 = vsel %vm2407_vm3, %v2441_v30, %v2443_v28 }
  0xdb   : > { %10077 = vmatpush3.bf16.msra.mxu1 %v10749_v62  ;;  %10114 = vmatprep.subr.bf16.mxu0 %v11732_v33 }
  0xdc   : > { %9939 = vmatmul.mubr.bf16.gmra.mxu0 %v14738_v59 }
  0xdd   : > { %9991 = vmatmul.mubr.bf16.gmra.mxu1 %v14739_v29  ;;  %9942 = vmatprep.mubr.bf16.mxu0 %v14740_v10  ;;  %v2873_v29 = vsel %vm2407_vm3, %v2871_v24, %v2872_v35  ;;  %v3229_v10 = vrot.slane %v3227_v32, 2  ;;  %v11817_v32 = vld [vmem:[%s11016_s28 + $0x48] sm:$0xff]  }
  0xde   : > { %9994 = vmatprep.mubr.bf16.mxu1 %v14741_v54  ;;  %v3232_v54 = vrot.slane %v3230_v3, 3 }
  0xe0   : > { %v3233_v23 = vor.u32 %v3232_v54, %v3229_v10  ;;  %v3272_v10 = vshrl.u32 %v11817_v32, 16  ;;  %v3275_v54 = vshll.u32 %v11817_v32, 16 }
  0xe4   : > { %9943 = vmatmul.mubr.bf16.gmra.mxu0 %v14742_v13  ;;  %v11786_v13 = vld [vmem:[%s11016_s28 + $0x30] sm:$0xff]  }
  0xe5   : > { %9995 = vmatmul.mubr.bf16.gmra.mxu1 %v14743_v57  ;;  %9946 = vmatprep.mubr.bf16.mxu0 %v11553_v50 }
  0xe6   : > { %9998 = vmatprep.mubr.bf16.mxu1 %v14744_v46 }
  0xec   : > { %v9716_v36 = vpop.f32.mrf.mxu0  ;;  %9947 = vmatmul.mubr.bf16.gmra.mxu0 %v11563_v22  ;;  %v3221_v22 = vshll.u32 %v11683_v58, 16 }
  0xed   : > { %v9768_v26 = vpop.f32.mrf.mxu1  ;;  %9999 = vmatmul.mubr.bf16.gmra.mxu1 %v11556_v11  ;;  %9950 = vmatprep.mubr.bf16.mxu0 %v11581_v42  ;;  %v2101_v42 = vrot.slane %v2099_v47, 1 }
  0xee   : > { %v11750_v40 = vadd.f32 %v9768_v26, %v9716_v36  ;;  %v728_v21 = vpop.f32.mrf.mxu0  ;;  %10002 = vmatprep.mubr.bf16.mxu1 %v11578_v16  ;;  %v3215_v16 = vrot.slane %v3213_v39, 3  ;;  %v3223_v0 = vrot.slane %v3221_v22, 3  ;;  %v2874_v36 = vrot.slane %v11690_v38, 2 }
  0xef   : > { %v971_v50 = vpop.f32.mrf.mxu1  ;;  %v2105_v18 = vor.u32 %v2104_v2, %v2101_v42  ;;  %v2876_v39 = vrot.slane %v11760_v6, 2  ;;  %v3254_v22 = vshrl.u32 %v11790_v9, 16 }
  0xf0   : > { %v11755_v7 = vadd.f32 %v971_v50, %v728_v21  ;;  %v9717_v11 = vpop.f32.mrf.mxu0  ;;  %v3216_v34 = vor.u32 %v3215_v16, %v3212_v55  ;;  %v3245_v21 = vshrl.u32 %v11786_v13, 16  ;;  %v3248_v50 = vshll.u32 %v11786_v13, 16 }
  0xf1   : > { %v9769_v43 = vpop.f32.mrf.mxu1  ;;  %v3256_v24 = vrot.slane %v3254_v22, 2 }
  0xf2   : > { %v11757_v49 = vadd.f32 %v9769_v43, %v9717_v11  ;;  %v731_v61 = vpop.f32.mrf.mxu0  ;;  %v3257_v11 = vshll.u32 %v11790_v9, 16 }
  0xf3   : > { %v974_v41 = vpop.f32.mrf.mxu1 }
  0xf4   : > { %v11762_v53 = vadd.f32 %v974_v41, %v731_v61  ;;  %v9720_v19 = vpop.f32.mrf.mxu0  ;;  %9951 = vmatmul.mubr.bf16.gmra.mxu0 %v11590_v5  ;;  %v2875_v61 = vsel %vm2407_vm3, %v2872_v35, %v2874_v36  ;;  %v3259_v35 = vrot.slane %v3257_v11, 3  ;;  %v3274_v11 = vrot.slane %v3272_v10, 2 }
  0xf5   : > { %v9772_v27 = vpop.f32.mrf.mxu1  ;;  %10003 = vmatmul.mubr.bf16.gmra.mxu1 %v11584_v20  ;;  %9954 = vmatprep.mubr.bf16.mxu0 %v11609_v8  ;;  %v3224_v20 = vor.u32 %v3223_v0, %v3220_v63  ;;  %v3236_v8 = vshrl.u32 %v11760_v6, 16  ;;  %v3247_v63 = vrot.slane %v3245_v21, 2  ;;  %v3250_v0 = vrot.slane %v3248_v50, 3 }
  0xf6   : > { %v11768_v14 = vadd.f32 %v9772_v27, %v9720_v19  ;;  %v744_v15 = vpop.f32.mrf.mxu0  ;;  %10006 = vmatprep.mubr.bf16.mxu1 %v11601_v25  ;;  %v2106_v25 = vsel %vm1936_vm2, %v11593_v45, %v2105_v18  ;;  %v11809_v19 = vld [vmem:[%s11016_s28 + $0x40] sm:$0xff]   ;;  %v2877_v18 = vsel %vm2407_vm3, %v2874_v36, %v2876_v39 }
  0xf7   : > { %v987_v5 = vpop.f32.mrf.mxu1  ;;  %v3225_v46 = vsel %vm3208_vm5, %v3216_v34, %v3224_v20  ;;  %v3238_v12 = vrot.slane %v3236_v8, 2  ;;  %v3234_v16 = vsel %vm3208_vm5, %v3224_v20, %v3233_v23  ;;  %v2878_v20 = vrot.slane %v11786_v13, 2 }
  0xf8   : > { %v11775_v51 = vadd.f32 %v987_v5, %v744_v15  ;;  %v9721_v58 = vpop.f32.mrf.mxu0  ;;  %v10756_v15 = vld [vmem:[%s14707_s3 + $0x230] sm:$0xff]   ;;  %v2880_v8 = vrot.slane %v11790_v9, 2 }
  0xf9   : > { %v9773_v31 = vpop.f32.mrf.mxu1  ;;  %v3242_v52 = vor.u32 %v3241_v17, %v3238_v12  ;;  %v2879_v17 = vsel %vm2407_vm3, %v2876_v39, %v2878_v20  ;;  %v10762_v39 = vld [vmem:[%s14707_s3 + $0x220] sm:$0xff]  }
  0xfa   : > { %v11782_v62 = vadd.f32 %v9773_v31, %v9721_v58  ;;  %v747_v59 = vpop.f32.mrf.mxu0  ;;  %v3251_v31 = vor.u32 %v3250_v0, %v3247_v63 }
  0xfb   : > { %v990_v57 = vpop.f32.mrf.mxu1  ;;  %v3243_v28 = vsel %vm3208_vm5, %v3233_v23, %v3242_v52 }
  0xfc   : > { %v11792_v45 = vadd.f32 %v990_v57, %v747_v59  ;;  %v9724_v4 = vpop.f32.mrf.mxu0  ;;  %9955 = vmatmul.mubr.bf16.gmra.mxu0 %v2106_v25  ;;  %v3263_v25 = vshrl.u32 %v11809_v19, 16  ;;  %v3252_v23 = vsel %vm3208_vm5, %v3242_v52, %v3251_v31  ;;  %v2882_v52 = vrot.slane %v11809_v19, 2 }
  0xfd   : > { %v9776_v30 = vpop.f32.mrf.mxu1  ;;  %10007 = vmatmul.mubr.bf16.gmra.mxu1 %v2444_v48  ;;  %10026 = vmatprep.mubr.bf16.mxu0 %v2873_v29  ;;  %v3266_v48 = vshll.u32 %v11809_v19, 16  ;;  %v3260_v29 = vor.u32 %v3259_v35, %v3256_v24 }
  0xfe   : > { %v11795_v26 = vadd.f32 %v9776_v30, %v9724_v4  ;;  %v760_v47 = vpop.f32.mrf.mxu0  ;;  %10078 = vmatprep.mubr.bf16.mxu1 %v3225_v46  ;;  %v2881_v4 = vsel %vm2407_vm3, %v2878_v20, %v2880_v8  ;;  %v11838_v30 = vld [vmem:[%s11016_s28 + $0x50] sm:$0xff]   ;;  %v3265_v21 = vrot.slane %v3263_v25, 2  ;;  %v10765_v20 = vld [vmem:[%s14707_s3 + $0x218] sm:$0xff]  }
  0xff   : > { %v1003_v1 = vpop.f32.mrf.mxu1  ;;  %v3268_v50 = vrot.slane %v3266_v48, 3  ;;  %v3261_v22 = vsel %vm3208_vm5, %v3251_v31, %v3260_v29  ;;  %v3281_v63 = vshrl.u32 %v11838_v30, 16  ;;  %v2883_v48 = vsel %vm2407_vm3, %v2880_v8, %v2882_v52  ;;  %v10768_v8 = vld [vmem:[%s14707_s3 + $0x210] sm:$0xff]  }
 0x100   : > { %v11802_v43 = vadd.f32 %v1003_v1, %v760_v47  ;;  %v9725_v42 = vpop.f32.mrf.mxu0 }
 0x101   : > { %v9777_v2 = vpop.f32.mrf.mxu1 }
 0x102   : > { %v11805_v41 = vadd.f32 %v9777_v2, %v9725_v42  ;;  %v763_v55 = vpop.f32.mrf.mxu0  ;;  %v3277_v42 = vrot.slane %v3275_v54, 3  ;;  %v11848_v2 = vld [vmem:[%s11016_s28 + $0x58] sm:$0xff]  }
 0x103   : > { %v1006_v27 = vpop.f32.mrf.mxu1 }
 0x104   : > { %v11819_v3 = vadd.f32 %v1006_v27, %v763_v55  ;;  %v9728_v5 = vpop.f32.mrf.mxu0  ;;  %10027 = vmatmul.mubr.bf16.vlgmr.msra.gmra.mxu0 %v2875_v61  ;;  %v3278_v35 = vor.u32 %v3277_v42, %v3274_v11  ;;  %v2886_v11 = vrot.slane %v11838_v30, 2 }
 0x105   : > { %v9780_v34 = vpop.f32.mrf.mxu1  ;;  %10115 = vmatpush3.bf16.msra.mxu0 %v11732_v33  ;;  %10079 = vmatmul.mubr.bf16.vlgmr.msra.gmra.mxu1 %v3234_v16  ;;  %v10759_v33 = vld [vmem:[%s14707_s3 + $0x228] sm:$0xff]  }
 0x106   : > { %v11824_v60 = vadd.f32 %v9780_v34, %v9728_v5  ;;  %v776_v58 = vpop.f32.mrf.mxu0  ;;  %10030 = vmatprep.mubr.bf16.mxu0 %v2877_v18  ;;  %10082 = vmatprep.mubr.bf16.mxu1 %v3243_v28  ;;  %v3269_v18 = vor.u32 %v3268_v50, %v3265_v21  ;;  %v2884_v28 = vrot.slane %v11817_v32, 2  ;;  %v3290_v5 = vshrl.u32 %v11848_v2, 16  ;;  %v11875_v50 = vld [vmem:[%s11016_s28 + $0x68] sm:$0xff]  }
 0x107   : > { %v1019_v59 = vpop.f32.mrf.mxu1  ;;  %10116 = vmatprep.subr.bf16.mxu0 %v10756_v15  ;;  %v3293_v34 = vshll.u32 %v11848_v2, 16  ;;  %14746 = vst [vmem:[#allocation3_spill] sm:$0xff] %v11875_v50 }
 0x108   : > { %v11833_v57 = vadd.f32 %v1019_v59, %v776_v58  ;;  %v9729_v46 = vpop.f32.mrf.mxu0  ;;  %v11867_v59 = vld [vmem:[%s11016_s28 + $0x60] sm:$0xff]  }
 0x109   : > { %v9781_v12 = vpop.f32.mrf.mxu1  ;;  %10117 = vmatpush3.bf16.msra.mxu0 %v10756_v15  ;;  %v3284_v15 = vshll.u32 %v11838_v30, 16  ;;  %14745 = vst [vmem:[#allocation4_spill] sm:$0xff] %v11867_v59  ;;  %v3295_v21 = vrot.slane %v3293_v34, 3  ;;  %v3299_v42 = vshrl.u32 %v11867_v59, 16 }
 0x10a   : > { %v11840_v36 = vadd.f32 %v9781_v12, %v9729_v46  ;;  %v779_v47 = vpop.f32.mrf.mxu0  ;;  %10118 = vmatprep.subr.bf16.mxu0 %v10759_v33  ;;  %v3270_v46 = vsel %vm3208_vm5, %v3260_v29, %v3269_v18  ;;  %v2885_v12 = vsel %vm2407_vm3, %v2882_v52, %v2884_v28 }
 0x10b   : > { %v1022_v1 = vpop.f32.mrf.mxu1 }
 0x10c   : > { %v11850_v61 = vadd.f32 %v1022_v1, %v779_v47  ;;  %v9732_v55 = vpop.f32.mrf.mxu0  ;;  %10031 = vmatmul.mubr.bf16.gmra.mxu0 %v2879_v17  ;;  %v3286_v17 = vrot.slane %v3284_v15, 3  ;;  %v3279_v47 = vsel %vm3208_vm5, %v3269_v18, %v3278_v35  ;;  %v3308_v15 = vshrl.u32 %v11875_v50, 16 }
 0x10d   : > { %v9784_v16 = vpop.f32.mrf.mxu1  ;;  %10083 = vmatmul.mubr.bf16.gmra.mxu1 %v3252_v23  ;;  %10034 = vmatprep.mubr.bf16.mxu0 %v2881_v4  ;;  %v3292_v23 = vrot.slane %v3290_v5, 2  ;;  %v10771_v5 = vld [vmem:[%s14707_s3 + $0x208] sm:$0xff]  }
 0x10e   : > { %v11854_v0 = vadd.f32 %v9784_v16, %v9732_v55  ;;  %v792_v27 = vpop.f32.mrf.mxu0  ;;  %10086 = vmatprep.mubr.bf16.mxu1 %v3261_v22  ;;  %10119 = vmatpush3.bf16.msra.mxu0 %v10759_v33  ;;  %v3283_v33 = vrot.slane %v3281_v63, 2  ;;  %v2888_v63 = vrot.slane %v11848_v2, 2 }
 0x10f   : > { %v1035_v24 = vpop.f32.mrf.mxu1  ;;  %10120 = vmatprep.subr.bf16.mxu0 %v10762_v39  ;;  %v3296_v18 = vor.u32 %v3295_v21, %v3292_v23  ;;  %v3310_v21 = vrot.slane %v3308_v15, 2 }
 0x110   : > { %v11863_v58 = vadd.f32 %v1035_v24, %v792_v27  ;;  %v9733_v31 = vpop.f32.mrf.mxu0  ;;  %v3287_v52 = vor.u32 %v3286_v17, %v3283_v33  ;;  %v3311_v24 = vshll.u32 %v11875_v50, 16  ;;  %v2889_v17 = vsel %vm2407_vm3, %v2886_v11, %v2888_v63 }
 0x111   : > { %v9785_v25 = vpop.f32.mrf.mxu1 }
 0x112   : > { %v11869_v10 = vadd.f32 %v9785_v25, %v9733_v31  ;;  %v795_v54 = vpop.f32.mrf.mxu0  ;;  %10121 = vmatpush3.bf16.msra.mxu0 %v10762_v39  ;;  %v3302_v39 = vshll.u32 %v11867_v59, 16  ;;  %v3297_v23 = vsel %vm3208_vm5, %v3287_v52, %v3296_v18 }
 0x113   : > { %v1038_v4 = vpop.f32.mrf.mxu1  ;;  %10122 = vmatprep.subr.bf16.mxu0 %v10765_v20 }
 0x114   : > { %v11880_v1 = vadd.f32 %v1038_v4, %v795_v54  ;;  %v9736_v22 = vpop.f32.mrf.mxu0  ;;  %10035 = vmatmul.mubr.bf16.gmra.mxu0 %v2883_v48  ;;  %v2887_v48 = vsel %vm2407_vm3, %v2884_v28, %v2886_v11  ;;  %v3304_v33 = vrot.slane %v3302_v39, 3  ;;  %v11901_v4 = vld [vmem:[%s11016_s28 + $0x70] sm:$0xff]   ;;  %v10775_v28 = vld [vmem:[%s14707_s3 + $0x200] sm:$0xff]  }
 0x115   : > { %v9788_v29 = vpop.f32.mrf.mxu1  ;;  %10087 = vmatmul.mubr.bf16.gmra.mxu1 %v3270_v46  ;;  %10038 = vmatprep.mubr.bf16.mxu0 %v2885_v12  ;;  %v3288_v12 = vsel %vm3208_vm5, %v3278_v35, %v3287_v52  ;;  %14747 = vst [vmem:[#allocation6_spill] sm:$0xff] %v11901_v4  ;;  %v3317_v15 = vshrl.u32 %v11901_v4, 16 }
 0x116   : > { %v11885_v55 = vadd.f32 %v9788_v29, %v9736_v22  ;;  %v808_v16 = vpop.f32.mrf.mxu0  ;;  %10090 = vmatprep.mubr.bf16.mxu1 %v3279_v47  ;;  %10123 = vmatpush3.bf16.msra.mxu0 %v10765_v20  ;;  %v3301_v20 = vrot.slane %v3299_v42, 2  ;;  %v3313_v22 = vrot.slane %v3311_v24, 3  ;;  %v11905_v29 = vld [vmem:[%s11016_s28 + $0x78] sm:$0xff]   ;;  %v3320_v24 = vshll.u32 %v11901_v4, 16 }
 0x117   : > { %v1051_v27 = vpop.f32.mrf.mxu1  ;;  %10124 = vmatprep.subr.bf16.mxu0 %v10768_v8  ;;  %14748 = vst [vmem:[#allocation5_spill] sm:$0xff] %v11905_v29 }
 0x118   : > { %v11893_v34 = vadd.f32 %v1051_v27, %v808_v16  ;;  %v9737_v31 = vpop.f32.mrf.mxu0  ;;  %v3305_v39 = vor.u32 %v3304_v33, %v3301_v20  ;;  %v2892_v27 = vrot.slane %v11875_v50, 2  ;;  %v11932_v50 = vld [vmem:[%s11016_s28 + $0x88] sm:$0xff]  }
 0x119   : > { %v9789_v25 = vpop.f32.mrf.mxu1  ;;  %14751 = vst [vmem:[#allocation9_spill] sm:$0xff] %v11932_v50 }
 0x11a   : > { %v11896_v54 = vadd.f32 %v9789_v25, %v9737_v31  ;;  %v811_v46 = vpop.f32.mrf.mxu0  ;;  %10125 = vmatpush3.bf16.msra.mxu0 %v10768_v8  ;;  %v2890_v8 = vrot.slane %v11867_v59, 2  ;;  %v3314_v25 = vor.u32 %v3313_v22, %v3310_v21  ;;  %v3319_v22 = vrot.slane %v3317_v15, 2 }
 0x11b   : > { %v1054_v47 = vpop.f32.mrf.mxu1  ;;  %10126 = vmatprep.subr.bf16.mxu0 %v10771_v5 }
 0x11c   : > { %v11910_v42 = vadd.f32 %v1054_v47, %v811_v46  ;;  %v9740_v35 = vpop.f32.mrf.mxu0  ;;  %10039 = vmatmul.mubr.bf16.gmra.mxu0 %v2887_v48  ;;  %v3326_v48 = vshrl.u32 %v11905_v29, 16  ;;  %v3329_v46 = vshll.u32 %v11905_v29, 16  ;;  %v3306_v47 = vsel %vm3208_vm5, %v3296_v18, %v3305_v39 }
 0x11d   : > { %v9792_v11 = vpop.f32.mrf.mxu1  ;;  %10091 = vmatmul.mubr.bf16.gmra.mxu1 %v3288_v12  ;;  %10042 = vmatprep.mubr.bf16.mxu0 %v2889_v17  ;;  %v2891_v17 = vsel %vm2407_vm3, %v2888_v63, %v2890_v8  ;;  %v2893_v21 = vsel %vm2407_vm3, %v2890_v8, %v2892_v27 }
 0x11e   : > { %v11913_v16 = vadd.f32 %v9792_v11, %v9740_v35  ;;  %v824_v52 = vpop.f32.mrf.mxu0  ;;  %10094 = vmatprep.mubr.bf16.mxu1 %v3297_v23  ;;  %10127 = vmatpush3.bf16.msra.mxu0 %v10771_v5  ;;  %v11925_v23 = vld [vmem:[%s11016_s28 + $0x80] sm:$0xff]   ;;  %v3322_v11 = vrot.slane %v3320_v24, 3 }
 0x11f   : > { %v1067_v31 = vpop.f32.mrf.mxu1  ;;  %10128 = vmatprep.subr.bf16.mxu0 %v10775_v28  ;;  %14750 = vst [vmem:[#allocation7_spill] sm:$0xff] %v11925_v23  ;;  %v3335_v8 = vshrl.u32 %v11925_v23, 16 }
 0x120   : > { %v11920_v20 = vadd.f32 %v1067_v31, %v824_v52  ;;  %v9741_v33 = vpop.f32.mrf.mxu0  ;;  %v3315_v52 = vsel %vm3208_vm5, %v3305_v39, %v3314_v25  ;;  %v3328_v31 = vrot.slane %v3326_v48, 2  ;;  %v3323_v24 = vor.u32 %v3322_v11, %v3319_v22 }
 0x121   : > { %v9793_v12 = vpop.f32.mrf.mxu1 }
 0x122   : > { %14749 = vst [vmem:[#allocation8_spill] sm:$0xff] %v11920_v20  ;;  %v11927_v35 = vadd.f32 %v9793_v12, %v9741_v33  ;;  %v827_v5 = vpop.f32.mrf.mxu0  ;;  %10129 = vmatpush3.bf16.msra.mxu0 %v10775_v28  ;;  %v3331_v20 = vrot.slane %v3329_v46, 3  ;;  %v2894_v33 = vrot.slane %v11901_v4, 2  ;;  %v3338_v28 = vshll.u32 %v11925_v23, 16 }
 0x123   : > { %v1070_v37 = vpop.f32.mrf.mxu1  ;;  %v3344_v12 = vshrl.u32 %v11932_v50, 16  ;;  %v3324_v11 = vsel %vm3208_vm5, %v3314_v25, %v3323_v24  ;;  %v2898_v25 = vrot.slane %v11925_v23, 2 }
 0x124   : > { %v11934_v63 = vadd.f32 %v1070_v37, %v827_v5  ;;  %v9744_v18 = vpop.f32.mrf.mxu0  ;;  %10043 = vmatmul.mubr.bf16.gmra.mxu0 %v2891_v17  ;;  %v2896_v37 = vrot.slane %v11905_v29, 2  ;;  %v3332_v46 = vor.u32 %v3331_v20, %v3328_v31  ;;  %v3347_v17 = vshll.u32 %v11932_v50, 16  ;;  %v11952_v31 = vld [vmem:[%s11016_s28 + $0x90] sm:$0xff]  }
 0x125   : > { %v9796_v59 = vpop.f32.mrf.mxu1  ;;  %10095 = vmatmul.mubr.bf16.gmra.mxu1 %v3306_v47  ;;  %10046 = vmatprep.mubr.bf16.mxu0 %v2893_v21  ;;  %v3340_v4 = vrot.slane %v3338_v28, 3 }
 0x126   : > { %14752 = vst [vmem:[#allocation10_spill] sm:$0xff] %v11934_v63  ;;  %v11939_v15 = vadd.f32 %v9796_v59, %v9744_v18  ;;  %v840_v39 = vpop.f32.mrf.mxu0  ;;  %10098 = vmatprep.mubr.bf16.mxu1 %v3315_v52  ;;  %v2895_v59 = vsel %vm2407_vm3, %v2892_v27, %v2894_v33  ;;  %v3337_v18 = vrot.slane %v3335_v8, 2  ;;  %v2897_v20 = vsel %vm2407_vm3, %v2894_v33, %v2896_v37 }
 0x127   : > { %v1083_v48 = vpop.f32.mrf.mxu1 }
 0x128   : > { %14753 = vst [vmem:[#allocation11_spill] sm:$0xff] %v11939_v15  ;;  %v11944_v47 = vadd.f32 %v1083_v48, %v840_v39  ;;  %v9745_v5 = vpop.f32.mrf.mxu0  ;;  %v3333_v15 = vsel %vm3208_vm5, %v3323_v24, %v3332_v46  ;;  %v3346_v39 = vrot.slane %v3344_v12, 2  ;;  %v3349_v48 = vrot.slane %v3347_v17, 3 }
 0x129   : > { %v9797_v21 = vpop.f32.mrf.mxu1  ;;  %v3341_v28 = vor.u32 %v3340_v4, %v3337_v18  ;;  %v2900_v24 = vrot.slane %v11932_v50, 2  ;;  %v3353_v12 = vshrl.u32 %v11952_v31, 16 }
 0x12a   : > { %14754 = vst [vmem:[#allocation12_spill] sm:$0xff] %v11944_v47  ;;  %v11947_v52 = vadd.f32 %v9797_v21, %v9745_v5  ;;  %v843_v22 = vpop.f32.mrf.mxu0  ;;  %v11956_v47 = vld [vmem:[%s11016_s28 + $0x98] sm:$0xff]   ;;  %v3350_v21 = vor.u32 %v3349_v48, %v3346_v39  ;;  %v11978_v48 = vld [vmem:[%s11016_s28 + $0xa0] ss:$0 sps:$4 sm:$0x77]  }
 0x12b   : > { %v1086_v29 = vpop.f32.mrf.mxu1  ;;  %14755 = vst [vmem:[#allocation13_spill] sm:$0xff] %v11956_v47  ;;  %v2901_v50 = vsel %vm2407_vm3, %v2898_v25, %v2900_v24  ;;  %v3355_v23 = vrot.slane %v3353_v12, 2  ;;  %14760 = vst [vmem:[#allocation18_spill] sm:$0xff] %v11978_v48 }
 0x12c   : > { %v11958_v63 = vadd.f32 %v1086_v29, %v843_v22  ;;  %v9748_v27 = vpop.f32.mrf.mxu0  ;;  %10047 = vmatmul.mubr.bf16.gmra.mxu0 %v2895_v59  ;;  %v3356_v29 = vshll.u32 %v11952_v31, 16  ;;  %v3362_v59 = vshrl.u32 %v11956_v47, 16  ;;  %v3365_v22 = vshll.u32 %v11956_v47, 16 }
 0x12d   : > { %v9800_v8 = vpop.f32.mrf.mxu1  ;;  %10099 = vmatmul.mubr.bf16.gmra.mxu1 %v3324_v11  ;;  %10050 = vmatprep.mubr.bf16.mxu0 %v2897_v20  ;;  %v2899_v20 = vsel %vm2407_vm3, %v2896_v37, %v2898_v25 }
 0x12e   : > { %14756 = vst [vmem:[#allocation14_spill] sm:$0xff] %v11958_v63  ;;  %v11961_v33 = vadd.f32 %v9800_v8, %v9748_v27  ;;  %v856_v5 = vpop.f32.mrf.mxu0  ;;  %10102 = vmatprep.mubr.bf16.mxu1 %v3333_v15  ;;  %v3342_v15 = vsel %vm3208_vm5, %v3332_v46, %v3341_v28  ;;  %v3358_v39 = vrot.slane %v3356_v29, 3  ;;  %v2904_v29 = vrot.slane %v11956_v47, 2 }
 0x12f   : > { %v1099_v17 = vpop.f32.mrf.mxu1 }
 0x130   : > { %14757 = vst [vmem:[#allocation15_spill] sm:$0xff] %v11961_v33  ;;  %v11968_v11 = vadd.f32 %v1099_v17, %v856_v5  ;;  %v9749_v4 = vpop.f32.mrf.mxu0  ;;  %v3351_v5 = vsel %vm3208_vm5, %v3341_v28, %v3350_v21  ;;  %v3364_v17 = vrot.slane %v3362_v59, 2  ;;  %v3359_v12 = vor.u32 %v3358_v39, %v3355_v23  ;;  %v10776_v39 = vld [vmem:[%s11016_s28 + $0xa0] ss:$0 sps:$4 sm:$0x33]  }
 0x131   : > { %v9801_v18 = vpop.f32.mrf.mxu1  ;;  %v3374_v28 = vshll.u32 %v11978_v48, 16 }
 0x132   : > { %14758 = vst [vmem:[#allocation16_spill] sm:$0xff] %v11968_v11  ;;  %v11972_v27 = vadd.f32 %v9801_v18, %v9749_v4  ;;  %v11974_v8 = vpop.f32.mrf.mxu0  ;;  %v3367_v11 = vrot.slane %v3365_v22, 3  ;;  %v2902_v4 = vrot.slane %v11952_v31, 2  ;;  %v3371_v18 = vshrl.u32 %v11978_v48, 16 }
 0x133   : > { %14759 = vst [vmem:[#allocation17_spill] sm:$0xff] %v11974_v8  ;;  %v11980_v33 = vpop.f32.mrf.mxu1  ;;  %v3360_v8 = vsel %vm3208_vm5, %v3350_v21, %v3359_v12  ;;  %v2906_v21 = vrot.slane %v10776_v39, 2 }
 0x134   : > { %14761 = vst [vmem:[#allocation19_spill] sm:$0xff] %v11980_v33  ;;  %v9820_v63 = vpop.f32.mrf.mxu0  ;;  %10051 = vmatmul.mubr.bf16.gmra.mxu0 %v2899_v20  ;;  %v2903_v23 = vsel %vm2407_vm3, %v2900_v24, %v2902_v4  ;;  %v2905_v48 = vsel %vm2407_vm3, %v2902_v4, %v2904_v29  ;;  %v3373_v47 = vrot.slane %v3371_v18, 2 }
 0x135   : > { %v1418_v37 = vadd.f32 %v9820_v63, %v11750_v40  ;;  %v9872_v46 = vpop.f32.mrf.mxu1  ;;  %10103 = vmatmul.mubr.bf16.gmra.mxu1 %v3342_v15  ;;  %10054 = vmatprep.mubr.bf16.mxu0 %v2901_v50  ;;  %v3368_v63 = vor.u32 %v3367_v11, %v3364_v17 }
 0x136   : > { %v1273_v25 = vpop.f32.mrf.mxu0  ;;  %10106 = vmatprep.mubr.bf16.mxu1 %v3351_v5 }
 0x137   : > { %v1416_v59 = vadd.f32 %v1273_v25, %v11755_v7  ;;  %v11989_v22 = vadd.f32 %v9872_v46, %v1418_v37  ;;  %v1736_v40 = vpop.f32.mrf.mxu1  ;;  %v3376_v7 = vrot.slane %v3374_v28, 3 }
 0x138   : > { %v9821_v20 = vpop.f32.mrf.mxu0 }
 0x139   : > { %v1419_v50 = vadd.f32 %v9821_v20, %v11757_v49  ;;  %v11992_v15 = vadd.f32 %v1736_v40, %v1416_v59  ;;  %v9873_v33 = vpop.f32.mrf.mxu1  ;;  %v3369_v49 = vsel %vm3208_vm5, %v3359_v12, %v3368_v63  ;;  %v3377_v18 = vor.u32 %v3376_v7, %v3373_v47 }
 0x13a   : > { %v1276_v5 = vpop.f32.mrf.mxu0 }
 0x13b   : > { %v11999_v37 = vadd.f32 %v1276_v5, %v11762_v53  ;;  %v12001_v11 = vadd.f32 %v9873_v33, %v1419_v50  ;;  %v12003_v17 = vpop.f32.mrf.mxu1 }
 0x13c   : > { %v9824_v46 = vpop.f32.mrf.mxu0  ;;  %10055 = vmatmul.mubr.bf16.gmra.mxu0 %v2903_v23 }
 0x13d   : > { %v1422_v24 = vadd.f32 %v9824_v46, %v11768_v14  ;;  %v9876_v25 = vpop.f32.mrf.mxu1  ;;  %10107 = vmatmul.mubr.bf16.gmra.mxu1 %v3360_v8  ;;  %10058 = vmatprep.mubr.bf16.mxu0 %v2905_v48  ;;  %v2907_v14 = vsel %vm2407_vm3, %v2904_v29, %v2906_v21  ;;  %v3378_v8 = vsel %vm3208_vm5, %v3368_v63, %v3377_v18  ;;  %v3685_v29 = vrot.slane %v11760_v6, 3 }
 0x13e   : > { %v1289_v4 = vpop.f32.mrf.mxu0  ;;  %10110 = vmatprep.mubr.bf16.mxu1 %v3369_v49 }
 0x13f   : > { %v1420_v53 = vadd.f32 %v1289_v4, %v11775_v51  ;;  %v12008_v28 = vadd.f32 %v9876_v25, %v1422_v24  ;;  %v1752_v33 = vpop.f32.mrf.mxu1 }
 0x140   : > { %v9825_v59 = vpop.f32.mrf.mxu0 }
 0x141   : > { %v1423_v40 = vadd.f32 %v9825_v59, %v11782_v62  ;;  %v12011_v12 = vadd.f32 %v1752_v33, %v1420_v53  ;;  %v9877_v20 = vpop.f32.mrf.mxu1  ;;  %v3687_v33 = vrot.slane %v11786_v13, 3 }
 0x142   : > { %v1292_v50 = vpop.f32.mrf.mxu0 }
 0x143   : > { %v12016_v48 = vadd.f32 %v1292_v50, %v11792_v45  ;;  %v12018_v47 = vadd.f32 %v9877_v20, %v1423_v40  ;;  %v12020_v51 = vpop.f32.mrf.mxu1 }
 0x144   : > { %v9828_v23 = vpop.f32.mrf.mxu0  ;;  %10059 = vmatmul.mubr.bf16.gmra.mxu0 %v2907_v14 }
 0x145   : > { %v1426_v39 = vadd.f32 %v9828_v23, %v11795_v26  ;;  %v9880_v62 = vpop.f32.mrf.mxu1  ;;  %10111 = vmatmul.mubr.bf16.gmra.mxu1 %v3378_v8  ;;  %10130 = vmatprep.mubr.bf16.mxu0 %v11703_v44  ;;  %v14762_v26 = vrot.slane %v11690_v38, 3  ;;  %v3689_v38 = vrot.slane %v11790_v9, 3 }
 0x146   : > { %v1305_v5 = vpop.f32.mrf.mxu0 }
 0x147   : > { %v1424_v63 = vadd.f32 %v1305_v5, %v11802_v43  ;;  %v12026_v7 = vadd.f32 %v9880_v62, %v1426_v39  ;;  %v1768_v45 = vpop.f32.mrf.mxu1  ;;  %v3686_v4 = vsel %vm3679_vm4, %v14762_v26, %v3685_v29  ;;  %v3690_v39 = vsel %vm3679_vm4, %v3687_v33, %v3689_v38 }
 0x148   : > { %v9829_v49 = vpop.f32.mrf.mxu0 }
 0x149   : > { %v1427_v46 = vadd.f32 %v9829_v49, %v11805_v41  ;;  %v12029_v24 = vadd.f32 %v1768_v45, %v1424_v63  ;;  %v9881_v25 = vpop.f32.mrf.mxu1  ;;  %v3691_v63 = vrot.slane %v11809_v19, 3 }
 0x14a   : > { %v1308_v21 = vpop.f32.mrf.mxu0 }
 0x14b   : > { %v12035_v44 = vadd.f32 %v1308_v21, %v11819_v3  ;;  %v12037_v6 = vadd.f32 %v9881_v25, %v1427_v46  ;;  %v12039_v43 = vpop.f32.mrf.mxu1 }
 0x14c   : > { %v9832_v18 = vpop.f32.mrf.mxu0  ;;  %10131 = vmatmul.mubr.bf16.vlgmr.msra.gmra.mxu0 %v11709_v56 }
 0x14d   : > { %v1430_v41 = vadd.f32 %v9832_v18, %v11824_v60  ;;  %v9884_v53 = vpop.f32.mrf.mxu1  ;;  %10134 = vmatprep.mubr.bf16.mxu0 %v3686_v4  ;;  %v3688_v60 = vsel %vm3679_vm4, %v3685_v29, %v3687_v33  ;;  %v3693_v29 = vrot.slane %v11817_v32, 3 }
 0x14e   : > { %v1321_v59 = vpop.f32.mrf.mxu0 }
 0x14f   : > { %v1428_v40 = vadd.f32 %v1321_v59, %v11833_v57  ;;  %v12046_v3 = vadd.f32 %v9884_v53, %v1430_v41  ;;  %v1784_v20 = vpop.f32.mrf.mxu1  ;;  %v3694_v41 = vsel %vm3679_vm4, %v3691_v63, %v3693_v29  ;;  %v3695_v59 = vrot.slane %v11838_v30, 3 }
 0x150   : > { %v9833_v14 = vpop.f32.mrf.mxu0 }
 0x151   : > { %v1431_v50 = vadd.f32 %v9833_v14, %v11840_v36  ;;  %v12049_v8 = vadd.f32 %v1784_v20, %v1428_v40  ;;  %v9885_v56 = vpop.f32.mrf.mxu1 }
 0x152   : > { %v1324_v23 = vpop.f32.mrf.mxu0 }
 0x153   : > { %v12054_v13 = vadd.f32 %v1324_v23, %v11850_v61  ;;  %v12056_v9 = vadd.f32 %v9885_v56, %v1431_v50  ;;  %v12058_v57 = vpop.f32.mrf.mxu1 }
 0x154   : > { %v9836_v62 = vpop.f32.mrf.mxu0  ;;  %10135 = vmatmul.mubr.bf16.gmra.mxu0 %v3688_v60 }
 0x155   : > { %v1434_v5 = vadd.f32 %v9836_v62, %v11854_v0  ;;  %v9888_v36 = vpop.f32.mrf.mxu1  ;;  %10138 = vmatprep.mubr.bf16.mxu0 %v3690_v39  ;;  %v3692_v0 = vsel %vm3679_vm4, %v3689_v38, %v3691_v63  ;;  %v3697_v38 = vrot.slane %v11848_v2, 3  ;;  %v14763_v63 = vld [vmem:[#allocation4_spill] sm:$0xff] }
 0x156   : > { %v1337_v45 = vpop.f32.mrf.mxu0 }
 0x157   : > { %v1432_v49 = vadd.f32 %v1337_v45, %v11863_v58  ;;  %v12064_v46 = vadd.f32 %v9888_v36, %v1434_v5  ;;  %v1800_v61 = vpop.f32.mrf.mxu1  ;;  %v3698_v62 = vsel %vm3679_vm4, %v3695_v59, %v3697_v38  ;;  %v3699_v45 = vrot.slane %v14763_v63, 3 }
 0x158   : > { %v9837_v25 = vpop.f32.mrf.mxu0 }
 0x159   : > { %v1435_v21 = vadd.f32 %v9837_v25, %v11869_v10  ;;  %v12067_v26 = vadd.f32 %v1800_v61, %v1432_v49  ;;  %v9889_v4 = vpop.f32.mrf.mxu1  ;;  %v14765_v25 = vld [vmem:[#allocation8_spill] sm:$0xff] }
 0x15a   : > { %v1340_v18 = vpop.f32.mrf.mxu0 }
 0x15b   : > { %v12072_v19 = vadd.f32 %v1340_v18, %v11880_v1  ;;  %v12074_v32 = vadd.f32 %v9889_v4, %v1435_v21  ;;  %v12076_v58 = vpop.f32.mrf.mxu1 }
 0x15c   : > { %v9840_v53 = vpop.f32.mrf.mxu0  ;;  %10139 = vmatmul.mubr.bf16.gmra.mxu0 %v3692_v0 }
 0x15d   : > { %v1438_v33 = vadd.f32 %v9840_v53, %v11885_v55  ;;  %v9892_v10 = vpop.f32.mrf.mxu1  ;;  %10142 = vmatprep.mubr.bf16.mxu0 %v3694_v41  ;;  %v3696_v55 = vsel %vm3679_vm4, %v3693_v29, %v3695_v59  ;;  %v14764_v29 = vld [vmem:[#allocation3_spill] sm:$0xff]  ;;  %v14766_v59 = vld [vmem:[#allocation10_spill] sm:$0xff] }
 0x15e   : > { %v1353_v40 = vpop.f32.mrf.mxu0  ;;  %v3701_v61 = vrot.slane %v14764_v29, 3 }
 0x15f   : > { %v1436_v20 = vadd.f32 %v1353_v40, %v11893_v34  ;;  %v12082_v14 = vadd.f32 %v9892_v10, %v1438_v33  ;;  %v1816_v1 = vpop.f32.mrf.mxu1 }
 0x160   : > { %v9841_v50 = vpop.f32.mrf.mxu0  ;;  %v3702_v10 = vsel %vm3679_vm4, %v3699_v45, %v3701_v61 }
 0x161   : > { %v1439_v56 = vadd.f32 %v9841_v50, %v11896_v54  ;;  %v12085_v60 = vadd.f32 %v1816_v1, %v1436_v20  ;;  %v9893_v23 = vpop.f32.mrf.mxu1 }
 0x162   : > { %v1356_v39 = vpop.f32.mrf.mxu0 }
 0x163   : > { %v12090_v30 = vadd.f32 %v1356_v39, %v11910_v42  ;;  %v12092_v2 = vadd.f32 %v9893_v23, %v1439_v56  ;;  %v12094_v34 = vpop.f32.mrf.mxu1  ;;  %v14767_v56 = vld [vmem:[#allocation11_spill] sm:$0xff] }
 0x164   : > { %v9844_v5 = vpop.f32.mrf.mxu0  ;;  %10143 = vmatmul.mubr.bf16.gmra.mxu0 %v3696_v55  ;;  %v14768_v55 = vld [vmem:[#allocation6_spill] sm:$0xff] }
 0x165   : > { %v1442_v36 = vadd.f32 %v9844_v5, %v11913_v16  ;;  %v9896_v54 = vpop.f32.mrf.mxu1  ;;  %10146 = vmatprep.mubr.bf16.mxu0 %v3698_v62  ;;  %v3700_v16 = vsel %vm3679_vm4, %v3697_v38, %v3699_v45  ;;  %v3703_v39 = vrot.slane %v14768_v55, 3  ;;  %v10779_v38 = vld [vmem:[%s14709_s5 + $0x78] sm:$0xff]  }
 0x166   : > { %v1369_v49 = vpop.f32.mrf.mxu0  ;;  %v14769_v5 = vld [vmem:[#allocation5_spill] sm:$0xff]  ;;  %10166 = vmatprep.subr.bf16.mxu1 %v10779_v38 }
 0x167   : > { %v1440_v21 = vadd.f32 %v1369_v49, %v14765_v25  ;;  %v12100_v4 = vadd.f32 %v9896_v54, %v1442_v36  ;;  %v1832_v42 = vpop.f32.mrf.mxu1  ;;  %v3705_v36 = vrot.slane %v14769_v5, 3  ;;  %v14770_v54 = vld [vmem:[#allocation12_spill] sm:$0xff]  ;;  %10167 = vmatpush3.bf16.msra.mxu1 %v10779_v38 }
 0x168   : > { %v9845_v0 = vpop.f32.mrf.mxu0  ;;  %v14775_v5 = vld [vmem:[#allocation16_spill] sm:$0xff] }
 0x169   : > { %v1443_v18 = vadd.f32 %v9845_v0, %v11927_v35  ;;  %v12103_v41 = vadd.f32 %v1832_v42, %v1440_v21  ;;  %v9897_v53 = vpop.f32.mrf.mxu1  ;;  %v3704_v0 = vsel %vm3679_vm4, %v3701_v61, %v3703_v39  ;;  %v14774_v61 = vld [vmem:[#allocation9_spill] sm:$0xff] }
 0x16a   : > { %v1372_v33 = vpop.f32.mrf.mxu0 }
 0x16b   : > { %v12108_v40 = vadd.f32 %v1372_v33, %v14766_v59  ;;  %v12110_v20 = vadd.f32 %v9897_v53, %v1443_v18  ;;  %v12112_v1 = vpop.f32.mrf.mxu1  ;;  %v3706_v53 = vsel %vm3679_vm4, %v3703_v39, %v3705_v36 }
 0x16c   : > { %v9848_v50 = vpop.f32.mrf.mxu0  ;;  %10147 = vmatmul.mubr.bf16.gmra.mxu0 %v3700_v16  ;;  %v14771_v16 = vld [vmem:[#allocation14_spill] sm:$0xff] }
 0x16d   : > { %v1446_v23 = vadd.f32 %v9848_v50, %v14767_v56  ;;  %v9900_v35 = vpop.f32.mrf.mxu1  ;;  %10150 = vmatprep.mubr.bf16.mxu0 %v3702_v10  ;;  %v14772_v56 = vld [vmem:[#allocation15_spill] sm:$0xff] }
 0x16e   : > { %v1385_v62 = vpop.f32.mrf.mxu0 }
 0x16f   : > { %v1444_v63 = vadd.f32 %v1385_v62, %v14770_v54  ;;  %v12121_v45 = vadd.f32 %v9900_v35, %v1446_v23  ;;  %v1848_v49 = vpop.f32.mrf.mxu1  ;;  %v14773_v35 = vld [vmem:[#allocation7_spill] sm:$0xff]  ;;  %v3709_v62 = vrot.slane %v14774_v61, 3 }
 0x170   : > { %v9849_v29 = vpop.f32.mrf.mxu0  ;;  %v3707_v55 = vrot.slane %v14773_v35, 3  ;;  %v3711_v35 = vrot.slane %v11952_v31, 3 }
 0x171   : > { %v1447_v25 = vadd.f32 %v9849_v29, %v11947_v52  ;;  %v12124_v21 = vadd.f32 %v1848_v49, %v1444_v63  ;;  %v9901_v42 = vpop.f32.mrf.mxu1  ;;  %v10780_v49 = vld [vmem:[%s14709_s5 + $0x70] sm:$0xff]  }
 0x172   : > { %v1388_v18 = vpop.f32.mrf.mxu0  ;;  %10168 = vmatprep.subr.bf16.mxu1 %v10780_v49  ;;  %v3712_v31 = vsel %vm3679_vm4, %v3709_v62, %v3711_v35 }
 0x173   : > { %v12129_v33 = vadd.f32 %v1388_v18, %v14771_v16  ;;  %v12131_v10 = vadd.f32 %v9901_v42, %v1447_v25  ;;  %v12133_v59 = vpop.f32.mrf.mxu1  ;;  %v3708_v18 = vsel %vm3679_vm4, %v3705_v36, %v3707_v55  ;;  %v3710_v16 = vsel %vm3679_vm4, %v3707_v55, %v3709_v62  ;;  %10169 = vmatpush3.bf16.msra.mxu1 %v10780_v49  ;;  %v14776_v36 = vld [vmem:[#allocation13_spill] sm:$0xff] }
 0x174   : > { %v9852_v50 = vpop.f32.mrf.mxu0  ;;  %10151 = vmatmul.mubr.bf16.gmra.mxu0 %v3704_v0  ;;  %v3713_v61 = vrot.slane %v14776_v36, 3 }
 0x175   : > { %v1450_v23 = vadd.f32 %v9852_v50, %v14772_v56  ;;  %v9904_v52 = vpop.f32.mrf.mxu1  ;;  %10154 = vmatprep.mubr.bf16.mxu0 %v3706_v53 }
 0x176   : > { %v1401_v38 = vpop.f32.mrf.mxu0 }
 0x177   : > { %v1448_v39 = vadd.f32 %v1401_v38, %v14775_v5  ;;  %v12139_v54 = vadd.f32 %v9904_v52, %v1450_v23  ;;  %v1864_v63 = vpop.f32.mrf.mxu1 }
 0x178   : > { %v9853_v29 = vpop.f32.mrf.mxu0 }
 0x179   : > { %v1451_v25 = vadd.f32 %v9853_v29, %v11972_v27  ;;  %v12145_v42 = vadd.f32 %v1864_v63, %v1448_v39  ;;  %v9905_v0 = vpop.f32.mrf.mxu1  ;;  %v10781_v63 = vld [vmem:[%s14709_s5 + $0x68] sm:$0xff]  }
 0x17a   : > { %v12148_v53 = vpop.f32.mrf.mxu0  ;;  %10170 = vmatprep.subr.bf16.mxu1 %v10781_v63 }
 0x17b   : > { %v12151_v50 = vadd.f32 %v9905_v0, %v1451_v25  ;;  %v12153_v56 = vpop.f32.mrf.mxu1  ;;  %10171 = vmatpush3.bf16.msra.mxu1 %v10781_v63 }
 0x17c   : > { %v9924_v23 = vpop.f32.mrf.mxu0  ;;  %10155 = vmatmul.mubr.bf16.gmra.mxu0 %v3708_v18 }
 0x17d   : > { %v2352_v52 = vadd.f32 %v9924_v23, %v11989_v22  ;;  %v9976_v27 = vpop.f32.mrf.mxu1  ;;  %10158 = vmatprep.mubr.bf16.mxu0 %v3710_v16 }
 0x17e   : > { %v2207_v38 = vpop.f32.mrf.mxu0 }
 0x17f   : > { %v2350_v5 = vadd.f32 %v2207_v38, %v11992_v15  ;;  %v12159_v39 = vadd.f32 %v9976_v27, %v2352_v52  ;;  %v2545_v55 = vpop.f32.mrf.mxu1  ;;  %v3714_v15 = vsel %vm3679_vm4, %v3711_v35, %v3713_v61  ;;  %v14778_v27 = vld [vmem:[#allocation18_spill] sm:$0xff] }
 0x180   : > { %v9925_v49 = vpop.f32.mrf.mxu0  ;;  %v3715_v38 = vrot.slane %v14778_v27, 3 }
 0x181   : > { %v2353_v29 = vadd.f32 %v9925_v49, %v12001_v11  ;;  %v12165_v22 = vadd.f32 %v2545_v55, %v2350_v5  ;;  %v9977_v25 = vpop.f32.mrf.mxu1 }
 0x182   : > { %v12168_v0 = vpop.f32.mrf.mxu0 }
 0x183   : > { %v12171_v18 = vadd.f32 %v9977_v25, %v2353_v29  ;;  %v12173_v16 = vpop.f32.mrf.mxu1  ;;  %v3716_v25 = vsel %vm3679_vm4, %v3713_v61, %v3715_v38 }
 0x184   : > { %14777 = vst [vmem:[#allocation4_spill] sm:$0xff] %v12173_v16  ;;  %v9928_v23 = vpop.f32.mrf.mxu0  ;;  %10159 = vmatmul.mubr.bf16.gmra.mxu0 %v3712_v31 }
 0x185   : > { %v2356_v52 = vadd.f32 %v9928_v23, %v12008_v28  ;;  %v9980_v11 = vpop.f32.mrf.mxu1  ;;  %10162 = vmatprep.mubr.bf16.mxu0 %v3714_v15  ;;  %v10782_v28 = vld [vmem:[%s14709_s5 + $0x60] sm:$0xff]  }
 0x186   : > { %v2223_v36 = vpop.f32.mrf.mxu0  ;;  %10172 = vmatprep.subr.bf16.mxu1 %v10782_v28 }
 0x187   : > { %v2354_v62 = vadd.f32 %v2223_v36, %v12011_v12  ;;  %v12178_v5 = vadd.f32 %v9980_v11, %v2356_v52  ;;  %v2561_v55 = vpop.f32.mrf.mxu1  ;;  %10173 = vmatpush3.bf16.msra.mxu1 %v10782_v28 }
 0x188   : > { %v9929_v35 = vpop.f32.mrf.mxu0 }
 0x189   : > { %v2357_v63 = vadd.f32 %v9929_v35, %v12018_v47  ;;  %v12181_v49 = vadd.f32 %v2561_v55, %v2354_v62  ;;  %v9981_v29 = vpop.f32.mrf.mxu1  ;;  %v10783_v47 = vld [vmem:[%s14709_s5 + $0x38] sm:$0xff]   ;;  %v10785_v55 = vld [vmem:[%s14709_s5 + $0x30] sm:$0xff]  }
 0x18a   : > { %v12187_v31 = vpop.f32.mrf.mxu0  ;;  %10218 = vmatprep.subr.bf16.mxu0 %v10783_v47 }
 0x18b   : > { %v12189_v15 = vadd.f32 %v9981_v29, %v2357_v63  ;;  %v12191_v12 = vpop.f32.mrf.mxu1  ;;  %10219 = vmatpush3.bf16.msra.mxu0 %v10783_v47 }
 0x18c   : > { %14779 = vst [vmem:[#allocation3_spill] sm:$0xff] %v12191_v12  ;;  %v9932_v23 = vpop.f32.mrf.mxu0  ;;  %10163 = vmatmul.mubr.bf16.gmra.mxu0 %v3716_v25  ;;  %10220 = vmatprep.subr.bf16.mxu0 %v10785_v55 }
 0x18d   : > { %v2360_v61 = vadd.f32 %v9932_v23, %v12026_v7  ;;  %v9984_v52 = vpop.f32.mrf.mxu1 }
 0x18e   : > { %v2239_v11 = vpop.f32.mrf.mxu0 }
 0x18f   : > { %v2358_v27 = vadd.f32 %v2239_v11, %v12029_v24  ;;  %v12198_v38 = vadd.f32 %v9984_v52, %v2360_v61  ;;  %v2577_v36 = vpop.f32.mrf.mxu1  ;;  %10221 = vmatpush3.bf16.msra.mxu0 %v10785_v55  ;;  %v14781_v52 = vmov 0  ;;  %v305_v11 = vld [vmem:[#allocation2 + $0x8] sm:$0x3] }
 0x190   : > { %v9933_v62 = vpop.f32.mrf.mxu0  ;;  %v14782_v52 = vsel %vm12217_vm8, 4294967295, %v14781_v52 }
 0x191   : > { %v2361_v35 = vadd.f32 %v9933_v62, %v12037_v6  ;;  %v12204_v63 = vadd.f32 %v2577_v36, %v2358_v27  ;;  %v9985_v29 = vpop.f32.mrf.mxu1  ;;  %v10786_v6 = vld [vmem:[%s14709_s5 + $0x28] sm:$0xff]   ;;  %14783 = vst [vmem:[#allocation10_spill] sm:$0xff] %v14782_v52 }
 0x192   : > { %v12206_v7 = vpop.f32.mrf.mxu0  ;;  %10222 = vmatprep.subr.bf16.mxu0 %v10786_v6 }
 0x193   : > { %v12208_v25 = vadd.f32 %v9985_v29, %v2361_v35  ;;  %v12210_v24 = vpop.f32.mrf.mxu1  ;;  %10223 = vmatpush3.bf16.msra.mxu0 %v10786_v6  ;;  %v14785_v6 = vmov 0 }
 0x194   : > { %14780 = vst [vmem:[#allocation8_spill] sm:$0xff] %v12210_v24  ;;  %v9936_v28 = vpop.f32.mrf.mxu0  ;;  %v14786_v6 = vsel %vm12236_vm11, 4294967295, %v14785_v6 }
 0x195   : > { %v2364_v23 = vadd.f32 %v9936_v28, %v12046_v3  ;;  %v9988_v47 = vpop.f32.mrf.mxu1  ;;  %v306_v3 = vsel %vm12217_vm8, 0, %v305_v11  ;;  %v311_v11 = vld [vmem:[#allocation2 + $0x98] sm:$0xe]  ;;  %14787 = vst [vmem:[#allocation6_spill] sm:$0xff] %v14786_v6 }
 0x196   : > { %v2255_v61 = vpop.f32.mrf.mxu0  ;;  %307 = vst [vmem:[#allocation2 + $0x8] sm:$0x3] %v306_v3 }
 0x197   : > { %v2362_v27 = vadd.f32 %v2255_v61, %v12049_v8  ;;  %v12222_v36 = vadd.f32 %v9988_v47, %v2364_v23  ;;  %v2593_v62 = vpop.f32.mrf.mxu1 }
 0x198   : > { %v9937_v55 = vpop.f32.mrf.mxu0 }
 0x199   : > { %v2365_v35 = vadd.f32 %v9937_v55, %v12056_v9  ;;  %v12227_v29 = vadd.f32 %v2593_v62, %v2362_v27  ;;  %v9989_v28 = vpop.f32.mrf.mxu1  ;;  %v10788_v9 = vld [vmem:[%s14709_s5 + $0x20] sm:$0xff]  }
 0x19a   : > { %v12229_v24 = vpop.f32.mrf.mxu0  ;;  %10224 = vmatprep.subr.bf16.mxu0 %v10788_v9 }
 0x19b   : > { %v12231_v12 = vadd.f32 %v9989_v28, %v2365_v35  ;;  %v12233_v8 = vpop.f32.mrf.mxu1  ;;  %10225 = vmatpush3.bf16.msra.mxu0 %v10788_v9 }
 0x19c   : > { %14784 = vst [vmem:[#allocation11_spill] sm:$0xff] %v12233_v8  ;;  %v9940_v23 = vpop.f32.mrf.mxu0 }
 0x19d   : > { %v2368_v47 = vadd.f32 %v9940_v23, %v12064_v46  ;;  %v9992_v61 = vpop.f32.mrf.mxu1  ;;  %v312_v46 = vsel %vm12236_vm11, 0, %v311_v11 }
 0x19e   : > { %v2271_v3 = vpop.f32.mrf.mxu0  ;;  %313 = vst [vmem:[#allocation2 + $0x98] sm:$0xe] %v312_v46 }
 0x19f   : > { %v2366_v27 = vadd.f32 %v2271_v3, %v12067_v26  ;;  %v12244_v62 = vadd.f32 %v9992_v61, %v2368_v47  ;;  %v2609_v55 = vpop.f32.mrf.mxu1  ;;  %v10784_v47 = vld [vmem:[%s14709_s5 + $0x58] sm:$0xff]  }
 0x1a0   : > { %v9941_v35 = vpop.f32.mrf.mxu0  ;;  %v10789_v61 = vld [vmem:[%s14709_s5 + $0x18] sm:$0xff]   ;;  %10174 = vmatprep.subr.bf16.mxu1 %v10784_v47 }
 0x1a1   : > { %v2369_v28 = vadd.f32 %v9941_v35, %v12074_v32  ;;  %v12249_v23 = vadd.f32 %v2609_v55, %v2366_v27  ;;  %v9993_v52 = vpop.f32.mrf.mxu1  ;;  %10226 = vmatprep.subr.bf16.mxu0 %v10789_v61  ;;  %10175 = vmatpush3.bf16.msra.mxu1 %v10784_v47  ;;  %v10790_v35 = vld [vmem:[%s14709_s5 + $0x10] sm:$0xff]  }
 0x1a2   : > { %v12251_v8 = vpop.f32.mrf.mxu0  ;;  %10227 = vmatpush3.bf16.msra.mxu0 %v10789_v61 }
 0x1a3   : > { %14788 = vst [vmem:[#allocation5_spill] sm:$0xff] %v12251_v8  ;;  %v12253_v16 = vadd.f32 %v9993_v52, %v2369_v28  ;;  %v12255_v26 = vpop.f32.mrf.mxu1  ;;  %10228 = vmatprep.subr.bf16.mxu0 %v10790_v35 }
 0x1a4   : > { %14789 = vst [vmem:[#allocation12_spill] sm:$0xff] %v12255_v26  ;;  %v9944_v11 = vpop.f32.mrf.mxu0 }
 0x1a5   : > { %v2372_v32 = vadd.f32 %v9944_v11, %v12082_v14  ;;  %v9996_v3 = vpop.f32.mrf.mxu1 }
 0x1a6   : > { %v2287_v9 = vpop.f32.mrf.mxu0  ;;  %10229 = vmatpush3.bf16.msra.mxu0 %v10790_v35 }
 0x1a7   : > { %v2370_v52 = vadd.f32 %v2287_v9, %v12085_v60  ;;  %v12265_v27 = vadd.f32 %v9996_v3, %v2372_v32  ;;  %v2625_v55 = vpop.f32.mrf.mxu1  ;;  %v10787_v9 = vld [vmem:[%s14709_s5 + $0x50] sm:$0xff]  }
 0x1a8   : > { %v9945_v46 = vpop.f32.mrf.mxu0  ;;  %10176 = vmatprep.subr.bf16.mxu1 %v10787_v9 }
 0x1a9   : > { %v2373_v28 = vadd.f32 %v9945_v46, %v12092_v2  ;;  %v12271_v6 = vadd.f32 %v2625_v55, %v2370_v52  ;;  %v9997_v14 = vpop.f32.mrf.mxu1  ;;  %v10792_v2 = vld [vmem:[%s14709_s5 + $0x8] sm:$0xff]   ;;  %10177 = vmatpush3.bf16.msra.mxu1 %v10787_v9 }
 0x1aa   : > { %v12273_v11 = vpop.f32.mrf.mxu0  ;;  %10230 = vmatprep.subr.bf16.mxu0 %v10792_v2 }
 0x1ab   : > { %14790 = vst [vmem:[#allocation14_spill] sm:$0xff] %v12273_v11  ;;  %v12275_v47 = vadd.f32 %v9997_v14, %v2373_v28  ;;  %v12277_v61 = vpop.f32.mrf.mxu1  ;;  %10231 = vmatpush3.bf16.msra.mxu0 %v10792_v2 }
 0x1ac   : > { %14791 = vst [vmem:[#allocation15_spill] sm:$0xff] %v12277_v61  ;;  %v9948_v60 = vpop.f32.mrf.mxu0  ;;  %v10931_v61 = vmov 0  }
 0x1ad   : > { %v2376_v32 = vadd.f32 %v9948_v60, %v12100_v4  ;;  %v10000_v3 = vpop.f32.mrf.mxu1  ;;  %300 = vst [vmem:[#allocation2] sm:$0xf] %v10931_v61  ;;  %301 = vst [vmem:[#allocation2 + $0x4] sm:$0xf] %v10931_v61 }
 0x1ae   : > { %v2303_v52 = vpop.f32.mrf.mxu0  ;;  %314 = vst [vmem:[#allocation2 + $0x9c] sm:$0xf] %v10931_v61  ;;  %315 = vst [vmem:[#allocation2 + $0xa0] sm:$0xf] %v10931_v61 }
 0x1af   : > { %v2374_v55 = vadd.f32 %v2303_v52, %v12103_v41  ;;  %v12287_v46 = vadd.f32 %v10000_v3, %v2376_v32  ;;  %v2641_v28 = vpop.f32.mrf.mxu1  ;;  %v10791_v3 = vld [vmem:[%s14709_s5 + $0x48] sm:$0xff]  }
 0x1b0   : > { %v9949_v35 = vpop.f32.mrf.mxu0  ;;  %10178 = vmatprep.subr.bf16.mxu1 %v10791_v3 }
 0x1b1   : > { %v2377_v4 = vadd.f32 %v9949_v35, %v12110_v20  ;;  %v12290_v14 = vadd.f32 %v2641_v28, %v2374_v55  ;;  %v10001_v60 = vpop.f32.mrf.mxu1  ;;  %10179 = vmatpush3.bf16.msra.mxu1 %v10791_v3  ;;  %v10793_v35 = vld [vmem:[%s14709_s5] sm:$0xff]  }
 0x1b2   : > { %v12292_v26 = vpop.f32.mrf.mxu0  ;;  %10232 = vmatprep.subr.bf16.mxu0 %v10793_v35 }
 0x1b3   : > { %14792 = vst [vmem:[#allocation7_spill] sm:$0xff] %v12292_v26  ;;  %v12294_v41 = vadd.f32 %v10001_v60, %v2377_v4  ;;  %v12296_v32 = vpop.f32.mrf.mxu1  ;;  %10233 = vmatpush3.bf16.msra.mxu0 %v10793_v35 }
 0x1b4   : > { %14793 = vst [vmem:[#allocation9_spill] sm:$0xff] %v12296_v32  ;;  %v9952_v9 = vpop.f32.mrf.mxu0  ;;  %v4694_v60 = vld [vmem:[#allocation2] sm:$0xf]  ;;  %v4695_v32 = vld [vmem:[#allocation2 + $0x4] sm:$0xf] }
 0x1b5   : > { %v2380_v20 = vadd.f32 %v9952_v9, %v12121_v45  ;;  %v10004_v2 = vpop.f32.mrf.mxu1  ;;  %v12311_v9 = vcombine.low %v4694_v60, %v4695_v32 }
 0x1b6   : > { %v2319_v52 = vpop.f32.mrf.mxu0 }
 0x1b7   : > { %v2378_v55 = vadd.f32 %v2319_v52, %v12124_v21  ;;  %v12303_v61 = vadd.f32 %v10004_v2, %v2380_v20  ;;  %v2657_v28 = vpop.f32.mrf.mxu1  ;;  %10234 = vmatprep.mubr.bf16.mxu0 %v12311_v9 }
 0x1b8   : > { %v9953_v4 = vpop.f32.mrf.mxu0 }
 0x1b9   : > { %v2381_v26 = vadd.f32 %v9953_v4, %v12131_v10  ;;  %v12309_v11 = vadd.f32 %v2657_v28, %v2378_v55  ;;  %v10005_v45 = vpop.f32.mrf.mxu1  ;;  %v10794_v55 = vld [vmem:[%s14709_s5 + $0x40] sm:$0xff]  }
 0x1ba   : > { %v12313_v3 = vpop.f32.mrf.mxu0  ;;  %10180 = vmatprep.subr.bf16.mxu1 %v10794_v55 }
 0x1bb   : > { %14794 = vst [vmem:[#allocation16_spill] sm:$0xff] %v12313_v3  ;;  %v12315_v21 = vadd.f32 %v10005_v45, %v2381_v26  ;;  %v12317_v20 = vpop.f32.mrf.mxu1  ;;  %10181 = vmatpush3.bf16.msra.mxu1 %v10794_v55 }
 0x1bc   : > { %14795 = vst [vmem:[#allocation13_spill] sm:$0xff] %v12317_v20  ;;  %v9956_v2 = vpop.f32.mrf.mxu0 }
 0x1bd   : > { %v2384_v52 = vadd.f32 %v9956_v2, %v12139_v54  ;;  %v10008_v8 = vpop.f32.mrf.mxu1 }
 0x1be   : > { %v2335_v10 = vpop.f32.mrf.mxu0 }
 0x1bf   : > { %v2382_v32 = vadd.f32 %v2335_v10, %v12145_v42  ;;  %v12325_v28 = vadd.f32 %v10008_v8, %v2384_v52  ;;  %v2673_v35 = vpop.f32.mrf.mxu1 }
 0x1c0   : > { %v9957_v26 = vpop.f32.mrf.mxu0 }
 0x1c1   : > { %v2385_v4 = vadd.f32 %v9957_v26, %v12151_v50  ;;  %v12328_v60 = vadd.f32 %v2673_v35, %v2382_v32  ;;  %v10009_v45 = vpop.f32.mrf.mxu1 }
 0x1c2   : > { %v12330_v54 = vpop.f32.mrf.mxu0 }
 0x1c3   : > { %v12332_v2 = vadd.f32 %v10009_v45, %v2385_v4  ;;  %v12334_v20 = vpop.f32.mrf.mxu1 }
 0x1c4   : > { %v10028_v3 = vpop.f32.mrf.mxu0 }
 0x1c5   : > { %14796 = vst [vmem:[#allocation18_spill] sm:$0xff] %v12332_v2  ;;  %v12337_v42 = vadd.f32 %v10028_v3, %v12159_v39  ;;  %v12339_v8 = vpop.f32.mrf.mxu1 }
 0x1c6   : > { %v3008_v52 = vpop.f32.mrf.mxu0 }
 0x1c7   : > { %v12342_v10 = vadd.f32 %v3008_v52, %v12165_v22  ;;  %v12344_v50 = vpop.f32.mrf.mxu1 }
 0x1c8   : > { %v10029_v32 = vpop.f32.mrf.mxu0 }
 0x1c9   : > { %v12347_v55 = vadd.f32 %v10029_v32, %v12171_v18  ;;  %v12349_v35 = vpop.f32.mrf.mxu1 }
 0x1ca   : > { %14798 = vst [vmem:[#allocation21_spill] sm:$0xff] %v12349_v35  ;;  %v12351_v26 = vpop.f32.mrf.mxu0 }
 0x1cb   : > { %14797 = vst [vmem:[#allocation20_spill] sm:$0xff] %v12347_v55  ;;  %v12353_v4 = vpop.f32.mrf.mxu1 }
 0x1cc   : > { %14799 = vst [vmem:[#allocation22_spill] sm:$0xff] %v12353_v4  ;;  %v10032_v39 = vpop.f32.mrf.mxu0 }
 0x1cd   : > { %v12356_v3 = vadd.f32 %v10032_v39, %v12178_v5  ;;  %v12358_v45 = vpop.f32.mrf.mxu1 }
 0x1ce   : > { %14800 = vst [vmem:[#allocation23_spill] sm:$0xff] %v12358_v45  ;;  %v3024_v22 = vpop.f32.mrf.mxu0 }
 0x1cf   : > { %v12361_v52 = vadd.f32 %v3024_v22, %v12181_v49  ;;  %v12363_v2 = vpop.f32.mrf.mxu1 }
 0x1d0   : > { %14801 = vst [vmem:[#allocation24_spill] sm:$0xff] %v12363_v2  ;;  %v10033_v18 = vpop.f32.mrf.mxu0 }
 0x1d1   : > { %v12366_v32 = vadd.f32 %v10033_v18, %v12189_v15  ;;  %v12368_v35 = vpop.f32.mrf.mxu1 }
 0x1d2   : > { %14803 = vst [vmem:[#allocation26_spill] sm:$0xff] %v12368_v35  ;;  %v12370_v55 = vpop.f32.mrf.mxu0 }
 0x1d3   : > { %14802 = vst [vmem:[#allocation25_spill] sm:$0xff] %v12366_v32  ;;  %v12372_v4 = vpop.f32.mrf.mxu1 }
 0x1d4   : > { %14804 = vst [vmem:[#allocation27_spill] sm:$0xff] %v12372_v4  ;;  %v10036_v5 = vpop.f32.mrf.mxu0 }
 0x1d5   : > { %v12375_v39 = vadd.f32 %v10036_v5, %v12198_v38  ;;  %v12377_v45 = vpop.f32.mrf.mxu1 }
 0x1d6   : > { %14805 = vst [vmem:[#allocation28_spill] sm:$0xff] %v12377_v45  ;;  %v3040_v49 = vpop.f32.mrf.mxu0 }
 0x1d7   : > { %v12380_v22 = vadd.f32 %v3040_v49, %v12204_v63  ;;  %v12382_v2 = vpop.f32.mrf.mxu1  ;;  %v10799_v63 = vld [vmem:[%s14709_s5 + $0xb8] sm:$0xff]  }
 0x1d8   : > { %14806 = vst [vmem:[#allocation29_spill] sm:$0xff] %v12382_v2  ;;  %v10037_v15 = vpop.f32.mrf.mxu0  ;;  %10270 = vmatprep.subr.bf16.mxu1 %v10799_v63 }
 0x1d9   : > { %v12385_v18 = vadd.f32 %v10037_v15, %v12208_v25  ;;  %v12387_v35 = vpop.f32.mrf.mxu1 }
 0x1da   : > { %14808 = vst [vmem:[#allocation31_spill] sm:$0xff] %v12387_v35  ;;  %v12389_v32 = vpop.f32.mrf.mxu0 }
 0x1db   : > { %14807 = vst [vmem:[#allocation30_spill] sm:$0xff] %v12385_v18  ;;  %v12391_v4 = vpop.f32.mrf.mxu1 }
 0x1dc   : > { %14809 = vst [vmem:[#allocation32_spill] sm:$0xff] %v12391_v4  ;;  %v10040_v38 = vpop.f32.mrf.mxu0 }
 0x1dd   : > { %v12394_v5 = vadd.f32 %v10040_v38, %v12222_v36  ;;  %v12396_v45 = vpop.f32.mrf.mxu1 }
 0x1de   : > { %14811 = vst [vmem:[#allocation34_spill] sm:$0xff] %v12396_v45  ;;  %v3056_v49 = vpop.f32.mrf.mxu0 }
 0x1df   : > { %14810 = vst [vmem:[#allocation33_spill] sm:$0xff] %v12394_v5  ;;  %v12402_v25 = vadd.f32 %v3056_v49, %v12227_v29  ;;  %v12404_v15 = vpop.f32.mrf.mxu1 }
 0x1e0   : > { %v10041_v35 = vpop.f32.mrf.mxu0 }
 0x1e1   : > { %v12407_v4 = vadd.f32 %v10041_v35, %v12231_v12  ;;  %v12409_v18 = vpop.f32.mrf.mxu1 }
 0x1e2   : > { %14813 = vst [vmem:[#allocation36_spill] sm:$0xff] %v12409_v18  ;;  %v12411_v36 = vpop.f32.mrf.mxu0 }
 0x1e3   : > { %14812 = vst [vmem:[#allocation35_spill] sm:$0xff] %v12407_v4  ;;  %v12413_v38 = vpop.f32.mrf.mxu1 }
 0x1e4   : > { %14814 = vst [vmem:[#allocation37_spill] sm:$0xff] %v12413_v38  ;;  %v10044_v45 = vpop.f32.mrf.mxu0 }
 0x1e5   : > { %v12416_v5 = vadd.f32 %v10044_v45, %v12244_v62  ;;  %v12418_v2 = vpop.f32.mrf.mxu1 }
 0x1e6   : > { %14815 = vst [vmem:[#allocation38_spill] sm:$0xff] %v12418_v2  ;;  %v3072_v29 = vpop.f32.mrf.mxu0 }
 0x1e7   : > { %v12421_v49 = vadd.f32 %v3072_v29, %v12249_v23  ;;  %v12423_v63 = vpop.f32.mrf.mxu1 }
 0x1e8   : > { %14816 = vst [vmem:[#allocation39_spill] sm:$0xff] %v12423_v63  ;;  %v10045_v12 = vpop.f32.mrf.mxu0 }
 0x1e9   : > { %v12426_v35 = vadd.f32 %v10045_v12, %v12253_v16  ;;  %v12428_v18 = vpop.f32.mrf.mxu1 }
 0x1ea   : > { %14818 = vst [vmem:[#allocation41_spill] sm:$0xff] %v12428_v18  ;;  %v12430_v4 = vpop.f32.mrf.mxu0 }
 0x1eb   : > { %14817 = vst [vmem:[#allocation40_spill] sm:$0xff] %v12426_v35  ;;  %v12432_v38 = vpop.f32.mrf.mxu1 }
 0x1ec   : > { %14819 = vst [vmem:[#allocation42_spill] sm:$0xff] %v12432_v38  ;;  %v10048_v62 = vpop.f32.mrf.mxu0 }
 0x1ed   : > { %v12435_v45 = vadd.f32 %v10048_v62, %v12265_v27  ;;  %v12437_v2 = vpop.f32.mrf.mxu1 }
 0x1ee   : > { %14820 = vst [vmem:[#allocation43_spill] sm:$0xff] %v12437_v2  ;;  %v3088_v23 = vpop.f32.mrf.mxu0 }
 0x1ef   : > { %v12440_v29 = vadd.f32 %v3088_v23, %v12271_v6  ;;  %v12442_v63 = vpop.f32.mrf.mxu1 }
 0x1f0   : > { %14822 = vst [vmem:[#allocation45_spill] sm:$0xff] %v12442_v63  ;;  %v10049_v16 = vpop.f32.mrf.mxu0 }
 0x1f1   : > { %14821 = vst [vmem:[#allocation44_spill] sm:$0xff] %v12440_v29  ;;  %v12445_v12 = vadd.f32 %v10049_v16, %v12275_v47  ;;  %v12447_v18 = vpop.f32.mrf.mxu1 }
 0x1f2   : > { %14824 = vst [vmem:[#allocation47_spill] sm:$0xff] %v12447_v18  ;;  %v12449_v35 = vpop.f32.mrf.mxu0 }
 0x1f3   : > { %14823 = vst [vmem:[#allocation46_spill] sm:$0xff] %v12445_v12  ;;  %v12451_v38 = vpop.f32.mrf.mxu1 }
 0x1f4   : > { %14825 = vst [vmem:[#allocation48_spill] sm:$0xff] %v12451_v38  ;;  %v10052_v27 = vpop.f32.mrf.mxu0 }
 0x1f5   : > { %v12454_v62 = vadd.f32 %v10052_v27, %v12287_v46  ;;  %v12456_v2 = vpop.f32.mrf.mxu1  ;;  %v14830_v46 = vld [vmem:[#allocation17_spill] sm:$0xff]  ;;  %v14831_v27 = vld [vmem:[#allocation19_spill] sm:$0xff] }
 0x1f6   : > { %14827 = vst [vmem:[#allocation50_spill] sm:$0xff] %v12456_v2  ;;  %v3104_v6 = vpop.f32.mrf.mxu0 }
 0x1f7   : > { %14826 = vst [vmem:[#allocation49_spill] sm:$0xff] %v12454_v62  ;;  %v12459_v23 = vadd.f32 %v3104_v6, %v12290_v14  ;;  %v12461_v63 = vpop.f32.mrf.mxu1  ;;  %v1103_v62 = vadd.f32 %v14831_v27, %v14830_v46  ;;  %v1880_v6 = vadd.f32 %v12003_v17, %v11999_v37  ;;  %v1892_v46 = vadd.f32 %v12058_v57, %v12054_v13 }
 0x1f8   : > { %v10053_v47 = vpop.f32.mrf.mxu0  ;;  %v1900_v37 = vadd.f32 %v12094_v34, %v12090_v30  ;;  %v1904_v17 = vadd.f32 %v12112_v1, %v12108_v40  ;;  %v14832_v40 = vld [vmem:[#allocation5_spill] sm:$0xff] }
 0x1f9   : > { %v12464_v16 = vadd.f32 %v10053_v47, %v12294_v41  ;;  %v12466_v18 = vpop.f32.mrf.mxu1  ;;  %v1884_v41 = vadd.f32 %v12020_v51, %v12016_v48  ;;  %v1449_v47 = vadd.f32 %v12148_v53, %v1103_v62  ;;  %v2351_v48 = vadd.f32 %v12168_v0, %v1880_v6  ;;  %v14833_v53 = vld [vmem:[#allocation14_spill] sm:$0xff] }
 0x1fa   : > { %14828 = vst [vmem:[#allocation51_spill] sm:$0xff] %v12466_v18  ;;  %v12468_v12 = vpop.f32.mrf.mxu0  ;;  %v2363_v34 = vadd.f32 %v12229_v24, %v1892_v46  ;;  %v2371_v0 = vadd.f32 %v14833_v53, %v1900_v37  ;;  %v4858_v6 = vshrl.u32 %v12311_v9, 16 }
 0x1fb   : > { %v12470_v38 = vpop.f32.mrf.mxu1  ;;  %v2355_v13 = vadd.f32 %v12187_v31, %v1884_v41  ;;  %v1912_v30 = vadd.f32 %v12153_v56, %v1449_v47  ;;  %v14835_v31 = vld [vmem:[#allocation16_spill] sm:$0xff]  ;;  %v14837_v41 = vld [vmem:[#allocation3_spill] sm:$0xff] }
 0x1fc   : > { %14829 = vst [vmem:[#allocation52_spill] sm:$0xff] %v12470_v38  ;;  %v10056_v2 = vpop.f32.mrf.mxu0  ;;  %v1888_v38 = vadd.f32 %v12039_v43, %v12035_v44  ;;  %v4860_v44 = vshll.u32 %v12311_v9, 16  ;;  %v1908_v43 = vadd.f32 %v12133_v59, %v12129_v33  ;;  %v14834_v33 = vld [vmem:[#allocation7_spill] sm:$0xff]  ;;  %v14838_v47 = vld [vmem:[#allocation8_spill] sm:$0xff]  ;;  %v14842_v9 = vld [vmem:[#allocation9_spill] sm:$0xff] }
 0x1fd   : > { %v12475_v29 = vadd.f32 %v10056_v2, %v12303_v61  ;;  %v12477_v14 = vpop.f32.mrf.mxu1  ;;  %v1896_v61 = vadd.f32 %v12076_v58, %v12072_v19  ;;  %v2375_v59 = vadd.f32 %v14834_v33, %v1904_v17  ;;  %v2693_v24 = vadd.f32 %v14837_v41, %v2355_v13  ;;  %v14839_v17 = vld [vmem:[#allocation11_spill] sm:$0xff]  ;;  %v14843_v33 = vld [vmem:[#allocation13_spill] sm:$0xff] }
 0x1fe   : > { %v3120_v18 = vpop.f32.mrf.mxu0  ;;  %v2359_v57 = vadd.f32 %v12206_v7, %v1888_v38  ;;  %v14836_v7 = vld [vmem:[#allocation4_spill] sm:$0xff]  ;;  %v4862_v56 = vrot.slane %v4860_v44, 1 }
 0x1ff   : > { %v12491_v2 = vadd.f32 %v3120_v18, %v12309_v11  ;;  %v12493_v27 = vpop.f32.mrf.mxu1  ;;  %v2367_v1 = vadd.f32 %v14832_v40, %v1896_v61  ;;  %v2379_v18 = vadd.f32 %v14835_v31, %v1908_v43  ;;  %v2689_v38 = vadd.f32 %v14836_v7, %v2351_v48  ;;  %v14840_v43 = vld [vmem:[#allocation12_spill] sm:$0xff]  ;;  %v14841_v48 = vld [vmem:[#allocation15_spill] sm:$0xff]  ;;  %v14845_v7 = vld [vmem:[#allocation21_spill] sm:$0xff] }
 0x200   : > { %v10057_v51 = vpop.f32.mrf.mxu0  ;;  %v2697_v46 = vadd.f32 %v14838_v47, %v2359_v57  ;;  %v2709_v53 = vadd.f32 %v14841_v48, %v2371_v0  ;;  %v2713_v44 = vadd.f32 %v14842_v9, %v2375_v59  ;;  %v3156_v57 = vadd.f32 %v12370_v55, %v2693_v24  ;;  %v14852_v47 = vld [vmem:[#allocation27_spill] sm:$0xff]  ;;  %v14857_v9 = vld [vmem:[#allocation32_spill] sm:$0xff] }
 0x201   : > { %v12506_v19 = vadd.f32 %v10057_v51, %v12315_v21  ;;  %v12508_v58 = vpop.f32.mrf.mxu1  ;;  %v2383_v21 = vadd.f32 %v12330_v54, %v1912_v30  ;;  %v2701_v51 = vadd.f32 %v14839_v17, %v2363_v34  ;;  %v2705_v40 = vadd.f32 %v14840_v43, %v2367_v1  ;;  %v14853_v17 = vld [vmem:[#allocation28_spill] sm:$0xff]  ;;  %v14854_v43 = vld [vmem:[#allocation29_spill] sm:$0xff] }
 0x202   : > { %v12514_v11 = vpop.f32.mrf.mxu0  ;;  %v3152_v54 = vadd.f32 %v12351_v26, %v2689_v38  ;;  %v2717_v13 = vadd.f32 %v14843_v33, %v2379_v18  ;;  %v3624_v34 = vadd.f32 %v12339_v8, %v12337_v42  ;;  %v3160_v1 = vadd.f32 %v12389_v32, %v2697_v46  ;;  %v14844_v18 = vld [vmem:[#allocation20_spill] sm:$0xff]  ;;  %v12559_v42 = vld [vmem:[%s14709_s5 + $0xf8] sm:$0xff]  }
 0x203   : > { %v12526_v37 = vpop.f32.mrf.mxu1  ;;  %v12539_v31 = vadd.f32 %v12334_v20, %v2383_v21  ;;  %v12544_v26 = vor.u32 %v4862_v56, %v4858_v6  ;;  %v3622_v59 = vadd.f32 %v12344_v50, %v12342_v10  ;;  %v3625_v55 = vadd.f32 %v14845_v7, %v14844_v18  ;;  %v14846_v20 = vld [vmem:[#allocation18_spill] sm:$0xff]  ;;  %v14849_v50 = vld [vmem:[#allocation24_spill] sm:$0xff]  ;;  %10322 = vmatprep.subr.bf16.mxu0 %v12559_v42 }
 0x204   : > { %v10060_v62 = vpop.f32.mrf.mxu0  ;;  %v14847_v8 = vld [vmem:[#allocation22_spill] sm:$0xff]  ;;  %v12568_v6 = vadd.f32 %v14849_v50, %v12361_v52  ;;  %v12575_v46 = vadd.f32 %v14852_v47, %v3156_v57  ;;  %v3168_v48 = vadd.f32 %v12430_v4, %v2705_v40  ;;  %v12592_v33 = vadd.f32 %v14857_v9, %v3160_v1  ;;  %v14858_v57 = vld [vmem:[#allocation33_spill] sm:$0xff]  ;;  %v14860_v40 = vld [vmem:[#allocation35_spill] sm:$0xff] }
 0x205   : > { %v12524_v61 = vadd.f32 %v10060_v62, %v12325_v28  ;;  %v12551_v38 = vpop.f32.mrf.mxu1  ;;  %v3623_v32 = vadd.f32 %v14847_v8, %v3152_v54  ;;  %v14848_v62 = vld [vmem:[#allocation23_spill] sm:$0xff]  ;;  %v14851_v56 = vld [vmem:[#allocation26_spill] sm:$0xff]  ;;  %v14862_v8 = vld [vmem:[#allocation37_spill] sm:$0xff] }
 0x206   : > { %v3136_v30 = vpop.f32.mrf.mxu0  ;;  %v12564_v10 = vadd.f32 %v14848_v62, %v12356_v3  ;;  %v12583_v3 = vadd.f32 %v14854_v43, %v12380_v22  ;;  %v14855_v52 = vld [vmem:[#allocation30_spill] sm:$0xff]  ;;  %v14856_v54 = vld [vmem:[#allocation31_spill] sm:$0xff]  ;;  %v12606_v22 = vadd.f32 %v12404_v15, %v12402_v25  ;;  %v14866_v25 = vld [vmem:[#allocation41_spill] sm:$0xff]  ;;  %v3176_v43 = vadd.f32 %v12468_v12, %v2713_v44 }
 0x207   : > { %v12536_v28 = vadd.f32 %v3136_v30, %v12328_v60  ;;  %v3164_v60 = vadd.f32 %v12411_v36, %v2701_v51  ;;  %v14850_v36 = vld [vmem:[#allocation25_spill] sm:$0xff]  ;;  %v12579_v51 = vadd.f32 %v14853_v17, %v12375_v39  ;;  %v12589_v30 = vadd.f32 %v14856_v54, %v14855_v52  ;;  %v12602_v4 = vld [vmem:[%s14708_s4] ss:$0 sm:$0xff]  ;;  %v3607_v50 = vpop.f32.mrf.mxu1  ;;  %v14865_v17 = vld [vmem:[#allocation40_spill] sm:$0xff] }
 0x208   : > { %v10061_v0 = vpop.f32.mrf.mxu0  ;;  %v12572_v41 = vadd.f32 %v14851_v56, %v14850_v36  ;;  %v3172_v39 = vadd.f32 %v12449_v35, %v2709_v53  ;;  %v14863_v35 = vld [vmem:[#allocation38_spill] sm:$0xff]  ;;  %v14864_v56 = vld [vmem:[#allocation39_spill] sm:$0xff]  ;;  %v12625_v15 = vadd.f32 %v14866_v25, %v14865_v17  ;;  %v14873_v12 = vld [vmem:[#allocation48_spill] sm:$0xff] }
 0x209   : > { %v12554_v21 = vadd.f32 %v10061_v0, %v14846_v20  ;;  %v14859_v0 = vld [vmem:[#allocation34_spill] sm:$0xff]  ;;  %v14861_v20 = vld [vmem:[#allocation36_spill] sm:$0xff]  ;;  %v12613_v62 = vadd.f32 %v14862_v8, %v3164_v60  ;;  %v12617_v53 = vadd.f32 %v14863_v35, %v12416_v5  ;;  %v12621_v47 = vadd.f32 %v14864_v56, %v12421_v49  ;;  %v14870_v49 = vld [vmem:[#allocation45_spill] sm:$0xff]  ;;  %v10113_v17 = vpop.f32.mrf.mxu1 }
 0x20a   : > { %v3139_v24 = vpop.f32.mrf.mxu0  ;;  %v12596_v18 = vadd.f32 %v14859_v0, %v14858_v57  ;;  %v12610_v1 = vadd.f32 %v14861_v20, %v14860_v40  ;;  %v14867_v54 = vld [vmem:[#allocation42_spill] sm:$0xff]  ;;  %v14869_v0 = vld [vmem:[#allocation44_spill] sm:$0xff]  ;;  %v14872_v20 = vld [vmem:[#allocation47_spill] sm:$0xff]  ;;  %v12645_v44 = vadd.f32 %v14873_v12, %v3172_v39  ;;  %v12658_v39 = vadd.f32 %v12461_v63, %v12459_v23 }
 0x20b   : > { %v12629_v60 = vadd.f32 %v14867_v54, %v3168_v48  ;;  %v14871_v40 = vld [vmem:[#allocation46_spill] sm:$0xff]  ;;  %v3180_v48 = vadd.f32 %v12514_v11, %v2717_v13  ;;  %v14876_v11 = vld [vmem:[#allocation51_spill] sm:$0xff] }
 0x20c   : > { %v10132_v7 = vpop.f32.mrf.mxu0  ;;  %v12642_v8 = vadd.f32 %v14872_v20, %v14871_v40  ;;  %v12662_v13 = vadd.f32 %v14876_v11, %v12464_v16  ;;  %v12677_v16 = vadd.f32 %v12493_v27, %v12491_v2  ;;  %v4078_v20 = vld [vmem:[%s14706_s2 + $0x18] sm:$0xff] }
 0x20d   : > { %v3962_v36 = vadd.f32 %v10132_v7, %v3624_v34  ;;  %v14868_v34 = vld [vmem:[#allocation43_spill] sm:$0xff]  ;;  %v12638_v7 = vadd.f32 %v14870_v49, %v14869_v0  ;;  %v12669_v49 = vadd.f32 %v12477_v14, %v12475_v29  ;;  %v12684_v29 = vadd.f32 %v12526_v37, %v3180_v48 }
 0x20e   : > { %v3817_v52 = vpop.f32.mrf.mxu0  ;;  %v12633_v9 = vadd.f32 %v14868_v34, %v12435_v45  ;;  %v4077_v45 = vld [vmem:[%s14706_s2 + $0x10] sm:$0xff]  ;;  %v3184_v14 = vadd.f32 %v3139_v24, %v12539_v31  ;;  %v12699_v37 = vadd.f32 %v10113_v17, %v12554_v21 }
 0x20f   : > { %v4005_v5 = vadd.f32 %v12602_v4, %v3962_v36  ;;  %v3960_v57 = vadd.f32 %v3817_v52, %v3622_v59  ;;  %v14874_v36 = vld [vmem:[#allocation49_spill] sm:$0xff]  ;;  %v14875_v59 = vld [vmem:[#allocation50_spill] sm:$0xff]  ;;  %v14877_v34 = vld [vmem:[#allocation52_spill] sm:$0xff] }
 0x210   : > { %v10133_v35 = vpop.f32.mrf.mxu0  ;;  %v12653_v56 = vadd.f32 %v14875_v59, %v14874_v36  ;;  %v12665_v0 = vadd.f32 %v14877_v34, %v3176_v43  ;;  %v12681_v43 = vadd.f32 %v12508_v58, %v12506_v19  ;;  %v12693_v19 = vadd.f32 %v12551_v38, %v12524_v61  ;;  %v4081_v34 = vld [vmem:[%s14706_s2 + $0x30] sm:$0xff] }
 0x211   : > { %v4041_v25 = vmax.f32 %v4005_v5, 0.0  ;;  %v4003_v52 = vadd.f32 %v12602_v4, %v3960_v57  ;;  %v3963_v54 = vadd.f32 %v10133_v35, %v3625_v55  ;;  %v4075_v5 = vld [vmem:[%s14706_s2] sm:$0xff]  ;;  %v12696_v58 = vadd.f32 %v3607_v50, %v12536_v28 }
 0x212   : > { %v3820_v55 = vpop.f32.mrf.mxu0 }
 0x213   : > { %v4113_v57 = vmul.f32 %v4077_v45, %v4041_v25  ;;  %v4039_v40 = vmax.f32 %v4003_v52, 0.0  ;;  %v4006_v63 = vadd.f32 %v12602_v4, %v3963_v54  ;;  %v3961_v23 = vadd.f32 %v3820_v55, %v3623_v32  ;;  %v3610_v32 = vpop.f32.mrf.mxu1  ;;  %v4076_v52 = vld [vmem:[%s14706_s2 + $0x8] sm:$0xff] }
 0x214   : > { %v10136_v12 = vpop.f32.mrf.mxu0  ;;  %v12705_v54 = vadd.f32 %v3610_v32, %v3184_v14 }
 0x215   : > { %v9196_v45 = vpack.c.bf16 %v4113_v57, %v4113_v57  ;;  %v4111_v35 = vmul.f32 %v4075_v5, %v4039_v40  ;;  %v4042_v2 = vmax.f32 %v4006_v63, 0.0  ;;  %v4004_v27 = vadd.f32 %v12602_v4, %v3961_v23 }
 0x216   : > { %v3966_v31 = vadd.f32 %v10136_v12, %v12564_v10  ;;  %v3833_v24 = vpop.f32.mrf.mxu0  ;;  %v4653_v12 = vld [vmem:[#allocation2 + $0x8] sm:$0xe] }
 0x217   : > { %v4277_v48 = vshrl.u32 %v9196_v45, 16  ;;  %v4280_v36 = vshll.u32 %v9196_v45, 16  ;;  %v9194_v59 = vpack.c.bf16 %v4111_v35, %v4111_v35  ;;  %v4114_v25 = vmul.f32 %v4078_v20, %v4042_v2 }
 0x218   : > { %v4040_v61 = vmax.f32 %v4004_v27, 0.0  ;;  %v4009_v28 = vadd.f32 %v12602_v4, %v3966_v31  ;;  %v3964_v38 = vadd.f32 %v3833_v24, %v12568_v6  ;;  %v10137_v21 = vpop.f32.mrf.mxu0  ;;  %v4079_v27 = vld [vmem:[%s14706_s2 + $0x20] sm:$0xff] }
 0x219   : > { %v4279_v50 = vrot.slane %v4277_v48, 6  ;;  %v4282_v17 = vrot.slane %v4280_v36, 7  ;;  %v4258_v10 = vshrl.u32 %v9194_v59, 16  ;;  %v4261_v11 = vshll.u32 %v9194_v59, 16 }
 0x21a   : > { %v9197_v5 = vpack.c.bf16 %v4114_v25, %v4114_v25  ;;  %v4112_v55 = vmul.f32 %v4076_v52, %v4040_v61  ;;  %v4045_v57 = vmax.f32 %v4009_v28, 0.0  ;;  %v4007_v40 = vadd.f32 %v12602_v4, %v3964_v38  ;;  %v3836_v63 = vpop.f32.mrf.mxu0 }
 0x21b   : > { %v4283_v23 = vor.u32 %v4282_v17, %v4279_v50  ;;  %v4260_v14 = vrot.slane %v4258_v10, 6  ;;  %v4263_v20 = vrot.slane %v4261_v11, 7  ;;  %v3967_v6 = vadd.f32 %v10137_v21, %v12572_v41 }
 0x21c   : > { %v4287_v32 = vshrl.u32 %v9197_v5, 16  ;;  %v4290_v45 = vshll.u32 %v9197_v5, 16  ;;  %v9195_v35 = vpack.c.bf16 %v4112_v55, %v4112_v55  ;;  %v4117_v2 = vmul.f32 %v4081_v34, %v4045_v57  ;;  %v10140_v31 = vpop.f32.mrf.mxu0  ;;  %v4082_v34 = vld [vmem:[%s14706_s2 + $0x38] sm:$0xff] }
 0x21d   : > { %v4285_v24 = vrot.slane %v4283_v23, 4  ;;  %v4264_v48 = vor.u32 %v4263_v20, %v4260_v14  ;;  %v4043_v36 = vmax.f32 %v4007_v40, 0.0  ;;  %v4010_v59 = vadd.f32 %v12602_v4, %v3967_v6 }
 0x21e   : > { %v4289_v25 = vrot.slane %v4287_v32, 6  ;;  %v4292_v52 = vrot.slane %v4290_v45, 7  ;;  %v4267_v61 = vshrl.u32 %v9195_v35, 16  ;;  %v4270_v28 = vshll.u32 %v9195_v35, 16  ;;  %v3849_v41 = vpop.f32.mrf.mxu0 }
 0x21f   : > { %v4265_v21 = vrot.slane %v4264_v48, 4  ;;  %v4654_v17 = vsel %vm12236_vm11, %v4264_v48, %v4653_v12  ;;  %v9200_v10 = vpack.c.bf16 %v4117_v2, %v4117_v2  ;;  %v4115_v11 = vmul.f32 %v4079_v27, %v4043_v36 }
 0x220   : > { %4655 = vst [vmem:[#allocation2 + $0x8] sm:$0xe] %v4654_v17  ;;  %v4293_v5 = vor.u32 %v4292_v52, %v4289_v25  ;;  %v4269_v55 = vrot.slane %v4267_v61, 6  ;;  %v4272_v57 = vrot.slane %v4270_v28, 7  ;;  %v4046_v40 = vmax.f32 %v4010_v59, 0.0  ;;  %v10141_v14 = vpop.f32.mrf.mxu0 }
 0x221   : > { %v4317_v20 = vshrl.u32 %v9200_v10, 16  ;;  %v4320_v6 = vshll.u32 %v9200_v10, 16  ;;  %v9198_v32 = vpack.c.bf16 %v4115_v11, %v4115_v11  ;;  %v3965_v45 = vadd.f32 %v3836_v63, %v12575_v46  ;;  %v4080_v11 = vld [vmem:[%s14706_s2 + $0x28] sm:$0xff] }
 0x222   : > { %v4294_v12 = vsel %vm12720_vm13, %v4285_v24, %v4293_v5  ;;  %v4295_v35 = vrot.slane %v4293_v5, 4  ;;  %v4273_v2 = vor.u32 %v4272_v57, %v4269_v55  ;;  %v4118_v27 = vmul.f32 %v4082_v34, %v4046_v40  ;;  %v3852_v48 = vpop.f32.mrf.mxu0 }
 0x223   : > { %4658 = vst [vmem:[#allocation2 + $0x14] sm:$0xf] %v4294_v12  ;;  %v4319_v36 = vrot.slane %v4317_v20, 6  ;;  %v4322_v50 = vrot.slane %v4320_v6, 7  ;;  %v4297_v25 = vshrl.u32 %v9198_v32, 16  ;;  %v4300_v52 = vshll.u32 %v9198_v32, 16 }
 0x224   : > { %v4274_v59 = vsel %vm12720_vm13, %v4265_v21, %v4273_v2  ;;  %v4275_v61 = vrot.slane %v4273_v2, 4  ;;  %v9201_v28 = vpack.c.bf16 %v4118_v27, %v4118_v27  ;;  %v4008_v17 = vadd.f32 %v12602_v4, %v3965_v45  ;;  %v10144_v46 = vpop.f32.mrf.mxu0 }
 0x225   : > { %4656 = vst [vmem:[#allocation2 + $0xc] sm:$0xf] %v4274_v59  ;;  %v12735_v63 = vor.u32 %v4322_v50, %v4319_v36  ;;  %v4299_v24 = vrot.slane %v4297_v25, 6  ;;  %v4302_v10 = vrot.slane %v4300_v52, 7  ;;  %v3970_v34 = vadd.f32 %v10140_v31, %v12579_v51  ;;  %v4085_v51 = vld [vmem:[%s14706_s2 + $0x50] sm:$0xff]  ;;  %v4083_v59 = vld [vmem:[%s14706_s2 + $0x40] sm:$0xff] }
 0x226   : > { %v4284_v5 = vsel %vm12720_vm13, %v4275_v61, %v4283_v23  ;;  %v4327_v21 = vshrl.u32 %v9201_v28, 16  ;;  %v4330_v55 = vshll.u32 %v9201_v28, 16  ;;  %v4044_v57 = vmax.f32 %v4008_v17, 0.0  ;;  %v3865_v40 = vpop.f32.mrf.mxu0  ;;  %v4086_v17 = vld [vmem:[%s14706_s2 + $0x58] sm:$0xff] }
 0x227   : > { %4657 = vst [vmem:[#allocation2 + $0x10] sm:$0xf] %v4284_v5  ;;  %v4325_v20 = vrot.slane %v12735_v63, 4  ;;  %v12744_v6 = vor.u32 %v4302_v10, %v4299_v24  ;;  %v4013_v32 = vadd.f32 %v12602_v4, %v3970_v34  ;;  %v3968_v45 = vadd.f32 %v3849_v41, %v12583_v3 }
 0x228   : > { %v4329_v12 = vrot.slane %v4327_v21, 6  ;;  %v4332_v2 = vrot.slane %v4330_v55, 7  ;;  %v4116_v27 = vmul.f32 %v4080_v11, %v4044_v57  ;;  %v3971_v23 = vadd.f32 %v10141_v14, %v12589_v30  ;;  %v12752_v31 = vpop.f32.mrf.mxu0  ;;  %v10815_v11 = vld [vmem:[%s14709_s5 + $0xf0] sm:$0xff]  }
 0x229   : > { %v4304_v36 = vsel %vm12720_vm13, %v4295_v35, %v12744_v6  ;;  %v4305_v50 = vrot.slane %v12744_v6, 4  ;;  %v4049_v25 = vmax.f32 %v4013_v32, 0.0  ;;  %v4011_v3 = vadd.f32 %v12602_v4, %v3968_v45 }
 0x22a   : > { %4659 = vst [vmem:[#allocation2 + $0x18] sm:$0xf] %v4304_v36  ;;  %v12759_v41 = vor.u32 %v4332_v2, %v4329_v12  ;;  %v9199_v52 = vpack.c.bf16 %v4116_v27, %v4116_v27  ;;  %v4014_v30 = vadd.f32 %v12602_v4, %v3971_v23  ;;  %v3969_v14 = vadd.f32 %v3852_v48, %v12592_v33  ;;  %v12766_v61 = vpop.f32.mrf.mxu0  ;;  %v4084_v23 = vld [vmem:[%s14706_s2 + $0x48] sm:$0xff] }
 0x22b   : > { %v4121_v35 = vmul.f32 %v4085_v51, %v4049_v25  ;;  %v4047_v28 = vmax.f32 %v4011_v3, 0.0  ;;  %v3974_v24 = vadd.f32 %v10144_v46, %v12596_v18  ;;  %v3972_v10 = vadd.f32 %v3865_v40, %v12606_v22 }
 0x22c   : > { %v4334_v33 = vsel %vm12720_vm13, %v4325_v20, %v12759_v41  ;;  %v4335_v48 = vrot.slane %v12759_v41, 4  ;;  %v4307_v34 = vshrl.u32 %v9199_v52, 16  ;;  %v4310_v5 = vshll.u32 %v9199_v52, 16  ;;  %v12780_v21 = vpop.f32.mrf.mxu0  ;;  %v12782_v55 = vld [vmem:[#allocation2 + $0x8] sm:$0xff]   ;;  %v4089_v52 = vld [vmem:[%s14706_s2 + $0x70] sm:$0xff] }
 0x22d   : > { %4662 = vst [vmem:[#allocation2 + $0x24] sm:$0xf] %v4334_v33  ;;  %v9204_v18 = vpack.c.bf16 %v4121_v35, %v4121_v35  ;;  %v4119_v46 = vmul.f32 %v4083_v59, %v4047_v28  ;;  %v4050_v22 = vmax.f32 %v4014_v30, 0.0  ;;  %v4012_v57 = vadd.f32 %v12602_v4, %v3969_v14  ;;  %10235 = vmatmul.mubr.bf16.vlgmr.msra.gmra.mxu0 %v12782_v55  ;;  %v10817_v14 = vld [vmem:[%s14709_s5 + $0xe8] sm:$0xff]  }
 0x22e   : > { %v4309_v40 = vrot.slane %v4307_v34, 6  ;;  %v4312_v6 = vrot.slane %v4310_v5, 7  ;;  %v4017_v32 = vadd.f32 %v12602_v4, %v3974_v24  ;;  %v4015_v20 = vadd.f32 %v12602_v4, %v3972_v10  ;;  %v12788_v45 = vld [vmem:[#allocation2 + $0x10] sm:$0xff]   ;;  %10323 = vmatpush3.bf16.msra.mxu0 %v12559_v42  ;;  %v12797_v30 = vpop.f32.mrf.mxu0  ;;  %v4087_v5 = vld [vmem:[%s14706_s2 + $0x60] sm:$0xff] }
 0x22f   : > { %v4357_v12 = vshrl.u32 %v9204_v18, 16  ;;  %v4360_v2 = vshll.u32 %v9204_v18, 16  ;;  %v9202_v27 = vpack.c.bf16 %v4119_v46, %v4119_v46  ;;  %v4122_v51 = vmul.f32 %v4086_v17, %v4050_v22  ;;  %10238 = vmatprep.mubr.bf16.mxu0 %v12788_v45  ;;  %10324 = vmatprep.subr.bf16.mxu0 %v10815_v11 }
 0x230   : > { %v4313_v36 = vor.u32 %v4312_v6, %v4309_v40  ;;  %v4048_v25 = vmax.f32 %v4012_v57, 0.0  ;;  %v4053_v3 = vmax.f32 %v4017_v32, 0.0  ;;  %v4051_v59 = vmax.f32 %v4015_v20, 0.0  ;;  %v10820_v40 = vld [vmem:[%s14709_s5 + $0xe0] sm:$0xff]  }
 0x231   : > { %v4359_v35 = vrot.slane %v4357_v12, 6  ;;  %v4362_v28 = vrot.slane %v4360_v2, 7  ;;  %v4337_v42 = vshrl.u32 %v9202_v27, 16  ;;  %v4340_v17 = vshll.u32 %v9202_v27, 16  ;;  %v10149_v12 = vpop.f32.mrf.mxu0 }
 0x232   : > { %v4314_v24 = vsel %vm12720_vm13, %v4305_v50, %v4313_v36  ;;  %v4315_v10 = vrot.slane %v4313_v36, 4  ;;  %v9205_v33 = vpack.c.bf16 %v4122_v51, %v4122_v51  ;;  %v4120_v34 = vmul.f32 %v4084_v23, %v4048_v25  ;;  %10325 = vmatpush3.bf16.msra.mxu0 %v10815_v11 }
 0x233   : > { %4660 = vst [vmem:[#allocation2 + $0x1c] sm:$0xf] %v4314_v24  ;;  %v12808_v18 = vor.u32 %v4362_v28, %v4359_v35  ;;  %v4339_v46 = vrot.slane %v4337_v42, 6  ;;  %v4342_v22 = vrot.slane %v4340_v17, 7  ;;  %v4125_v57 = vmul.f32 %v4089_v52, %v4053_v3  ;;  %10326 = vmatprep.subr.bf16.mxu0 %v10817_v14 }
 0x234   : > { %v4324_v50 = vsel %vm12720_vm13, %v4315_v10, %v12735_v63  ;;  %v4367_v6 = vshrl.u32 %v9205_v33, 16  ;;  %v4370_v32 = vshll.u32 %v9205_v33, 16  ;;  %v9203_v20 = vpack.c.bf16 %v4120_v34, %v4120_v34  ;;  %v3884_v33 = vpop.f32.mrf.mxu0 }
 0x235   : > { %4661 = vst [vmem:[#allocation2 + $0x20] sm:$0xf] %v4324_v50  ;;  %v4365_v2 = vrot.slane %v12808_v18, 4  ;;  %v4343_v27 = vor.u32 %v4342_v22, %v4339_v46  ;;  %v9208_v51 = vpack.c.bf16 %v4125_v57, %v4125_v57  ;;  %v4123_v23 = vmul.f32 %v4087_v5, %v4051_v59  ;;  %v10822_v59 = vld [vmem:[%s14709_s5 + $0xd8] sm:$0xff]  }
 0x236   : > { %v4369_v11 = vrot.slane %v4367_v6, 6  ;;  %v4372_v36 = vrot.slane %v4370_v32, 7  ;;  %v4347_v25 = vshrl.u32 %v9203_v20, 16  ;;  %v4350_v3 = vshll.u32 %v9203_v20, 16  ;;  %10327 = vmatpush3.bf16.msra.mxu0 %v10817_v14  ;;  %v4090_v50 = vld [vmem:[%s14706_s2 + $0x78] sm:$0xff] }
 0x237   : > { %v4344_v63 = vsel %vm12720_vm13, %v4335_v48, %v4343_v27  ;;  %v4345_v52 = vrot.slane %v4343_v27, 4  ;;  %v4397_v35 = vshrl.u32 %v9208_v51, 16  ;;  %v4400_v28 = vshll.u32 %v9208_v51, 16  ;;  %10328 = vmatprep.subr.bf16.mxu0 %v10820_v40 }
 0x238   : > { %4663 = vst [vmem:[#allocation2 + $0x28] sm:$0xf] %v4344_v63  ;;  %v4373_v42 = vor.u32 %v4372_v36, %v4369_v11  ;;  %v4349_v17 = vrot.slane %v4347_v25, 6  ;;  %v4352_v24 = vrot.slane %v4350_v3, 7  ;;  %v9206_v10 = vpack.c.bf16 %v4123_v23, %v4123_v23  ;;  %v12846_v23 = vpop.f32.mrf.mxu0  ;;  %v10824_v36 = vld [vmem:[%s14709_s5 + $0xd0] sm:$0xff]  }
 0x239   : > { %v4399_v34 = vrot.slane %v4397_v35, 6  ;;  %v4402_v41 = vrot.slane %v4400_v28, 7  ;;  %v3975_v48 = vadd.f32 %v12752_v31, %v12610_v1  ;;  %v3973_v5 = vadd.f32 %v12766_v61, %v12613_v62  ;;  %v4088_v31 = vld [vmem:[%s14706_s2 + $0x68] sm:$0xff] }
 0x23a   : > { %v4374_v14 = vsel %vm12720_vm13, %v4365_v2, %v4373_v42  ;;  %v4375_v46 = vrot.slane %v4373_v42, 4  ;;  %v4353_v22 = vor.u32 %v4352_v24, %v4349_v17  ;;  %v4377_v57 = vshrl.u32 %v9206_v10, 16  ;;  %v12833_v6 = vld [vmem:[#allocation2 + $0x18] sm:$0xff]   ;;  %10329 = vmatpush3.bf16.msra.mxu0 %v10820_v40 }
 0x23b   : > { %4666 = vst [vmem:[#allocation2 + $0x34] sm:$0xf] %v4374_v14  ;;  %v12835_v32 = vor.u32 %v4402_v41, %v4399_v34  ;;  %v4380_v20 = vshll.u32 %v9206_v10, 16  ;;  %v4018_v1 = vadd.f32 %v12602_v4, %v3975_v48  ;;  %v4016_v62 = vadd.f32 %v12602_v4, %v3973_v5  ;;  %10239 = vmatmul.mubr.bf16.gmra.mxu0 %v12833_v6  ;;  %v4094_v5 = vld [vmem:[%s14706_s2 + $0x98] sm:$0xff] }
 0x23c   : > { %v4354_v61 = vsel %vm12720_vm13, %v4345_v52, %v4353_v22  ;;  %v4355_v2 = vrot.slane %v4353_v22, 4  ;;  %v4379_v27 = vrot.slane %v4377_v57, 6  ;;  %v3978_v51 = vadd.f32 %v12780_v21, %v12617_v53  ;;  %v12849_v11 = vld [vmem:[#allocation2 + $0x20] sm:$0xff]   ;;  %10330 = vmatprep.subr.bf16.mxu0 %v10822_v59  ;;  %v4093_v52 = vld [vmem:[%s14706_s2 + $0x90] sm:$0xff] }
 0x23d   : > { %4664 = vst [vmem:[#allocation2 + $0x2c] sm:$0xf] %v4354_v61  ;;  %v4405_v40 = vrot.slane %v12835_v32, 4  ;;  %v4382_v25 = vrot.slane %v4380_v20, 7  ;;  %v4054_v3 = vmax.f32 %v4018_v1, 0.0  ;;  %v4052_v63 = vmax.f32 %v4016_v62, 0.0  ;;  %10242 = vmatprep.mubr.bf16.mxu0 %v12849_v11 }
 0x23e   : > { %v4364_v53 = vsel %vm12720_vm13, %v4355_v2, %v12808_v18  ;;  %v4021_v21 = vadd.f32 %v12602_v4, %v3978_v51  ;;  %v3976_v35 = vadd.f32 %v12797_v30, %v12621_v47  ;;  %v3979_v28 = vadd.f32 %v10149_v12, %v12625_v15  ;;  %10331 = vmatpush3.bf16.msra.mxu0 %v10822_v59  ;;  %v12872_v47 = vpop.f32.mrf.mxu0  ;;  %v10827_v15 = vld [vmem:[%s14709_s5 + $0xc8] sm:$0xff]   ;;  %v4091_v59 = vld [vmem:[%s14706_s2 + $0x80] sm:$0xff] }
 0x23f   : > { %4665 = vst [vmem:[#allocation2 + $0x30] sm:$0xf] %v4364_v53  ;;  %v12866_v42 = vor.u32 %v4382_v25, %v4379_v27  ;;  %v4126_v17 = vmul.f32 %v4090_v50, %v4054_v3  ;;  %v4124_v24 = vmul.f32 %v4088_v31, %v4052_v63  ;;  %v3977_v18 = vadd.f32 %v3884_v33, %v12629_v60  ;;  %v4092_v31 = vld [vmem:[%s14706_s2 + $0x88] sm:$0xff]  ;;  %v10830_v61 = vld [vmem:[%s14709_s5 + $0xc0] sm:$0xff]  }
 0x240   : > { %v4057_v10 = vmax.f32 %v4021_v21, 0.0  ;;  %v4019_v34 = vadd.f32 %v12602_v4, %v3976_v35  ;;  %v4022_v41 = vadd.f32 %v12602_v4, %v3979_v28  ;;  %v4865_v48 = vshll.u32 %v12782_v55, 16  ;;  %10332 = vmatprep.subr.bf16.mxu0 %v10824_v36  ;;  %v12894_v3 = vpop.f32.mrf.mxu0 }
 0x241   : > { %v4384_v30 = vsel %vm12720_vm13, %v4375_v46, %v12866_v42  ;;  %v4385_v60 = vrot.slane %v12866_v42, 4  ;;  %v9209_v12 = vpack.c.bf16 %v4126_v17, %v4126_v17  ;;  %v9207_v33 = vpack.c.bf16 %v4124_v24, %v4124_v24 }
 0x242   : > { %4667 = vst [vmem:[#allocation2 + $0x38] sm:$0xf] %v4384_v30  ;;  %v4129_v14 = vmul.f32 %v4093_v52, %v4057_v10  ;;  %v4055_v22 = vmax.f32 %v4019_v34, 0.0  ;;  %v4058_v57 = vmax.f32 %v4022_v41, 0.0  ;;  %v4020_v50 = vadd.f32 %v12602_v4, %v3977_v18  ;;  %10333 = vmatpush3.bf16.msra.mxu0 %v10824_v36 }
 0x243   : > { %v4407_v20 = vshrl.u32 %v9209_v12, 16  ;;  %v4410_v46 = vshll.u32 %v9209_v12, 16  ;;  %v4387_v1 = vshrl.u32 %v9207_v33, 16  ;;  %v4390_v62 = vshll.u32 %v9207_v33, 16  ;;  %10334 = vmatprep.subr.bf16.mxu0 %v10827_v15 }
 0x244   : > { %v9212_v2 = vpack.c.bf16 %v4129_v14, %v4129_v14  ;;  %v4127_v27 = vmul.f32 %v4091_v59, %v4055_v22  ;;  %v4130_v51 = vmul.f32 %v4094_v5, %v4058_v57  ;;  %v4056_v25 = vmax.f32 %v4020_v50, 0.0  ;;  %v12896_v63 = vld [vmem:[#allocation2 + $0x28] sm:$0xff]   ;;  %v3900_v5 = vpop.f32.mrf.mxu0 }
 0x245   : > { %v4409_v53 = vrot.slane %v4407_v20, 6  ;;  %v4412_v21 = vrot.slane %v4410_v46, 7  ;;  %v4389_v52 = vrot.slane %v4387_v1, 6  ;;  %v4392_v35 = vrot.slane %v4390_v62, 7  ;;  %10243 = vmatmul.mubr.bf16.gmra.mxu0 %v12896_v63 }
 0x246   : > { %v4437_v28 = vshrl.u32 %v9212_v2, 16  ;;  %v4440_v42 = vshll.u32 %v9212_v2, 16  ;;  %v9210_v36 = vpack.c.bf16 %v4127_v27, %v4127_v27  ;;  %v9213_v17 = vpack.c.bf16 %v4130_v51, %v4130_v51  ;;  %v12899_v24 = vld [vmem:[#allocation2 + $0x30] sm:$0xff]   ;;  %10335 = vmatpush3.bf16.msra.mxu0 %v10827_v15 }
 0x247   : > { %v4413_v18 = vor.u32 %v4412_v21, %v4409_v53  ;;  %v4393_v10 = vor.u32 %v4392_v35, %v4389_v52  ;;  %v4128_v34 = vmul.f32 %v4092_v31, %v4056_v25  ;;  %v4867_v41 = vrot.slane %v4865_v48, 1  ;;  %10246 = vmatprep.mubr.bf16.mxu0 %v12899_v24  ;;  %10336 = vmatprep.subr.bf16.mxu0 %v10830_v61  ;;  %v10156_v25 = vpop.f32.mrf.mxu0 }
 0x248   : > { %v4439_v30 = vrot.slane %v4437_v28, 6  ;;  %v4442_v12 = vrot.slane %v4440_v42, 7  ;;  %v4417_v33 = vshrl.u32 %v9210_v36, 16  ;;  %v4420_v59 = vshll.u32 %v9210_v36, 16 }
 0x249   : > { %v4414_v14 = vsel %vm12720_vm13, %v4405_v40, %v4413_v18  ;;  %v4415_v22 = vrot.slane %v4413_v18, 4  ;;  %v4394_v57 = vsel %vm12720_vm13, %v4385_v60, %v4393_v10  ;;  %v4395_v50 = vrot.slane %v4393_v10, 4  ;;  %v4097_v18 = vld [vmem:[%s14706_s2 + $0xb0] sm:$0xff] }
 0x24a   : > { %4670 = vst [vmem:[#allocation2 + $0x44] sm:$0xf] %v4414_v14  ;;  %4668 = vst [vmem:[#allocation2 + $0x3c] sm:$0xf] %v4394_v57  ;;  %v12908_v48 = vor.u32 %v4442_v12, %v4439_v30  ;;  %v4419_v15 = vrot.slane %v4417_v33, 6  ;;  %v4422_v20 = vrot.slane %v4420_v59, 7  ;;  %v9211_v31 = vpack.c.bf16 %v4128_v34, %v4128_v34  ;;  %10337 = vmatpush3.bf16.msra.mxu0 %v10830_v61 }
 0x24b   : > { %v4447_v46 = vshrl.u32 %v9213_v17, 16  ;;  %v4404_v1 = vsel %vm12720_vm13, %v4395_v50, %v12835_v32  ;;  %v4450_v62 = vshll.u32 %v9213_v17, 16  ;;  %v4868_v40 = vsel %vm479_vm0, %v12544_v26, %v4867_v41  ;;  %v4095_v14 = vld [vmem:[%s14706_s2 + $0xa0] sm:$0xff] }
 0x24c   : > { %4669 = vst [vmem:[#allocation2 + $0x40] sm:$0xf] %v4404_v1  ;;  %v4445_v60 = vrot.slane %v12908_v48, 4  ;;  %v4423_v2 = vor.u32 %v4422_v20, %v4419_v15  ;;  %v4869_v51 = vshrl.u32 %v12782_v55, 16  ;;  %10182 = vmatprep.mubr.bf16.mxu1 %v4868_v40  ;;  %v4427_v21 = vshrl.u32 %v9211_v31, 16  ;;  %v4096_v20 = vld [vmem:[%s14706_s2 + $0xa8] sm:$0xff] }
 0x24d   : > { %v4449_v27 = vrot.slane %v4447_v46, 6  ;;  %v4452_v53 = vrot.slane %v4450_v62, 7  ;;  %v4430_v52 = vshll.u32 %v9211_v31, 16  ;;  %v3982_v32 = vadd.f32 %v12846_v23, %v12633_v9  ;;  %v10913_v31 = vld [vmem:[%s14709_s5 + $0xb8] sm:$0xff]  }
 0x24e   : > { %v4424_v35 = vsel %vm12720_vm13, %v4415_v22, %v4423_v2  ;;  %v4425_v26 = vrot.slane %v4423_v2, 4  ;;  %v4871_v61 = vor.u32 %v4869_v51, %v4867_v41  ;;  %v4873_v28 = vshll.u32 %v12788_v45, 16  ;;  %v12933_v41 = vpop.f32.mrf.mxu0 }
 0x24f   : > { %4671 = vst [vmem:[#allocation2 + $0x48] sm:$0xf] %v4424_v35  ;;  %v12922_v42 = vor.u32 %v4452_v53, %v4449_v27  ;;  %v4429_v36 = vrot.slane %v4427_v21, 6  ;;  %v4432_v55 = vrot.slane %v4430_v52, 7  ;;  %v4025_v17 = vadd.f32 %v12602_v4, %v3982_v32  ;;  %v10806_v52 = vld [vmem:[%s14709_s5 + $0xa8] sm:$0xff]   ;;  %v12979_v32 = vld [vmem:[%s14709_s5 + $0x178] sm:$0xff]  }
 0x250   : > { %v4875_v10 = vrot.slane %v4873_v28, 1  ;;  %v3980_v9 = vadd.f32 %v12872_v47, %v12638_v7  ;;  %v3983_v23 = vadd.f32 %v12894_v3, %v12642_v8  ;;  %v3981_v34 = vadd.f32 %v3900_v5, %v12645_v44  ;;  %v4098_v7 = vld [vmem:[%s14706_s2 + $0xb8] sm:$0xff]  ;;  %v10803_v8 = vld [vmem:[%s14709_s5 + $0xb0] sm:$0xff]   ;;  %v12967_v27 = vpop.f32.mrf.mxu0  ;;  %10426 = vmatprep.subr.bf16.mxu0 %v12979_v32 }
 0x251   : > { %v4454_v30 = vsel %vm12720_vm13, %v4445_v60, %v12922_v42  ;;  %v4455_v12 = vrot.slane %v12922_v42, 4  ;;  %v4433_v33 = vor.u32 %v4432_v55, %v4429_v36  ;;  %v4061_v59 = vmax.f32 %v4025_v17, 0.0  ;;  %v12948_v44 = vld [vmem:[#allocation2 + $0x38] sm:$0xff]  }
 0x252   : > { %4674 = vst [vmem:[#allocation2 + $0x54] sm:$0xf] %v4454_v30  ;;  %v4876_v47 = vsel %vm479_vm0, %v4871_v61, %v4875_v10  ;;  %v4023_v3 = vadd.f32 %v12602_v4, %v3980_v9  ;;  %v4026_v5 = vadd.f32 %v12602_v4, %v3983_v23  ;;  %v4024_v22 = vadd.f32 %v12602_v4, %v3981_v34  ;;  %v3916_v23 = vpop.f32.mrf.mxu0 }
 0x253   : > { %v4434_v57 = vsel %vm12720_vm13, %v4425_v26, %v4433_v33  ;;  %v4435_v50 = vrot.slane %v4433_v33, 4  ;;  %v4133_v15 = vmul.f32 %v4097_v18, %v4061_v59  ;;  %10183 = vmatmul.mubr.bf16.vlgmr.msra.gmra.mxu1 %v4876_v47  ;;  %v4877_v46 = vshrl.u32 %v12788_v45, 16  ;;  %10247 = vmatmul.mubr.bf16.gmra.mxu0 %v12948_v44  ;;  %v12961_v1 = vld [vmem:[#allocation2 + $0x40] sm:$0xff]  }
 0x254   : > { %4672 = vst [vmem:[#allocation2 + $0x4c] sm:$0xf] %v4434_v57  ;;  %v4059_v62 = vmax.f32 %v4023_v3, 0.0  ;;  %10271 = vmatpush3.bf16.msra.mxu1 %v10913_v31  ;;  %v4062_v40 = vmax.f32 %v4026_v5, 0.0  ;;  %v4060_v60 = vmax.f32 %v4024_v22, 0.0  ;;  %v4881_v2 = vshll.u32 %v12833_v6, 16  ;;  %10250 = vmatprep.mubr.bf16.mxu0 %v12961_v1  ;;  %v10160_v31 = vpop.f32.mrf.mxu0 }
 0x255   : > { %v4444_v45 = vsel %vm12720_vm13, %v4435_v50, %v12908_v48  ;;  %v9216_v51 = vpack.c.bf16 %v4133_v15, %v4133_v15  ;;  %v4879_v53 = vor.u32 %v4877_v46, %v4875_v10  ;;  %v3986_v21 = vadd.f32 %v10156_v25, %v12653_v56  ;;  %10272 = vmatprep.subr.bf16.mxu1 %v10803_v8  ;;  %v4101_v25 = vld [vmem:[%s14706_s2 + $0xd0] sm:$0xff]  ;;  %v10810_v59 = vld [vmem:[%s14709_s5 + $0xa0] sm:$0xff]   ;;  %v10814_v50 = vld [vmem:[%s14709_s5 + $0x98] sm:$0xff]  }
 0x256   : > { %4673 = vst [vmem:[#allocation2 + $0x50] sm:$0xf] %v4444_v45  ;;  %v4131_v35 = vmul.f32 %v4095_v14, %v4059_v62  ;;  %v4134_v26 = vmul.f32 %v4098_v7, %v4062_v40  ;;  %v4132_v61 = vmul.f32 %v4096_v20, %v4060_v60  ;;  %v4883_v28 = vrot.slane %v4881_v2, 1 }
 0x257   : > { %v4477_v48 = vshrl.u32 %v9216_v51, 16  ;;  %v4480_v36 = vshll.u32 %v9216_v51, 16  ;;  %v4029_v56 = vadd.f32 %v12602_v4, %v3986_v21  ;;  %v4885_v55 = vshrl.u32 %v12833_v6, 16 }
 0x258   : > { %v9214_v17 = vpack.c.bf16 %v4131_v35, %v4131_v35  ;;  %v9217_v18 = vpack.c.bf16 %v4134_v26, %v4134_v26  ;;  %v9215_v10 = vpack.c.bf16 %v4132_v61, %v4132_v61  ;;  %v4884_v9 = vsel %vm479_vm0, %v4879_v53, %v4883_v28  ;;  %10273 = vmatpush3.bf16.msra.mxu1 %v10803_v8 }
 0x259   : > { %v4479_v34 = vrot.slane %v4477_v48, 6  ;;  %v4482_v30 = vrot.slane %v4480_v36, 7  ;;  %10186 = vmatprep.mubr.bf16.mxu1 %v4884_v9  ;;  %v4065_v33 = vmax.f32 %v4029_v56, 0.0  ;;  %v4887_v4 = vor.u32 %v4885_v55, %v4883_v28  ;;  %10274 = vmatprep.subr.bf16.mxu1 %v10806_v52 }
 0x25a   : > { %v4457_v6 = vshrl.u32 %v9214_v17, 16  ;;  %v4460_v14 = vshll.u32 %v9214_v17, 16  ;;  %v4487_v7 = vshrl.u32 %v9217_v18, 16  ;;  %v4490_v47 = vshll.u32 %v9217_v18, 16 }
 0x25b   : > { %v4483_v3 = vor.u32 %v4482_v30, %v4479_v34  ;;  %v4467_v5 = vshrl.u32 %v9215_v10, 16  ;;  %v4470_v22 = vshll.u32 %v9215_v10, 16  ;;  %v4137_v57 = vmul.f32 %v4101_v25, %v4065_v33  ;;  %v12992_v8 = vld [vmem:[#allocation2 + $0x48] sm:$0xff]   ;;  %v10819_v34 = vld [vmem:[%s14709_s5 + $0x90] sm:$0xff]  }
 0x25c   : > { %v4459_v15 = vrot.slane %v4457_v6, 6  ;;  %v4462_v20 = vrot.slane %v4460_v14, 7  ;;  %v4489_v46 = vrot.slane %v4487_v7, 6  ;;  %v4492_v62 = vrot.slane %v4490_v47, 7  ;;  %10275 = vmatpush3.bf16.msra.mxu1 %v10806_v52  ;;  %10251 = vmatmul.mubr.bf16.gmra.mxu0 %v12992_v8  ;;  %v4099_v6 = vld [vmem:[%s14706_s2 + $0xc0] sm:$0xff] }
 0x25d   : > { %v4485_v40 = vrot.slane %v4483_v3, 4  ;;  %v4469_v60 = vrot.slane %v4467_v5, 6  ;;  %v4472_v2 = vrot.slane %v4470_v22, 7  ;;  %v9220_v45 = vpack.c.bf16 %v4137_v57, %v4137_v57  ;;  %v12998_v51 = vld [vmem:[#allocation2 + $0x50] sm:$0xff]   ;;  %10276 = vmatprep.subr.bf16.mxu1 %v10810_v59  ;;  %v4100_v22 = vld [vmem:[%s14706_s2 + $0xc8] sm:$0xff] }
 0x25e   : > { %v4463_v53 = vor.u32 %v4462_v20, %v4459_v15  ;;  %v13000_v21 = vor.u32 %v4492_v62, %v4489_v46  ;;  %v4889_v35 = vshll.u32 %v12849_v11, 16  ;;  %v3984_v26 = vadd.f32 %v12933_v41, %v12658_v39  ;;  %10254 = vmatprep.mubr.bf16.mxu0 %v12998_v51  ;;  %v3929_v41 = vpop.f32.mrf.mxu0 }
 0x25f   : > { %v4473_v61 = vor.u32 %v4472_v2, %v4469_v60  ;;  %v4517_v28 = vshrl.u32 %v9220_v45, 16  ;;  %v4520_v52 = vshll.u32 %v9220_v45, 16  ;;  %v3987_v48 = vadd.f32 %v12967_v27, %v12662_v13  ;;  %v10825_v60 = vld [vmem:[%s14709_s5 + $0x88] sm:$0xff]   ;;  %v4105_v45 = vld [vmem:[%s14706_s2 + $0xf0] sm:$0xff] }
 0x260   : > { %v4464_v36 = vsel %vm12720_vm13, %v4455_v12, %v4463_v53  ;;  %v4465_v56 = vrot.slane %v4463_v53, 4  ;;  %v4494_v25 = vsel %vm12720_vm13, %v4485_v40, %v13000_v21  ;;  %v4495_v39 = vrot.slane %v13000_v21, 4  ;;  %10277 = vmatpush3.bf16.msra.mxu1 %v10810_v59  ;;  %v13021_v12 = vld [vmem:[%s14708_s4] ss:$0 sm:$0xff]  ;;  %v10161_v5 = vpop.f32.mrf.mxu0  ;;  %v4106_v21 = vld [vmem:[%s14706_s2 + $0xf8] sm:$0xff] }
 0x261   : > { %4675 = vst [vmem:[#allocation2 + $0x58] sm:$0xf] %v4464_v36  ;;  %4678 = vst [vmem:[#allocation2 + $0x64] sm:$0xf] %v4494_v25  ;;  %v4475_v55 = vrot.slane %v4473_v61, 4  ;;  %v4519_v13 = vrot.slane %v4517_v28, 6  ;;  %10278 = vmatprep.subr.bf16.mxu1 %v10814_v50  ;;  %v4027_v18 = vadd.f32 %v13021_v12, %v3984_v26  ;;  %v4030_v10 = vadd.f32 %v13021_v12, %v3987_v48 }
 0x262   : > { %v4522_v27 = vrot.slane %v4520_v52, 7  ;;  %v4891_v17 = vrot.slane %v4889_v35, 1  ;;  %v4474_v42 = vsel %vm12720_vm13, %v4465_v56, %v4473_v61  ;;  %v3985_v9 = vadd.f32 %v3916_v23, %v12665_v0  ;;  %v4102_v0 = vld [vmem:[%s14706_s2 + $0xd8] sm:$0xff]  ;;  %v4103_v61 = vld [vmem:[%s14706_s2 + $0xe0] sm:$0xff]  ;;  %v3932_v56 = vpop.f32.mrf.mxu0 }
 0x263   : > { %v4484_v30 = vsel %vm12720_vm13, %v4475_v55, %v4483_v3  ;;  %4676 = vst [vmem:[#allocation2 + $0x5c] sm:$0xf] %v4474_v42  ;;  %v4893_v23 = vshrl.u32 %v12849_v11, 16  ;;  %v4063_v14 = vmax.f32 %v4027_v18, 0.0  ;;  %v4066_v7 = vmax.f32 %v4030_v10, 0.0 }
 0x264   : > { %v13031_v33 = vor.u32 %v4522_v27, %v4519_v13  ;;  %v4892_v59 = vsel %vm479_vm0, %v4887_v4, %v4891_v17  ;;  %4677 = vst [vmem:[#allocation2 + $0x60] sm:$0xf] %v4484_v30  ;;  %v4028_v47 = vadd.f32 %v13021_v12, %v3985_v9  ;;  %v4897_v3 = vshll.u32 %v12896_v63, 16  ;;  %10279 = vmatpush3.bf16.msra.mxu1 %v10814_v50 }
 0x265   : > { %10187 = vmatmul.mubr.bf16.gmra.mxu1 %v4892_v59  ;;  %v4895_v57 = vor.u32 %v4893_v23, %v4891_v17  ;;  %v3990_v15 = vadd.f32 %v10160_v31, %v12669_v49  ;;  %v4901_v11 = vshrl.u32 %v12896_v63, 16  ;;  %v4135_v20 = vmul.f32 %v4099_v6, %v4063_v14  ;;  %10280 = vmatprep.subr.bf16.mxu1 %v10819_v34 }
 0x266   : > { %v4525_v4 = vrot.slane %v13031_v33, 4  ;;  %v4138_v46 = vmul.f32 %v4102_v0, %v4066_v7  ;;  %v4064_v62 = vmax.f32 %v4028_v47, 0.0  ;;  %v4899_v40 = vrot.slane %v4897_v3, 1  ;;  %v10164_v7 = vpop.f32.mrf.mxu0 }
 0x267   : > { %v4033_v2 = vadd.f32 %v13021_v12, %v3990_v15  ;;  %v4905_v49 = vshll.u32 %v12899_v24, 16  ;;  %v3988_v63 = vadd.f32 %v3929_v41, %v12677_v16  ;;  %v3991_v50 = vadd.f32 %v10161_v5, %v12681_v43  ;;  %v10831_v16 = vld [vmem:[%s14709_s5 + $0x80] sm:$0xff]  }
 0x268   : > { %v9218_v31 = vpack.c.bf16 %v4135_v20, %v4135_v20  ;;  %v9221_v53 = vpack.c.bf16 %v4138_v46, %v4138_v46  ;;  %v4136_v35 = vmul.f32 %v4100_v22, %v4064_v62  ;;  %v4900_v26 = vsel %vm479_vm0, %v4895_v57, %v4899_v40  ;;  %10281 = vmatpush3.bf16.msra.mxu1 %v10819_v34  ;;  %v13084_v57 = vld [vmem:[%s14709_s5 + $0x138] sm:$0xff]  }
 0x269   : > { %10190 = vmatprep.mubr.bf16.mxu1 %v4900_v26  ;;  %v4069_v28 = vmax.f32 %v4033_v2, 0.0  ;;  %v4903_v52 = vor.u32 %v4901_v11, %v4899_v40  ;;  %v13063_v48 = vrot.slane %v4905_v49, 1  ;;  %v4031_v36 = vadd.f32 %v13021_v12, %v3988_v63  ;;  %10282 = vmatprep.subr.bf16.mxu1 %v10825_v60 }
 0x26a   : > { %v4497_v43 = vshrl.u32 %v9218_v31, 16  ;;  %v4500_v25 = vshll.u32 %v9218_v31, 16  ;;  %v4527_v41 = vshrl.u32 %v9221_v53, 16  ;;  %v4530_v55 = vshll.u32 %v9221_v53, 16  ;;  %v13071_v18 = vld [vmem:[#allocation2 + $0x58] sm:$0xff]  }
 0x26b   : > { %v9219_v13 = vpack.c.bf16 %v4136_v35, %v4136_v35  ;;  %v4141_v27 = vmul.f32 %v4105_v45, %v4069_v28  ;;  %v4908_v17 = vsel %vm479_vm0, %v4903_v52, %v13063_v48  ;;  %v4067_v42 = vmax.f32 %v4031_v36, 0.0  ;;  %v13073_v10 = vld [vmem:[#allocation2 + $0x60] sm:$0xff]   ;;  %10255 = vmatmul.mubr.bf16.gmra.mxu0 %v13071_v18  ;;  %v4104_v52 = vld [vmem:[%s14706_s2 + $0xe8] sm:$0xff] }
 0x26c   : > { %v4499_v9 = vrot.slane %v4497_v43, 6  ;;  %v4502_v34 = vrot.slane %v4500_v25, 7  ;;  %v4529_v30 = vrot.slane %v4527_v41, 6  ;;  %v4532_v59 = vrot.slane %v4530_v55, 7  ;;  %10283 = vmatpush3.bf16.msra.mxu1 %v10825_v60  ;;  %10258 = vmatprep.mubr.bf16.mxu0 %v13073_v10 }
 0x26d   : > { %10191 = vmatmul.mubr.bf16.gmra.mxu1 %v4908_v17  ;;  %v4507_v6 = vshrl.u32 %v9219_v13, 16  ;;  %v4510_v0 = vshll.u32 %v9219_v13, 16  ;;  %v9224_v23 = vpack.c.bf16 %v4141_v27, %v4141_v27  ;;  %v4139_v14 = vmul.f32 %v4103_v61, %v4067_v42  ;;  %10284 = vmatprep.subr.bf16.mxu1 %v10831_v16 }
 0x26e   : > { %v4503_v47 = vor.u32 %v4502_v34, %v4499_v9  ;;  %v13076_v3 = vor.u32 %v4532_v59, %v4529_v30  ;;  %v4034_v5 = vadd.f32 %v13021_v12, %v3991_v50  ;;  %v3989_v22 = vadd.f32 %v3932_v56, %v12684_v29 }
 0x26f   : > { %v4509_v15 = vrot.slane %v4507_v6, 6  ;;  %v4512_v11 = vrot.slane %v4510_v0, 7  ;;  %v4557_v20 = vshrl.u32 %v9224_v23, 16  ;;  %v4560_v46 = vshll.u32 %v9224_v23, 16 }
 0x270   : > { %v4504_v62 = vsel %vm12720_vm13, %v4495_v39, %v4503_v47  ;;  %v4505_v40 = vrot.slane %v4503_v47, 4  ;;  %v4534_v29 = vsel %vm12720_vm13, %v4525_v4, %v13076_v3  ;;  %v4535_v60 = vrot.slane %v13076_v3, 4  ;;  %v3945_v39 = vpop.f32.mrf.mxu0  ;;  %10285 = vmatpush3.bf16.msra.mxu1 %v10831_v16  ;;  %v4109_v47 = vld [vmem:[%s14706_s2 + $0x110] sm:$0xff] }
 0x271   : > { %4679 = vst [vmem:[#allocation2 + $0x68] sm:$0xf] %v4504_v62  ;;  %4682 = vst [vmem:[#allocation2 + $0x74] sm:$0xf] %v4534_v29  ;;  %v4513_v2 = vor.u32 %v4512_v11, %v4509_v15  ;;  %v4559_v45 = vrot.slane %v4557_v20, 6  ;;  %v4562_v49 = vrot.slane %v4560_v46, 7  ;;  %v9222_v63 = vpack.c.bf16 %v4139_v14, %v4139_v14  ;;  %10374 = vmatprep.subr.bf16.mxu1 %v13084_v57 }
 0x272   : > { %v4070_v50 = vmax.f32 %v4034_v5, 0.0  ;;  %v4032_v31 = vadd.f32 %v13021_v12, %v3989_v22  ;;  %v4909_v53 = vshrl.u32 %v12899_v24, 16  ;;  %v4913_v4 = vshll.u32 %v12948_v44, 16  ;;  %v10165_v13 = vpop.f32.mrf.mxu0  ;;  %v4107_v20 = vld [vmem:[%s14706_s2 + $0x100] sm:$0xff] }
 0x273   : > { %v4514_v35 = vsel %vm12720_vm13, %v4505_v40, %v4513_v2  ;;  %v4515_v26 = vrot.slane %v4513_v2, 4  ;;  %v13105_v61 = vor.u32 %v4562_v49, %v4559_v45  ;;  %v4537_v28 = vshrl.u32 %v9222_v63, 16 }
 0x274   : > { %4680 = vst [vmem:[#allocation2 + $0x6c] sm:$0xf] %v4514_v35  ;;  %v4540_v36 = vshll.u32 %v9222_v63, 16  ;;  %v4142_v56 = vmul.f32 %v4106_v21, %v4070_v50  ;;  %v4068_v16 = vmax.f32 %v4032_v31, 0.0  ;;  %v4911_v24 = vor.u32 %v4909_v53, %v13063_v48  ;;  %v3948_v5 = vpop.f32.mrf.mxu0 }
 0x275   : > { %v4524_v43 = vsel %vm12720_vm13, %v4515_v26, %v13031_v33  ;;  %v4565_v25 = vrot.slane %v13105_v61, 4  ;;  %v4539_v41 = vrot.slane %v4537_v28, 6  ;;  %v4915_v55 = vrot.slane %v4913_v4, 1 }
 0x276   : > { %4681 = vst [vmem:[#allocation2 + $0x70] sm:$0xf] %v4524_v43  ;;  %v4542_v27 = vrot.slane %v4540_v36, 7  ;;  %v9225_v17 = vpack.c.bf16 %v4142_v56, %v4142_v56  ;;  %v4140_v42 = vmul.f32 %v4104_v52, %v4068_v16  ;;  %v3994_v9 = vadd.f32 %v10164_v7, %v12693_v19 }
 0x277   : > { %v4916_v34 = vsel %vm479_vm0, %v4911_v24, %v4915_v55  ;;  %v4917_v30 = vshrl.u32 %v12948_v44, 16  ;;  %v4921_v48 = vshll.u32 %v12961_v1, 16  ;;  %v3992_v59 = vadd.f32 %v3945_v39, %v12696_v58 }
 0x278   : > { %v4543_v33 = vor.u32 %v4542_v27, %v4539_v41  ;;  %v4567_v6 = vshrl.u32 %v9225_v17, 16  ;;  %v4570_v0 = vshll.u32 %v9225_v17, 16  ;;  %v9223_v23 = vpack.c.bf16 %v4140_v42, %v4140_v42  ;;  %10194 = vmatprep.mubr.bf16.mxu1 %v4916_v34  ;;  %v4108_v17 = vld [vmem:[%s14706_s2 + $0x108] sm:$0xff] }
 0x279   : > { %v4037_v14 = vadd.f32 %v13021_v12, %v3994_v9  ;;  %v4919_v19 = vor.u32 %v4917_v30, %v4915_v55  ;;  %v4923_v7 = vrot.slane %v4921_v48, 1  ;;  %v4035_v3 = vadd.f32 %v13021_v12, %v3992_v59 }
 0x27a   : > { %v4544_v22 = vsel %vm12720_vm13, %v4535_v60, %v4543_v33  ;;  %v4545_v58 = vrot.slane %v4543_v33, 4  ;;  %v4569_v15 = vrot.slane %v4567_v6, 6  ;;  %v4572_v11 = vrot.slane %v4570_v0, 7 }
 0x27b   : > { %4683 = vst [vmem:[#allocation2 + $0x78] sm:$0xf] %v4544_v22  ;;  %v4547_v46 = vshrl.u32 %v9223_v23, 16  ;;  %v4550_v62 = vshll.u32 %v9223_v23, 16  ;;  %v4073_v40 = vmax.f32 %v4037_v14, 0.0  ;;  %v4924_v29 = vsel %vm479_vm0, %v4919_v19, %v4923_v7  ;;  %v13131_v2 = vld [vmem:[#allocation2 + $0x68] sm:$0xff]  }
 0x27c   : > { %v4573_v45 = vor.u32 %v4572_v11, %v4569_v15  ;;  %10195 = vmatmul.mubr.bf16.gmra.mxu1 %v4924_v29  ;;  %v4071_v49 = vmax.f32 %v4035_v3, 0.0  ;;  %v3995_v60 = vadd.f32 %v10165_v13, %v12699_v37  ;;  %v3993_v63 = vadd.f32 %v3948_v5, %v12705_v54  ;;  %10259 = vmatmul.mubr.bf16.gmra.mxu0 %v13131_v2  ;;  %v4110_v54 = vld [vmem:[%s14706_s2 + $0x118] sm:$0xff] }
 0x27d   : > { %v4549_v21 = vrot.slane %v4547_v46, 6  ;;  %v4552_v39 = vrot.slane %v4550_v62, 7  ;;  %v4145_v50 = vmul.f32 %v4109_v47, %v4073_v40  ;;  %v4925_v31 = vshrl.u32 %v12961_v1, 16  ;;  %v13137_v53 = vld [vmem:[#allocation2 + $0x70] sm:$0xff]  }
 0x27e   : > { %v4574_v4 = vsel %vm12720_vm13, %v4565_v25, %v4573_v45  ;;  %v4575_v35 = vrot.slane %v4573_v45, 4  ;;  %v4143_v26 = vmul.f32 %v4107_v20, %v4071_v49  ;;  %v4038_v28 = vadd.f32 %v13021_v12, %v3995_v60  ;;  %10262 = vmatprep.mubr.bf16.mxu0 %v13137_v53  ;;  %v4691_v45 = vld [vmem:[#allocation2 + $0x98] sm:$0x3] }
 0x27f   : > { %4686 = vst [vmem:[#allocation2 + $0x84] sm:$0xf] %v4574_v4  ;;  %v4553_v37 = vor.u32 %v4552_v39, %v4549_v21  ;;  %v9228_v52 = vpack.c.bf16 %v4145_v50, %v4145_v50  ;;  %v4036_v36 = vadd.f32 %v13021_v12, %v3993_v63  ;;  %v4927_v56 = vor.u32 %v4925_v31, %v4923_v7 }
 0x280   : > { %v9226_v16 = vpack.c.bf16 %v4143_v26, %v4143_v26  ;;  %v4074_v24 = vmax.f32 %v4038_v28, 0.0  ;;  %v4929_v43 = vshll.u32 %v12992_v8, 16  ;;  %v4933_v25 = vshrl.u32 %v12992_v8, 16 }
 0x281   : > { %v4554_v41 = vsel %vm12720_vm13, %v4545_v58, %v4553_v37  ;;  %v4555_v55 = vrot.slane %v4553_v37, 4  ;;  %v4597_v13 = vshrl.u32 %v9228_v52, 16  ;;  %v4600_v27 = vshll.u32 %v9228_v52, 16 }
 0x282   : > { %4684 = vst [vmem:[#allocation2 + $0x7c] sm:$0xf] %v4554_v41  ;;  %v4577_v12 = vshrl.u32 %v9226_v16, 16  ;;  %v4580_v42 = vshll.u32 %v9226_v16, 16  ;;  %v4146_v9 = vmul.f32 %v4110_v54, %v4074_v24  ;;  %v4072_v34 = vmax.f32 %v4036_v36, 0.0 }
 0x283   : > { %v4564_v30 = vsel %vm12720_vm13, %v4555_v55, %v13105_v61  ;;  %v4599_v48 = vrot.slane %v4597_v13, 6  ;;  %v4602_v59 = vrot.slane %v4600_v27, 7  ;;  %v4931_v33 = vrot.slane %v4929_v43, 1 }
 0x284   : > { %4685 = vst [vmem:[#allocation2 + $0x80] sm:$0xf] %v4564_v30  ;;  %v4579_v6 = vrot.slane %v4577_v12, 6  ;;  %v4582_v0 = vrot.slane %v4580_v42, 7  ;;  %v9229_v23 = vpack.c.bf16 %v4146_v9, %v4146_v9  ;;  %v4144_v14 = vmul.f32 %v4108_v17, %v4072_v34  ;;  %v13181_v12 = vld [vmem:[#allocation2 + $0xc] sm:$0xf] }
 0x285   : > { %v4603_v47 = vor.u32 %v4602_v59, %v4599_v48  ;;  %v4932_v19 = vsel %vm479_vm0, %v4927_v56, %v4931_v33  ;;  %v4935_v7 = vor.u32 %v4933_v25, %v4931_v33  ;;  %v4937_v3 = vshll.u32 %v12998_v51, 16  ;;  %v5491_v42 = vld [vmem:[#allocation2] sm:$0xe]  ;;  %v5828_v59 = vld [vmem:[#allocation2 + $0x8] sm:$0xe] }
 0x286   : > { %v4583_v5 = vor.u32 %v4582_v0, %v4579_v6  ;;  %v4607_v22 = vshrl.u32 %v9229_v23, 16  ;;  %v4610_v58 = vshll.u32 %v9229_v23, 16  ;;  %v9227_v15 = vpack.c.bf16 %v4144_v14, %v4144_v14  ;;  %10198 = vmatprep.mubr.bf16.mxu1 %v4932_v19 }
 0x287   : > { %v4939_v61 = vrot.slane %v4937_v3, 1  ;;  %v4941_v11 = vshrl.u32 %v12998_v51, 16  ;;  %v4945_v20 = vshll.u32 %v13071_v18, 16  ;;  %v4605_v46 = vrot.slane %v4603_v47, 4  ;;  %v13194_v3 = vld [vmem:[#allocation2 + $0x10] sm:$0xff]  }
 0x288   : > { %v4584_v62 = vsel %vm12720_vm13, %v4575_v35, %v4583_v5  ;;  %v4609_v40 = vrot.slane %v4607_v22, 6  ;;  %v4612_v29 = vrot.slane %v4610_v58, 7  ;;  %v4587_v49 = vshrl.u32 %v9227_v15, 16 }
 0x289   : > { %4687 = vst [vmem:[#allocation2 + $0x88] sm:$0xf] %v4584_v62  ;;  %v4590_v60 = vshll.u32 %v9227_v15, 16  ;;  %v4940_v63 = vsel %vm479_vm0, %v4935_v7, %v4939_v61  ;;  %v4943_v21 = vor.u32 %v4941_v11, %v4939_v61  ;;  %v13164_v39 = vld [vmem:[#allocation2 + $0x78] sm:$0xff]   ;;  %v4947_v51 = vrot.slane %v4945_v20, 1  ;;  %v13200_v11 = vld [vmem:[#allocation2 + $0x20] sm:$0xff]  }
 0x28a   : > { %v4613_v50 = vor.u32 %v4612_v29, %v4609_v40  ;;  %10199 = vmatmul.mubr.bf16.gmra.mxu1 %v4940_v63  ;;  %v4949_v31 = vshrl.u32 %v13071_v18, 16  ;;  %v4953_v4 = vshll.u32 %v13073_v10, 16  ;;  %v4585_v26 = vrot.slane %v4583_v5, 4  ;;  %10263 = vmatmul.mubr.bf16.gmra.mxu0 %v13164_v39  ;;  %v10915_v5 = vld [vmem:[#allocation2 + $0x4] sm:$0xf]  ;;  %v13202_v20 = vld [vmem:[#allocation2 + $0x28] sm:$0xff]  }
 0x28b   : > { %v4589_v35 = vrot.slane %v4587_v49, 6  ;;  %v4592_v28 = vrot.slane %v4590_v60, 7  ;;  %v4961_v37 = vshll.u32 %v13131_v2, 16  ;;  %v4948_v36 = vsel %vm479_vm0, %v4943_v21, %v4947_v51  ;;  %v13173_v16 = vld [vmem:[#allocation2 + $0x80] sm:$0xff]   ;;  %v10916_v49 = vld [vmem:[#allocation2 + $0x8] sm:$0xff]   ;;  %v13206_v63 = vld [vmem:[#allocation2 + $0x30] sm:$0xff]  }
 0x28c   : > { %v4614_v52 = vsel %vm12720_vm13, %v4605_v46, %v4613_v50  ;;  %v4615_v54 = vrot.slane %v4613_v50, 4  ;;  %v4951_v56 = vor.u32 %v4949_v31, %v4947_v51  ;;  %10202 = vmatprep.mubr.bf16.mxu1 %v4948_v36  ;;  %v4955_v43 = vrot.slane %v4953_v4, 1  ;;  %10266 = vmatprep.mubr.bf16.mxu0 %v13173_v16  ;;  %v13208_v21 = vld [vmem:[#allocation2 + $0x38] sm:$0xff]  }
 0x28d   : > { %4690 = vst [vmem:[#allocation2 + $0x94] sm:$0xf] %v4614_v52  ;;  %v4593_v24 = vor.u32 %v4592_v28, %v4589_v35  ;;  %v4957_v25 = vshrl.u32 %v13073_v10, 16  ;;  %v4963_v41 = vrot.slane %v4961_v37, 1  ;;  %v4969_v27 = vshll.u32 %v13137_v53, 16  ;;  %v13216_v35 = vld [vmem:[#allocation2 + $0x40] sm:$0xff]  }
 0x28e   : > { %v4692_v13 = vsel %vm12217_vm8, %v4615_v54, %v4691_v45  ;;  %v4977_v17 = vshll.u32 %v13164_v39, 16  ;;  %v4956_v30 = vsel %vm479_vm0, %v4951_v56, %v4955_v43  ;;  %v4965_v33 = vshrl.u32 %v13131_v2, 16  ;;  %v10917_v37 = vld [vmem:[#allocation2 + $0x10] sm:$0xff]   ;;  %v10918_v54 = vld [vmem:[#allocation2 + $0x18] sm:$0xff]  }
 0x28f   : > { %4693 = vst [vmem:[#allocation2 + $0x98] sm:$0x3] %v4692_v13  ;;  %v4594_v9 = vsel %vm12720_vm13, %v4585_v26, %v4593_v24  ;;  %v4595_v34 = vrot.slane %v4593_v24, 4  ;;  %v4959_v48 = vor.u32 %v4957_v25, %v4955_v43  ;;  %v4971_v6 = vrot.slane %v4969_v27, 1 }
 0x290   : > { %4688 = vst [vmem:[#allocation2 + $0x8c] sm:$0xf] %v4594_v9  ;;  %v4979_v0 = vrot.slane %v4977_v17, 1  ;;  %v4985_v19 = vshll.u32 %v13173_v16, 16  ;;  %v13192_v7 = vcombine.low %v5828_v59, %v13181_v12  ;;  %v8996_v22 = vcombine.low %v5491_v42, %v10915_v5  ;;  %v10919_v17 = vld [vmem:[#allocation2 + $0x20] sm:$0xff]  }
 0x291   : > { %v4604_v23 = vsel %vm12720_vm13, %v4595_v34, %v4603_v47  ;;  %v4964_v14 = vsel %vm479_vm0, %v4959_v48, %v4963_v41  ;;  %v4973_v58 = vshrl.u32 %v13137_v53, 16  ;;  %v4967_v15 = vor.u32 %v4965_v33, %v4963_v41  ;;  %v13198_v47 = vld [vmem:[#allocation2 + $0x18] sm:$0xff]   ;;  %v10920_v34 = vld [vmem:[#allocation2 + $0x28] sm:$0xff]  }
 0x292   : > { %4689 = vst [vmem:[#allocation2 + $0x90] sm:$0xf] %v4604_v23  ;;  %10203 = vmatmul.mubr.bf16.gmra.mxu1 %v4956_v30  ;;  %v4981_v38 = vshrl.u32 %v13164_v39, 16  ;;  %v4987_v62 = vrot.slane %v4985_v19, 1  ;;  %v5975_v40 = vrot.slane %v13192_v7, 1  ;;  %v5976_v29 = vrot.slane %v13194_v3, 1 }
 0x293   : > { %10206 = vmatprep.mubr.bf16.mxu1 %v4964_v14  ;;  %v4975_v61 = vor.u32 %v4973_v58, %v4971_v6  ;;  %v5512_v45 = vrot.slane %v8996_v22, 1  ;;  %v5513_v60 = vrot.slane %v10916_v49, 1  ;;  %v4972_v50 = vsel %vm479_vm0, %v4967_v15, %v4971_v6  ;;  %v13233_v33 = vld [vmem:[#allocation2 + $0x48] sm:$0xff]   ;;  %v13241_v19 = vld [vmem:[#allocation2 + $0x50] sm:$0xff]  }
 0x294   : > { %v4983_v46 = vor.u32 %v4981_v38, %v4979_v0  ;;  %v4989_v4 = vshrl.u32 %v13173_v16, 16  ;;  %v5978_v26 = vrot.slane %v13198_v47, 1  ;;  %v5980_v28 = vrot.slane %v13200_v11, 1  ;;  %v13235_v6 = vld [vmem:[#allocation2 + $0x8] sm:$0xc] }
 0x295   : > { %v4980_v51 = vsel %vm479_vm0, %v4975_v61, %v4979_v0  ;;  %v5515_v52 = vrot.slane %v10917_v37, 1  ;;  %v5517_v36 = vrot.slane %v10918_v54, 1  ;;  %v5982_v56 = vrot.slane %v13202_v20, 1  ;;  %v13251_v61 = vld [vmem:[#allocation2 + $0x58] sm:$0xff]   ;;  %v13275_v37 = vld [vmem:[#allocation2 + $0x68] sm:$0xff]  }
 0x296   : > { %v4988_v24 = vsel %vm479_vm0, %v4983_v46, %v4987_v62  ;;  %v5977_v43 = vsel %vm1135_vm1, %v5975_v40, %v5976_v29  ;;  %v4991_v55 = vor.u32 %v4989_v4, %v4987_v62  ;;  %v13227_v13 = vsel %vm1135_vm1, %v5512_v45, %v5513_v60  ;;  %v10921_v40 = vld [vmem:[#allocation2 + $0x30] sm:$0xff]  }
 0x297   : > { %v13212_v31 = vld [vmem:[#allocation2 + $0x88] sm:$0xff]   ;;  %v5984_v27 = vrot.slane %v13206_v63, 1  ;;  %v5519_v42 = vrot.slane %v10919_v17, 1  ;;  %v5979_v9 = vsel %vm1135_vm1, %v5976_v29, %v5978_v26  ;;  %v5521_v30 = vrot.slane %v10920_v34, 1 }
 0x298   : > { %10267 = vmatmul.mubr.bf16.gmra.mxu0 %v13212_v31  ;;  %v4993_v25 = vshll.u32 %v13212_v31, 16  ;;  %v5986_v48 = vrot.slane %v13208_v21, 1  ;;  %v5988_v59 = vrot.slane %v13216_v35, 1  ;;  %v5981_v23 = vsel %vm1135_vm1, %v5978_v26, %v5980_v28 }
 0x299   : > { %v13224_v41 = vld [vmem:[#allocation2 + $0x90] ss:$0 sps:$4 sm:$0x11]   ;;  %10338 = vmatprep.mubr.bf16.mxu0 %v5977_v43  ;;  %v13239_v14 = vsel %vm1135_vm1, %v5513_v60, %v5515_v52  ;;  %v9089_v5 = vcombine.low %v13235_v6, %v13181_v12  ;;  %v4997_v22 = vshrl.u32 %v13212_v31, 16  ;;  %v13248_v15 = vsel %vm1135_vm1, %v5515_v52, %v5517_v36 }
 0x29a   : > { %10207 = vmatmul.mubr.bf16.gmra.mxu1 %v4972_v50  ;;  %v4995_v0 = vrot.slane %v4993_v25, 1  ;;  %v5001_v58 = vshll.u32 %v13224_v41, 16  ;;  %v5983_v38 = vsel %vm1135_vm1, %v5980_v28, %v5982_v56  ;;  %v13254_v46 = vsel %vm1135_vm1, %v5982_v56, %v5984_v27  ;;  %v10851_v52 = vld [vmem:[%s14709_s5 + $0x170] sm:$0xff]  }
 0x29b   : > { %10210 = vmatprep.mubr.bf16.mxu1 %v4980_v51  ;;  %v13257_v62 = vsel %vm1135_vm1, %v5517_v36, %v5519_v42  ;;  %v5523_v29 = vrot.slane %v10921_v40, 1  ;;  %v5525_v12 = vrot.slane %v12948_v44, 1  ;;  %v13261_v45 = vsel %vm1135_vm1, %v5519_v42, %v5521_v30  ;;  %v13270_v51 = vld [vmem:[#allocation2 + $0x60] sm:$0xff]   ;;  %v13291_v42 = vld [vmem:[#allocation2 + $0x70] sm:$0xff]  }
 0x29c   : > { %v13264_v49 = vsel %vm1135_vm1, %v5984_v27, %v5986_v48  ;;  %v13267_v60 = vsel %vm1135_vm1, %v5986_v48, %v5988_v59  ;;  %v5990_v50 = vrot.slane %v13233_v33, 1  ;;  %v4996_v4 = vsel %vm479_vm0, %v4991_v55, %v4995_v0  ;;  %v10853_v48 = vld [vmem:[%s14709_s5 + $0x168] sm:$0xff]  }
 0x29d   : > { %v4999_v26 = vor.u32 %v4997_v22, %v4995_v0  ;;  %v5992_v28 = vrot.slane %v13241_v19, 1  ;;  %v14725_v44 = vrot.slane %v12961_v1, 1  ;;  %v5003_v54 = vrot.slane %v5001_v58, 1 }
 0x29e   : > { %v14724_v36 = vrot.slane %v13071_v18, 1  ;;  %v5535_v56 = vrot.slane %v13073_v10, 1  ;;  %v5537_v43 = vrot.slane %v13131_v2, 1  ;;  %v13284_v25 = vsel %vm1135_vm1, %v5521_v30, %v5523_v29 }
 0x29f   : > { %v13287_v55 = vsel %vm1135_vm1, %v5523_v29, %v5525_v12  ;;  %v5994_v17 = vrot.slane %v13251_v61, 1  ;;  %v5996_v10 = vrot.slane %v13270_v51, 1  ;;  %v13307_v34 = vsel %vm1135_vm1, %v5990_v50, %v5992_v28 }
 0x2a0   : > { %10339 = vmatmul.mubr.bf16.vlgmr.msra.gmra.mxu0 %v5979_v9  ;;  %v13294_v9 = vsel %vm1135_vm1, %v5988_v59, %v5990_v50  ;;  %v13301_v2 = vsel %vm1135_vm1, %v14724_v36, %v5535_v56  ;;  %v14726_v30 = vrot.slane %v13275_v37, 1  ;;  %v5541_v59 = vrot.slane %v13164_v39, 1 }
 0x2a1   : > { %10342 = vmatprep.mubr.bf16.mxu0 %v5981_v23  ;;  %10427 = vmatpush3.bf16.msra.mxu0 %v12979_v32  ;;  %v5539_v32 = vrot.slane %v13137_v53, 1  ;;  %v5004_v6 = vsel %vm479_vm0, %v4999_v26, %v5003_v54  ;;  %v13319_v0 = vsel %vm1135_vm1, %v5525_v12, %v14725_v44  ;;  %v5543_v23 = vrot.slane %v13173_v16, 1 }
 0x2a2   : > { %10211 = vmatmul.mubr.bf16.gmra.mxu1 %v4988_v24  ;;  %v13304_v24 = vsel %vm1135_vm1, %v5535_v56, %v5537_v43  ;;  %10428 = vmatprep.subr.bf16.mxu0 %v10851_v52  ;;  %v5545_v22 = vrot.slane %v13212_v31, 1  ;;  %v13324_v58 = vsel %vm1135_vm1, %v5992_v28, %v5994_v17  ;;  %v13334_v29 = vsel %vm1135_vm1, %v5994_v17, %v5996_v10 }
 0x2a3   : > { %10214 = vmatprep.mubr.bf16.mxu1 %v4996_v4  ;;  %v13328_v53 = vsel %vm1135_vm1, %v5537_v43, %v5539_v32  ;;  %v13331_v39 = vsel %vm1135_vm1, %v5539_v32, %v5541_v59  ;;  %v13337_v12 = vsel %vm1135_vm1, %v5541_v59, %v5543_v23  ;;  %v6782_v31 = vrot.slane %v9089_v5, 2  ;;  %v10856_v4 = vld [vmem:[%s14709_s5 + $0x160] sm:$0xff]  }
 0x2a4   : > { %v13340_v16 = vsel %vm1135_vm1, %v5543_v23, %v5545_v22  ;;  %v13345_v50 = vsel %vm1135_vm1, %v5996_v10, %v14726_v30  ;;  %v6783_v26 = vrot.slane %v13194_v3, 2  ;;  %v5547_v28 = vrot.slane %v13224_v41, 1 }
 0x2a5   : > { %10429 = vmatpush3.bf16.msra.mxu0 %v10851_v52  ;;  %v6313_v52 = vshrl.u32 %v13192_v7, 16  ;;  %v6316_v54 = vshll.u32 %v13192_v7, 16  ;;  %v6321_v5 = vshrl.u32 %v13194_v3, 16  ;;  %v6324_v56 = vshll.u32 %v13194_v3, 16 }
 0x2a6   : > { %10430 = vmatprep.subr.bf16.mxu0 %v10853_v48  ;;  %v6785_v43 = vrot.slane %v13198_v47, 2  ;;  %v13359_v17 = vsel %vm2407_vm3, %v6782_v31, %v6783_v26  ;;  %v13362_v10 = vsel %vm1135_vm1, %v5545_v22, %v5547_v28  ;;  %v6330_v23 = vshrl.u32 %v13198_v47, 16 }
 0x2a7   : > { %v6315_v41 = vrot.slane %v6313_v52, 1  ;;  %v6318_v7 = vrot.slane %v6316_v54, 2  ;;  %v6323_v32 = vrot.slane %v6321_v5, 1  ;;  %v6326_v3 = vrot.slane %v6324_v56, 2 }
 0x2a8   : > { %10343 = vmatmul.mubr.bf16.gmra.mxu0 %v5983_v38  ;;  %v6787_v38 = vrot.slane %v13200_v11, 2  ;;  %v13367_v59 = vsel %vm2407_vm3, %v6783_v26, %v6785_v43  ;;  %v6333_v22 = vshll.u32 %v13198_v47, 16  ;;  %v6342_v28 = vshll.u32 %v13200_v11, 16 }
 0x2a9   : > { %10346 = vmatprep.mubr.bf16.mxu0 %v13254_v46  ;;  %10431 = vmatpush3.bf16.msra.mxu0 %v10853_v48  ;;  %v10858_v46 = vld [vmem:[%s14709_s5 + $0x158] sm:$0xff]   ;;  %v6319_v48 = vor.u32 %v6318_v7, %v6315_v41  ;;  %v6327_v31 = vor.u32 %v6326_v3, %v6323_v32  ;;  %v6789_v26 = vrot.slane %v13202_v20, 2  ;;  %v6332_v52 = vrot.slane %v6330_v23, 1 }
 0x2aa   : > { %10215 = vmatmul.mubr.bf16.gmra.mxu1 %v5004_v6  ;;  %10432 = vmatprep.subr.bf16.mxu0 %v10856_v4  ;;  %v13373_v6 = vsel %vm2407_vm3, %v6785_v43, %v6787_v38  ;;  %v6335_v54 = vrot.slane %v6333_v22, 2  ;;  %v6791_v56 = vrot.slane %v13206_v63, 2  ;;  %v6344_v36 = vrot.slane %v6342_v28, 2 }
 0x2ab   : > { %10286 = vmatprep.mubr.bf16.mxu1 %v13227_v13  ;;  %v6339_v13 = vshrl.u32 %v13200_v11, 16  ;;  %v13382_v43 = vsel %vm1936_vm2, %v6319_v48, %v6327_v31  ;;  %v13385_v47 = vsel %vm2407_vm3, %v6787_v38, %v6789_v26  ;;  %v6348_v41 = vshrl.u32 %v13202_v20, 16  ;;  %v10839_v11 = vld [vmem:[%s14709_s5 + $0x130] sm:$0xff]  }
 0x2ac   : > { %v6336_v7 = vor.u32 %v6335_v54, %v6332_v52  ;;  %v13392_v32 = vsel %vm2407_vm3, %v6789_v26, %v6791_v56  ;;  %v6357_v3 = vshrl.u32 %v13206_v63, 16  ;;  %v10860_v38 = vld [vmem:[%s14709_s5 + $0x150] sm:$0xff]   ;;  %v6793_v48 = vrot.slane %v13208_v21, 2 }
 0x2ad   : > { %v6341_v5 = vrot.slane %v6339_v13, 1  ;;  %10433 = vmatpush3.bf16.msra.mxu0 %v10856_v4  ;;  %v6351_v4 = vshll.u32 %v13202_v20, 16  ;;  %v6350_v22 = vrot.slane %v6348_v41, 1  ;;  %v6360_v13 = vshll.u32 %v13206_v63, 16 }
 0x2ae   : > { %10434 = vmatprep.subr.bf16.mxu0 %v10858_v46  ;;  %v13405_v20 = vsel %vm1936_vm2, %v6327_v31, %v6336_v7  ;;  %v6359_v26 = vrot.slane %v6357_v3, 1  ;;  %v13414_v52 = vsel %vm2407_vm3, %v6791_v56, %v6793_v48  ;;  %v6375_v54 = vshrl.u32 %v13216_v35, 16 }
 0x2af   : > { %v6345_v23 = vor.u32 %v6344_v36, %v6341_v5  ;;  %v6353_v28 = vrot.slane %v6351_v4, 2  ;;  %v6362_v63 = vrot.slane %v6360_v13, 2  ;;  %v10863_v5 = vld [vmem:[%s14709_s5 + $0x148] sm:$0xff]   ;;  %v6797_v4 = vrot.slane %v13233_v33, 2 }
 0x2b0   : > { %10347 = vmatmul.mubr.bf16.gmra.mxu0 %v13264_v49  ;;  %v6795_v49 = vrot.slane %v13216_v35, 2  ;;  %v6432_v44 = vshll.u32 %v13291_v42, 16 }
 0x2b1   : > { %10350 = vmatprep.mubr.bf16.mxu0 %v13267_v60  ;;  %v13411_v36 = vsel %vm1936_vm2, %v6336_v7, %v6345_v23  ;;  %v10843_v60 = vld [vmem:[%s14709_s5 + $0x128] sm:$0xff]   ;;  %10435 = vmatpush3.bf16.msra.mxu0 %v10858_v46  ;;  %v6354_v31 = vor.u32 %v6353_v28, %v6350_v22  ;;  %v6363_v56 = vor.u32 %v6362_v63, %v6359_v26  ;;  %v6378_v7 = vshll.u32 %v13216_v35, 16  ;;  %v10846_v35 = vld [vmem:[%s14709_s5 + $0x120] sm:$0xff]  }
 0x2b2   : > { %10287 = vmatmul.mubr.bf16.vlgmr.msra.gmra.mxu1 %v13239_v14  ;;  %v6366_v14 = vshrl.u32 %v13208_v21, 16  ;;  %10436 = vmatprep.subr.bf16.mxu0 %v10860_v38  ;;  %v6377_v22 = vrot.slane %v6375_v54, 1  ;;  %v13438_v28 = vsel %vm2407_vm3, %v6795_v49, %v6797_v4  ;;  %v6384_v26 = vshrl.u32 %v13233_v33, 16 }
 0x2b3   : > { %10290 = vmatprep.mubr.bf16.mxu1 %v13248_v15  ;;  %10375 = vmatpush3.bf16.msra.mxu1 %v13084_v57  ;;  %v13421_v15 = vsel %vm2407_vm3, %v6793_v48, %v6795_v49  ;;  %v6369_v57 = vshll.u32 %v13208_v21, 16  ;;  %v13431_v46 = vsel %vm1936_vm2, %v6345_v23, %v6354_v31  ;;  %v6799_v21 = vrot.slane %v13241_v19, 2  ;;  %v10865_v49 = vld [vmem:[%s14709_s5 + $0x140] sm:$0xff]  }
 0x2b4   : > { %10376 = vmatprep.subr.bf16.mxu1 %v10839_v11  ;;  %v6368_v41 = vrot.slane %v6366_v14, 1  ;;  %v13435_v13 = vsel %vm1936_vm2, %v6354_v31, %v6363_v56  ;;  %v6380_v48 = vrot.slane %v6378_v7, 2  ;;  %v6393_v14 = vshrl.u32 %v13241_v19, 16 }
 0x2b5   : > { %v6371_v3 = vrot.slane %v6369_v57, 2  ;;  %10437 = vmatpush3.bf16.msra.mxu0 %v10860_v38  ;;  %v13445_v63 = vsel %vm2407_vm3, %v6797_v4, %v6799_v21  ;;  %v6386_v57 = vrot.slane %v6384_v26, 1  ;;  %v6396_v54 = vshll.u32 %v13241_v19, 16 }
 0x2b6   : > { %10438 = vmatprep.subr.bf16.mxu0 %v10863_v5  ;;  %v6381_v31 = vor.u32 %v6380_v48, %v6377_v22  ;;  %v6801_v38 = vrot.slane %v13251_v61, 2  ;;  %v6803_v7 = vrot.slane %v13270_v51, 2  ;;  %v13477_v48 = vld [vmem:[#allocation2 + $0x78] sm:$0xff]  }
 0x2b7   : > { %10377 = vmatpush3.bf16.msra.mxu1 %v10839_v11  ;;  %v6372_v23 = vor.u32 %v6371_v3, %v6368_v41  ;;  %v6387_v11 = vshll.u32 %v13233_v33, 16  ;;  %v6398_v19 = vrot.slane %v6396_v54, 2 }
 0x2b8   : > { %10378 = vmatprep.subr.bf16.mxu1 %v10843_v60  ;;  %10351 = vmatmul.mubr.bf16.gmra.mxu0 %v13294_v9  ;;  %v6395_v9 = vrot.slane %v6393_v14, 1  ;;  %v13466_v3 = vsel %vm2407_vm3, %v6799_v21, %v6801_v38  ;;  %v13473_v22 = vsel %vm2407_vm3, %v6801_v38, %v6803_v7  ;;  %v13486_v14 = vld [vmem:[#allocation2 + $0x80] sm:$0xff]   ;;  %v6807_v38 = vrot.slane %v13291_v42, 2 }
 0x2b9   : > { %10354 = vmatprep.mubr.bf16.mxu0 %v13307_v34  ;;  %v13458_v33 = vsel %vm1936_vm2, %v6363_v56, %v6372_v23  ;;  %v6389_v41 = vrot.slane %v6387_v11, 2  ;;  %v13463_v4 = vsel %vm1936_vm2, %v6372_v23, %v6381_v31  ;;  %v10850_v34 = vld [vmem:[%s14709_s5 + $0x118] sm:$0xff]   ;;  %10439 = vmatpush3.bf16.msra.mxu0 %v10863_v5  ;;  %v6414_v23 = vshll.u32 %v13270_v51, 16 }
 0x2ba   : > { %10291 = vmatmul.mubr.bf16.gmra.mxu1 %v13257_v62  ;;  %v6402_v62 = vshrl.u32 %v13251_v61, 16  ;;  %10440 = vmatprep.subr.bf16.mxu0 %v10865_v49  ;;  %v6399_v21 = vor.u32 %v6398_v19, %v6395_v9  ;;  %v6805_v11 = vrot.slane %v13275_v37, 2  ;;  %v13484_v5 = vld [vmem:[%s14709_s5 + $0x1f8] sm:$0xff]   ;;  %v6420_v19 = vshrl.u32 %v13275_v37, 16 }
 0x2bb   : > { %10294 = vmatprep.mubr.bf16.mxu1 %v13261_v45  ;;  %10379 = vmatpush3.bf16.msra.mxu1 %v10843_v60  ;;  %v6390_v56 = vor.u32 %v6389_v41, %v6386_v57  ;;  %v6405_v45 = vshll.u32 %v13251_v61, 16  ;;  %v6411_v60 = vshrl.u32 %v13270_v51, 16  ;;  %v6416_v51 = vrot.slane %v6414_v23, 2 }
 0x2bc   : > { %10380 = vmatprep.subr.bf16.mxu1 %v10846_v35  ;;  %v6404_v26 = vrot.slane %v6402_v62, 1  ;;  %v13496_v9 = vsel %vm2407_vm3, %v6803_v7, %v6805_v11  ;;  %v13508_v7 = vld [vmem:[#allocation2 + $0x88] sm:$0xff]   ;;  %v6422_v23 = vrot.slane %v6420_v19, 1  ;;  %v6434_v19 = vrot.slane %v6432_v44, 2 }
 0x2bd   : > { %v13489_v61 = vsel %vm1936_vm2, %v6381_v31, %v6390_v56  ;;  %v6407_v57 = vrot.slane %v6405_v45, 2  ;;  %v6413_v54 = vrot.slane %v6411_v60, 1  ;;  %v13493_v41 = vsel %vm1936_vm2, %v6390_v56, %v6399_v21  ;;  %v10855_v31 = vld [vmem:[%s14709_s5 + $0x110] sm:$0xff]   ;;  %10441 = vmatpush3.bf16.msra.mxu0 %v10865_v49 }
 0x2be   : > { %v13503_v45 = vsel %vm2407_vm3, %v6805_v11, %v6807_v38  ;;  %v6429_v56 = vshrl.u32 %v13291_v42, 16  ;;  %10530 = vmatprep.subr.bf16.mxu0 %v13484_v5  ;;  %v6809_v49 = vrot.slane %v13477_v48, 2  ;;  %v6813_v27 = vrot.slane %v13508_v7, 2 }
 0x2bf   : > { %10381 = vmatpush3.bf16.msra.mxu1 %v10846_v35  ;;  %v6408_v62 = vor.u32 %v6407_v57, %v6404_v26  ;;  %v6423_v35 = vshll.u32 %v13275_v37, 16  ;;  %v6417_v60 = vor.u32 %v6416_v51, %v6413_v54  ;;  %v13515_v26 = vld [vmem:[#allocation2 + $0x90] sm:$0xff]   ;;  %v6811_v54 = vrot.slane %v13486_v14, 2 }
 0x2c0   : > { %10382 = vmatprep.subr.bf16.mxu1 %v10850_v34  ;;  %10355 = vmatmul.mubr.bf16.gmra.mxu0 %v13324_v58  ;;  %v6431_v57 = vrot.slane %v6429_v56, 1 }
 0x2c1   : > { %10358 = vmatprep.mubr.bf16.mxu0 %v13334_v29  ;;  %v13518_v11 = vsel %vm1936_vm2, %v6399_v21, %v6408_v62  ;;  %v6425_v58 = vrot.slane %v6423_v35, 2  ;;  %v13523_v51 = vsel %vm1936_vm2, %v6408_v62, %v6417_v60  ;;  %v6438_v29 = vshrl.u32 %v13477_v48, 16  ;;  %v10861_v21 = vld [vmem:[%s14709_s5 + $0x108] sm:$0xff]  }
 0x2c2   : > { %10295 = vmatmul.mubr.bf16.gmra.mxu1 %v13284_v25  ;;  %14882 = vst [vmem:[#allocation17_spill] sm:$0xff] %v13523_v51  ;;  %v13526_v25 = vsel %vm2407_vm3, %v6807_v38, %v6809_v49  ;;  %v13533_v56 = vsel %vm2407_vm3, %v6809_v49, %v6811_v54  ;;  %v6435_v62 = vor.u32 %v6434_v19, %v6431_v57  ;;  %v6450_v38 = vshll.u32 %v13486_v14, 16 }
 0x2c3   : > { %10298 = vmatprep.mubr.bf16.mxu1 %v13287_v55  ;;  %10383 = vmatpush3.bf16.msra.mxu1 %v10850_v34  ;;  %v6426_v35 = vor.u32 %v6425_v58, %v6422_v23  ;;  %14883 = vst [vmem:[#allocation19_spill] sm:$0xff] %v13533_v56  ;;  %v6441_v55 = vshll.u32 %v13477_v48, 16  ;;  %v6447_v34 = vshrl.u32 %v13486_v14, 16  ;;  %v6440_v44 = vrot.slane %v6438_v29, 1 }
 0x2c4   : > { %10384 = vmatprep.subr.bf16.mxu1 %v10855_v31  ;;  %v14727_v23 = vrot.slane %v13515_v26, 2  ;;  %v6452_v58 = vrot.slane %v6450_v38, 2  ;;  %v13547_v56 = vsel %vm2407_vm3, %v6811_v54, %v6813_v27  ;;  %v6456_v57 = vshrl.u32 %v13508_v7, 16 }
 0x2c5   : > { %v13540_v30 = vsel %vm1936_vm2, %v6417_v60, %v6426_v35  ;;  %v6443_v40 = vrot.slane %v6441_v55, 2  ;;  %v6449_v51 = vrot.slane %v6447_v34, 1  ;;  %v13544_v49 = vsel %vm1936_vm2, %v6426_v35, %v6435_v62  ;;  %v10866_v60 = vld [vmem:[%s14709_s5 + $0x100] sm:$0xff]  }
 0x2c6   : > { %14884 = vst [vmem:[#allocation5_spill] sm:$0xff] %v13544_v49  ;;  %v13556_v29 = vsel %vm2407_vm3, %v6813_v27, %v14727_v23  ;;  %v6465_v35 = vshrl.u32 %v13515_v26, 16  ;;  %v14886_v54 = vrot.slane %v13291_v42, 1  ;;  %v14887_v55 = vrot.slane %v13275_v37, 1 }
 0x2c7   : > { %10385 = vmatpush3.bf16.msra.mxu1 %v10855_v31  ;;  %v6444_v19 = vor.u32 %v6443_v40, %v6440_v44  ;;  %14885 = vst [vmem:[#allocation14_spill] sm:$0xff] %v13556_v29  ;;  %v6459_v31 = vshll.u32 %v13508_v7, 16  ;;  %v6453_v38 = vor.u32 %v6452_v58, %v6449_v51  ;;  %v6458_v49 = vrot.slane %v6456_v57, 1 }
 0x2c8   : > { %10386 = vmatprep.subr.bf16.mxu1 %v10861_v21  ;;  %10359 = vmatmul.mubr.bf16.gmra.mxu0 %v13345_v50  ;;  %v6001_v34 = vsel %vm1135_vm1, %v14887_v55, %v14886_v54  ;;  %v6468_v40 = vshll.u32 %v13515_v26, 16  ;;  %v14888_v27 = vrot.slane %v12992_v8, 1  ;;  %v14889_v44 = vrot.slane %v12961_v1, 1  ;;  %v13583_v1 = vld [vmem:[%s14709_s5 + $0x1b8] sm:$0xff]   ;;  %v10922_v54 = vld [vmem:[#allocation2 + $0x50] sm:$0xff]  }
 0x2c9   : > { %10362 = vmatprep.mubr.bf16.mxu0 %v6001_v34  ;;  %v13574_v50 = vsel %vm1936_vm2, %v6435_v62, %v6444_v19  ;;  %v6461_v29 = vrot.slane %v6459_v31, 2  ;;  %v6467_v37 = vrot.slane %v6465_v35, 1  ;;  %v13577_v51 = vsel %vm1936_vm2, %v6444_v19, %v6453_v38 }
 0x2ca   : > { %10299 = vmatmul.mubr.bf16.gmra.mxu1 %v13319_v0  ;;  %v5530_v23 = vsel %vm1135_vm1, %v14889_v44, %v14888_v27  ;;  %v6470_v58 = vrot.slane %v6468_v40, 2  ;;  %v6002_v0 = vrot.slane %v13477_v48, 1  ;;  %v5531_v62 = vrot.slane %v10922_v54, 1  ;;  %v10862_v40 = vld [vmem:[#allocation2 + $0x98] ss:$0 sps:$4 sm:$0x11]  }
 0x2cb   : > { %10302 = vmatprep.mubr.bf16.mxu1 %v5530_v23  ;;  %10387 = vmatpush3.bf16.msra.mxu1 %v10861_v21  ;;  %v6462_v57 = vor.u32 %v6461_v29, %v6458_v49  ;;  %v6004_v31 = vrot.slane %v13486_v14, 1  ;;  %v14890_v23 = vrot.slane %v13291_v42, 1  ;;  %v14891_v49 = vmov %v14888_v27  ;;  %v13644_v44 = vld [vmem:[#allocation2 + $0x38] sm:$0xff]  }
 0x2cc   : > { %10388 = vmatprep.subr.bf16.mxu1 %v10866_v60  ;;  %v13586_v35 = vor.u32 %v6470_v58, %v6467_v37  ;;  %v5532_v14 = vsel %vm1135_vm1, %v14891_v49, %v5531_v62  ;;  %v6006_v42 = vrot.slane %v13508_v7, 1  ;;  %v6008_v34 = vrot.slane %v13515_v26, 1  ;;  %v10873_v7 = vld [vmem:[%s14709_s5 + $0x1f0] sm:$0xff]   ;;  %v13647_v37 = vld [vmem:[#allocation2 + $0x40] sm:$0xff]   ;;  %v13649_v58 = vld [vmem:[#allocation2 + $0x48] sm:$0xff]  }
 0x2cd   : > { %v13589_v21 = vsel %vm1936_vm2, %v6453_v38, %v6462_v57  ;;  %v6003_v19 = vsel %vm1135_vm1, %v14890_v23, %v6002_v0  ;;  %v6005_v29 = vsel %vm1135_vm1, %v6002_v0, %v6004_v31 }
 0x2ce   : > { %v13593_v48 = vsel %vm1936_vm2, %v6462_v57, %v13586_v35  ;;  %v6007_v38 = vsel %vm1135_vm1, %v6004_v31, %v6006_v42  ;;  %v6009_v8 = vsel %vm1135_vm1, %v6006_v42, %v6008_v34  ;;  %v13654_v57 = vld [vmem:[#allocation2 + $0x50] sm:$0xff]   ;;  %v13662_v31 = vld [vmem:[#allocation2 + $0x68] sm:$0xff]  }
 0x2cf   : > { %10389 = vmatpush3.bf16.msra.mxu1 %v10866_v60  ;;  %v14892_v60 = vrot.slane %v13071_v18, 1  ;;  %v6010_v18 = vrot.slane %v10862_v40, 1  ;;  %v13679_v42 = vld [vmem:[#allocation2 + $0x88] sm:$0xff]   ;;  %v13686_v40 = vld [vmem:[#allocation2 + $0x90] sm:$0xff]  }
 0x2d0   : > { %10478 = vmatprep.subr.bf16.mxu1 %v13583_v1  ;;  %10363 = vmatmul.mubr.bf16.gmra.mxu0 %v6003_v19 }
 0x2d1   : > { %v5534_v55 = vsel %vm1135_vm1, %v5531_v62, %v14892_v60  ;;  %10366 = vmatprep.mubr.bf16.mxu0 %v6005_v29  ;;  %v6011_v27 = vsel %vm1135_vm1, %v6008_v34, %v6010_v18  ;;  %v13658_v62 = vld [vmem:[#allocation2 + $0x58] sm:$0xff]   ;;  %v8061_v29 = vrot.slane %v13644_v44, 3 }
 0x2d2   : > { %10303 = vmatmul.mubr.bf16.gmra.mxu1 %v5532_v14  ;;  %v13675_v60 = vld [vmem:[#allocation2 + $0x78] sm:$0xff]  }
 0x2d3   : > { %10306 = vmatprep.mubr.bf16.mxu1 %v5534_v55  ;;  %v13677_v55 = vld [vmem:[#allocation2 + $0x80] sm:$0xff]  }
 0x2d8   : > { %10367 = vmatmul.mubr.bf16.gmra.mxu0 %v6007_v38  ;;  %v8063_v38 = vrot.slane %v13647_v37, 3 }
 0x2d9   : > { %10370 = vmatprep.mubr.bf16.mxu0 %v6009_v8  ;;  %v8065_v8 = vrot.slane %v13649_v58, 3 }
 0x2da   : > { %10307 = vmatmul.mubr.bf16.gmra.mxu1 %v13301_v2  ;;  %v10874_v2 = vld [vmem:[%s14709_s5 + $0x1e8] sm:$0xff]  }
 0x2db   : > { %10310 = vmatprep.mubr.bf16.mxu1 %v13304_v24 }
 0x2e0   : > { %10371 = vmatmul.mubr.bf16.gmra.mxu0 %v6011_v27 }
 0x2e1   : > { %10442 = vmatprep.mubr.bf16.mxu0 %v13359_v17  ;;  %v13631_v17 = vld [vmem:[#allocation2 + $0x14] sm:$0xf] }
 0x2e2   : > { %10311 = vmatmul.mubr.bf16.gmra.mxu1 %v13328_v53  ;;  %v13629_v53 = vld [vmem:[#allocation2 + $0x18] sm:$0xff]  }
 0x2e3   : > { %10314 = vmatprep.mubr.bf16.mxu1 %v13331_v39  ;;  %v8031_v39 = vld [vmem:[#allocation2 + $0x10] sm:$0x8]  ;;  %v8053_v54 = vrot.slane %v13629_v53, 3 }
 0x2e4   : > { %v9182_v0 = vcombine.low %v8031_v39, %v13631_v17  ;;  %v13700_v39 = vld [vmem:[#allocation2 + $0x98] sm:$0xff]  }
 0x2e6   : > { %v8052_v23 = vrot.slane %v9182_v0, 3  ;;  %v13702_v0 = vld [vmem:[#allocation2 + $0xa0] ss:$0 sps:$4 sm:$0x77]  }
 0x2e8   : > { %10443 = vmatmul.mubr.bf16.vlgmr.msra.gmra.mxu0 %v13367_v59  ;;  %v13635_v59 = vld [vmem:[#allocation2 + $0x28] sm:$0xff]   ;;  %v13682_v34 = vsel %vm3679_vm4, %v8052_v23, %v8053_v54  ;;  %v13705_v23 = vsel %vm3679_vm4, %v8061_v29, %v8063_v38 }
 0x2e9   : > { %10446 = vmatprep.mubr.bf16.mxu0 %v13373_v6  ;;  %10531 = vmatpush3.bf16.msra.mxu0 %v13484_v5  ;;  %v10876_v6 = vld [vmem:[%s14709_s5 + $0x1e0] sm:$0xff]   ;;  %v13642_v5 = vld [vmem:[#allocation2 + $0x30] sm:$0xff]   ;;  %14894 = vst [vmem:[#allocation16_spill] sm:$0xff] %v13682_v34  ;;  %14899 = vst [vmem:[#allocation12_spill] sm:$0xff] %v13705_v23  ;;  %v8077_v23 = vrot.slane %v13675_v60, 3 }
 0x2ea   : > { %10315 = vmatmul.mubr.bf16.gmra.mxu1 %v13337_v12  ;;  %10532 = vmatprep.subr.bf16.mxu0 %v10873_v7  ;;  %v13633_v12 = vld [vmem:[#allocation2 + $0x20] sm:$0xff]   ;;  %v8059_v14 = vrot.slane %v13642_v5, 3 }
 0x2eb   : > { %10318 = vmatprep.mubr.bf16.mxu1 %v13340_v16  ;;  %v8055_v49 = vrot.slane %v13633_v12, 3 }
 0x2ed   : > { %v13627_v24 = vpop.f32.mrf.mxu0  ;;  %10533 = vmatpush3.bf16.msra.mxu0 %v10873_v7  ;;  %v13689_v18 = vsel %vm3679_vm4, %v8053_v54, %v8055_v49  ;;  %v13708_v54 = vsel %vm3679_vm4, %v8063_v38, %v8065_v8  ;;  %v10878_v38 = vld [vmem:[%s14709_s5 + $0x1d0] sm:$0xff]  }
 0x2ee   : > { %10534 = vmatprep.subr.bf16.mxu0 %v10874_v2  ;;  %14895 = vst [vmem:[#allocation4_spill] sm:$0xff] %v13689_v18  ;;  %14900 = vst [vmem:[#allocation15_spill] sm:$0xff] %v13708_v54  ;;  %v8081_v18 = vrot.slane %v13679_v42, 3 }
 0x2ef   : > { %v13637_v16 = vpop.f32.mrf.mxu0 }
 0x2f0   : > { %10447 = vmatmul.mubr.bf16.gmra.mxu0 %v13385_v47  ;;  %v13660_v47 = vld [vmem:[#allocation2 + $0x60] sm:$0xff]  }
 0x2f1   : > { %10450 = vmatprep.mubr.bf16.mxu0 %v13392_v32  ;;  %10535 = vmatpush3.bf16.msra.mxu0 %v10874_v2  ;;  %v13664_v19 = vpop.f32.mrf.mxu0  ;;  %v13669_v32 = vld [vmem:[#allocation2 + $0x70] sm:$0xff]   ;;  %v13698_v2 = vsel %vm3679_vm4, %v8059_v14, %v8061_v29 }
 0x2f2   : > { %10319 = vmatmul.mubr.bf16.gmra.mxu1 %v13362_v10  ;;  %10536 = vmatprep.subr.bf16.mxu0 %v10876_v6  ;;  %v10877_v10 = vld [vmem:[%s14709_s5 + $0x1d8] sm:$0xff]   ;;  %14893 = vst [vmem:[#allocation7_spill] sm:$0xff] %v13669_v32  ;;  %14898 = vst [vmem:[#allocation11_spill] sm:$0xff] %v13698_v2  ;;  %v8073_v2 = vrot.slane %v13662_v31, 3  ;;  %v8075_v29 = vrot.slane %v13669_v32, 3 }
 0x2f3   : > { %10390 = vmatprep.mubr.bf16.mxu1 %v13382_v43  ;;  %v8057_v43 = vrot.slane %v13635_v59, 3 }
 0x2f5   : > { %v13692_v27 = vsel %vm3679_vm4, %v8055_v49, %v8057_v43  ;;  %v13695_v7 = vsel %vm3679_vm4, %v8057_v43, %v8059_v14  ;;  %10537 = vmatpush3.bf16.msra.mxu0 %v10876_v6  ;;  %v8067_v49 = vrot.slane %v13654_v57, 3  ;;  %v10868_v43 = vld [vmem:[%s14709_s5 + $0x1b0] sm:$0xff]   ;;  %v8069_v6 = vrot.slane %v13658_v62, 3 }
 0x2f6   : > { %14896 = vst [vmem:[#allocation3_spill] sm:$0xff] %v13692_v27  ;;  %14897 = vst [vmem:[#allocation8_spill] sm:$0xff] %v13695_v7  ;;  %v13714_v7 = vpop.f32.mrf.mxu0  ;;  %10538 = vmatprep.subr.bf16.mxu0 %v10877_v10  ;;  %v8071_v14 = vrot.slane %v13660_v47, 3  ;;  %v8079_v27 = vrot.slane %v13677_v55, 3 }
 0x2f7   : > { %v13725_v54 = vsel %vm3679_vm4, %v8065_v8, %v8067_v49  ;;  %v13733_v34 = vsel %vm3679_vm4, %v8067_v49, %v8069_v6  ;;  %v8083_v8 = vrot.slane %v13686_v40, 3  ;;  %v8085_v49 = vrot.slane %v13700_v39, 3 }
 0x2f8   : > { %10451 = vmatmul.mubr.bf16.gmra.mxu0 %v13414_v52  ;;  %14901 = vst [vmem:[#allocation9_spill] sm:$0xff] %v13725_v54  ;;  %14902 = vst [vmem:[#allocation13_spill] sm:$0xff] %v13733_v34  ;;  %v13736_v52 = vsel %vm3679_vm4, %v8069_v6, %v8071_v14  ;;  %v13739_v32 = vsel %vm3679_vm4, %v8071_v14, %v8073_v2  ;;  %v13745_v54 = vsel %vm3679_vm4, %v8073_v2, %v8075_v29  ;;  %v10869_v6 = vld [vmem:[%s14709_s5 + $0x1a8] sm:$0xff]  }
 0x2f9   : > { %10454 = vmatprep.mubr.bf16.mxu0 %v13421_v15  ;;  %14903 = vst [vmem:[#allocation20_spill] sm:$0xff] %v13736_v52  ;;  %14904 = vst [vmem:[#allocation21_spill] sm:$0xff] %v13739_v32  ;;  %v13751_v15 = vsel %vm3679_vm4, %v8077_v23, %v8079_v27  ;;  %10539 = vmatpush3.bf16.msra.mxu0 %v10877_v10  ;;  %v8087_v2 = vrot.slane %v13702_v0, 3 }
 0x2fa   : > { %10391 = vmatmul.mubr.bf16.vlgmr.msra.gmra.mxu1 %v13405_v20  ;;  %14905 = vst [vmem:[#allocation18_spill] sm:$0xff] %v13745_v54  ;;  %v13748_v20 = vsel %vm3679_vm4, %v8075_v29, %v8077_v23  ;;  %14907 = vst [vmem:[#allocation23_spill] sm:$0xff] %v13751_v15  ;;  %10540 = vmatprep.subr.bf16.mxu0 %v10878_v38  ;;  %v10881_v23 = vld [vmem:[%s14709_s5 + $0x1c8] sm:$0xff]   ;;  %v13770_v29 = vsel %vm3679_vm4, %v8083_v8, %v8085_v49 }
 0x2fb   : > { %10394 = vmatprep.mubr.bf16.mxu1 %v13411_v36  ;;  %10479 = vmatpush3.bf16.msra.mxu1 %v13583_v1  ;;  %14906 = vst [vmem:[#allocation22_spill] sm:$0xff] %v13748_v20  ;;  %v13757_v14 = vpop.f32.mrf.mxu0  ;;  %v13760_v36 = vsel %vm3679_vm4, %v8079_v27, %v8081_v18  ;;  %v13763_v1 = vsel %vm3679_vm4, %v8081_v18, %v8083_v8  ;;  %14910 = vst [vmem:[#allocation26_spill] sm:$0xff] %v13770_v29  ;;  %v10870_v18 = vld [vmem:[%s14709_s5 + $0x1a0] sm:$0xff]  }
 0x2fc   : > { %10480 = vmatprep.subr.bf16.mxu1 %v10868_v43  ;;  %14908 = vst [vmem:[#allocation24_spill] sm:$0xff] %v13760_v36  ;;  %14909 = vst [vmem:[#allocation25_spill] sm:$0xff] %v13763_v1  ;;  %v13775_v10 = vsel %vm3679_vm4, %v8085_v49, %v8087_v2  ;;  %v10884_v8 = vld [vmem:[%s14709_s5 + $0x1c0] sm:$0xff]   ;;  %v10879_v49 = vld [vmem:[%s14709_s5 + $0x188] sm:$0xff]   ;;  %v7600_v1 = vshrl.u32 %v13633_v12, 16  ;;  %v7603_v36 = vshll.u32 %v13633_v12, 16 }
 0x2fd   : > { %v13772_v15 = vpop.f32.mrf.mxu0  ;;  %14911 = vst [vmem:[#allocation27_spill] sm:$0xff] %v13775_v10  ;;  %10541 = vmatpush3.bf16.msra.mxu0 %v10878_v38  ;;  %v10872_v38 = vld [vmem:[%s14709_s5 + $0x198] sm:$0xff]  }
 0x2fe   : > { %10542 = vmatprep.subr.bf16.mxu0 %v10881_v23  ;;  %v13827_v2 = vld [vmem:[%s14709_s5 + $0x238] sm:$0xff]  }
 0x2ff   : > { %10481 = vmatpush3.bf16.msra.mxu1 %v10868_v43  ;;  %v13780_v27 = vpop.f32.mrf.mxu0 }
 0x300   : > { %10482 = vmatprep.subr.bf16.mxu1 %v10869_v6  ;;  %10455 = vmatmul.mubr.bf16.gmra.mxu0 %v13438_v28 }
 0x301   : > { %10458 = vmatprep.mubr.bf16.mxu0 %v13445_v63  ;;  %v13788_v43 = vpop.f32.mrf.mxu0  ;;  %10543 = vmatpush3.bf16.msra.mxu0 %v10881_v23 }
 0x302   : > { %10395 = vmatmul.mubr.bf16.gmra.mxu1 %v13431_v46  ;;  %10544 = vmatprep.subr.bf16.mxu0 %v10884_v8  ;;  %v10875_v46 = vld [vmem:[%s14709_s5 + $0x190] sm:$0xff]  }
 0x303   : > { %10398 = vmatprep.mubr.bf16.mxu1 %v13435_v13  ;;  %10483 = vmatpush3.bf16.msra.mxu1 %v10869_v6 }
 0x304   : > { %10484 = vmatprep.subr.bf16.mxu1 %v10870_v18 }
 0x305   : > { %v13794_v28 = vpop.f32.mrf.mxu0  ;;  %10545 = vmatpush3.bf16.msra.mxu0 %v10884_v8 }
 0x307   : > { %10485 = vmatpush3.bf16.msra.mxu1 %v10870_v18  ;;  %v13799_v63 = vpop.f32.mrf.mxu0 }
 0x308   : > { %10486 = vmatprep.subr.bf16.mxu1 %v10872_v38  ;;  %10459 = vmatmul.mubr.bf16.gmra.mxu0 %v13466_v3 }
 0x309   : > { %10462 = vmatprep.mubr.bf16.mxu0 %v13473_v22  ;;  %v13805_v13 = vpop.f32.mrf.mxu0 }
 0x30a   : > { %10399 = vmatmul.mubr.bf16.gmra.mxu1 %v13458_v33  ;;  %v10885_v33 = vld [vmem:[%s14709_s5 + $0x180] sm:$0xff]  }
 0x30b   : > { %10402 = vmatprep.mubr.bf16.mxu1 %v13463_v4  ;;  %10487 = vmatpush3.bf16.msra.mxu1 %v10872_v38  ;;  %v13810_v6 = vpop.f32.mrf.mxu0 }
 0x30c   : > { %10488 = vmatprep.subr.bf16.mxu1 %v10875_v46 }
 0x30f   : > { %10489 = vmatpush3.bf16.msra.mxu1 %v10875_v46  ;;  %v14912_v46 = vld [vmem:[#allocation19_spill] sm:$0xff] }
 0x310   : > { %10490 = vmatprep.subr.bf16.mxu1 %v10879_v49  ;;  %10463 = vmatmul.mubr.bf16.gmra.mxu0 %v13496_v9 }
 0x311   : > { %10466 = vmatprep.mubr.bf16.mxu0 %v13503_v45 }
 0x312   : > { %10403 = vmatmul.mubr.bf16.gmra.mxu1 %v13489_v61 }
 0x313   : > { %10406 = vmatprep.mubr.bf16.mxu1 %v13493_v41  ;;  %v10184_v4 = vpop.f32.mrf.mxu1  ;;  %10491 = vmatpush3.bf16.msra.mxu1 %v10879_v49  ;;  %v13819_v3 = vpop.f32.mrf.mxu0  ;;  %v14914_v49 = vld [vmem:[#allocation17_spill] sm:$0xff] }
 0x314   : > { %v13822_v22 = vadd.f32 %v13627_v24, %v10184_v4  ;;  %10492 = vmatprep.subr.bf16.mxu1 %v10885_v33  ;;  %v7098_v24 = vld [vmem:[#allocation2 + $0x10] sm:$0xc]  ;;  %v7594_v4 = vshll.u32 %v13629_v53, 16 }
 0x315   : > { %v5105_v9 = vpop.f32.mrf.mxu1  ;;  %v13829_v23 = vpop.f32.mrf.mxu0 }
 0x316   : > { %v13832_v61 = vadd.f32 %v13637_v16, %v5105_v9 }
 0x317   : > { %v10185_v41 = vpop.f32.mrf.mxu1  ;;  %10493 = vmatpush3.bf16.msra.mxu1 %v10885_v33  ;;  %v13834_v45 = vpop.f32.mrf.mxu0  ;;  %v7591_v33 = vshrl.u32 %v13629_v53, 16 }
 0x318   : > { %v13837_v18 = vadd.f32 %v13664_v19, %v10185_v41  ;;  %10582 = vmatprep.subr.bf16.mxu1 %v13827_v2  ;;  %10467 = vmatmul.mubr.bf16.gmra.mxu0 %v13526_v25  ;;  %v13850_v19 = vcombine.low %v7098_v24, %v13631_v17  ;;  %v14915_v17 = vld [vmem:[#allocation14_spill] sm:$0xff]  ;;  %v10880_v24 = vld [vmem:[#allocation2 + $0x98] ss:$0 sps:$4 sm:$0x33]  }
 0x319   : > { %v5108_v8 = vpop.f32.mrf.mxu1  ;;  %v13841_v38 = vpop.f32.mrf.mxu0  ;;  %10470 = vmatprep.mubr.bf16.mxu0 %v14912_v46  ;;  %v7593_v41 = vrot.slane %v7591_v33, 2  ;;  %v14916_v46 = vld [vmem:[#allocation5_spill] sm:$0xff] }
 0x31a   : > { %10407 = vmatmul.mubr.bf16.gmra.mxu1 %v13518_v11  ;;  %v13846_v16 = vadd.f32 %v13714_v7, %v5108_v8  ;;  %v7583_v9 = vshrl.u32 %v13850_v19, 16  ;;  %v7586_v11 = vshll.u32 %v13850_v19, 16  ;;  %v7596_v7 = vrot.slane %v7594_v4, 3 }
 0x31b   : > { %10410 = vmatprep.mubr.bf16.mxu1 %v14914_v49  ;;  %v7609_v4 = vshrl.u32 %v13635_v59, 16 }
 0x31c   : > { %14913 = vst [vmem:[#allocation28_spill] sm:$0xff] %v13846_v16  ;;  %v13854_v25 = vpop.f32.mrf.mxu0  ;;  %v7585_v49 = vrot.slane %v7583_v9, 2  ;;  %v7588_v10 = vrot.slane %v7586_v11, 3  ;;  %v7597_v33 = vor.u32 %v7596_v7, %v7593_v41 }
 0x31d   : > { %v7611_v34 = vrot.slane %v7609_v4, 2  ;;  %v6474_v4 = vshrl.u32 %v10880_v24, 16 }
 0x31e   : > { %v13859_v8 = vpop.f32.mrf.mxu0  ;;  %v7589_v11 = vor.u32 %v7588_v10, %v7585_v49 }
 0x320   : > { %10471 = vmatmul.mubr.bf16.gmra.mxu0 %v13547_v56  ;;  %v13871_v20 = vpop.f32.mrf.mxu0  ;;  %v7598_v41 = vsel %vm3208_vm5, %v7589_v11, %v7597_v33 }
 0x321   : > { %10474 = vmatprep.mubr.bf16.mxu0 %v14915_v17  ;;  %v6817_v17 = vrot.slane %v10880_v24, 2 }
 0x322   : > { %10411 = vmatmul.mubr.bf16.gmra.mxu1 %v13540_v30  ;;  %v7612_v30 = vshll.u32 %v13635_v59, 16  ;;  %v13883_v16 = vpop.f32.mrf.mxu0 }
 0x323   : > { %10414 = vmatprep.mubr.bf16.mxu1 %v14916_v46  ;;  %v14918_v46 = vrot.slane %v13515_v26, 2 }
 0x325   : > { %v10188_v29 = vpop.f32.mrf.mxu1  ;;  %v6818_v32 = vsel %vm2407_vm3, %v14918_v46, %v6817_v17 }
 0x326   : > { %v13867_v56 = vadd.f32 %v13757_v14, %v10188_v29  ;;  %v7602_v14 = vrot.slane %v7600_v1, 2  ;;  %v7605_v29 = vrot.slane %v7603_v36, 3  ;;  %v7618_v36 = vshrl.u32 %v13642_v5, 16 }
 0x327   : > { %v5121_v54 = vpop.f32.mrf.mxu1 }
 0x328   : > { %14917 = vst [vmem:[#allocation29_spill] sm:$0xff] %v13867_v56  ;;  %v13874_v9 = vadd.f32 %v13772_v15, %v5121_v54  ;;  %10475 = vmatmul.mubr.bf16.gmra.mxu0 %v6818_v32  ;;  %v7614_v56 = vrot.slane %v7612_v30, 3  ;;  %v7606_v32 = vor.u32 %v7605_v29, %v7602_v14  ;;  %v7620_v46 = vrot.slane %v7618_v36, 2 }
 0x329   : > { %v10189_v52 = vpop.f32.mrf.mxu1  ;;  %10546 = vmatprep.mubr.bf16.mxu0 %v7598_v41 }
 0x32a   : > { %v13881_v7 = vadd.f32 %v13780_v27, %v10189_v52  ;;  %10415 = vmatmul.mubr.bf16.gmra.mxu1 %v13574_v50  ;;  %v7621_v52 = vshll.u32 %v13642_v5, 16  ;;  %v7615_v10 = vor.u32 %v7614_v56, %v7611_v34  ;;  %v7627_v27 = vshrl.u32 %v13644_v44, 16 }
 0x32b   : > { %v5124_v54 = vpop.f32.mrf.mxu1  ;;  %10418 = vmatprep.mubr.bf16.mxu1 %v13577_v51  ;;  %v7630_v50 = vshll.u32 %v13644_v44, 16  ;;  %v13897_v49 = vpop.f32.mrf.mxu0  ;;  %v7607_v17 = vsel %vm3208_vm5, %v7597_v33, %v7606_v32 }
 0x32c   : > { %v13888_v26 = vadd.f32 %v13788_v43, %v5124_v54  ;;  %v6477_v43 = vshll.u32 %v10880_v24, 16  ;;  %v7623_v14 = vrot.slane %v7621_v52, 3  ;;  %v7616_v34 = vsel %vm3208_vm5, %v7606_v32, %v7615_v10 }
 0x32d   : > { %v10192_v15 = vpop.f32.mrf.mxu1  ;;  %v7629_v56 = vrot.slane %v7627_v27, 2  ;;  %v7632_v29 = vrot.slane %v7630_v50, 3  ;;  %v13907_v41 = vpop.f32.mrf.mxu0  ;;  %v6476_v24 = vrot.slane %v6474_v4, 1  ;;  %v7636_v32 = vshrl.u32 %v13647_v37, 16 }
 0x32e   : > { %v13893_v1 = vadd.f32 %v13794_v28, %v10192_v15  ;;  %v6479_v33 = vrot.slane %v6477_v43, 2  ;;  %v7624_v15 = vor.u32 %v7623_v14, %v7620_v46  ;;  %v7645_v52 = vshrl.u32 %v13649_v58, 16 }
 0x32f   : > { %v5137_v51 = vpop.f32.mrf.mxu1  ;;  %v7633_v36 = vor.u32 %v7632_v29, %v7629_v56  ;;  %v7648_v27 = vshll.u32 %v13649_v58, 16  ;;  %v7246_v50 = vrot.slane %v13629_v53, 2  ;;  %v7638_v4 = vrot.slane %v7636_v32, 2 }
 0x330   : > { %v13900_v30 = vadd.f32 %v13799_v63, %v5137_v51  ;;  %10547 = vmatmul.mubr.bf16.vlgmr.msra.gmra.mxu0 %v7607_v17  ;;  %v7245_v51 = vrot.slane %v13850_v19, 2  ;;  %v7647_v46 = vrot.slane %v7645_v52, 2  ;;  %v7654_v29 = vshrl.u32 %v13654_v57, 16 }
 0x331   : > { %v10193_v11 = vpop.f32.mrf.mxu1  ;;  %10550 = vmatprep.mubr.bf16.mxu0 %v7616_v34  ;;  %v7650_v14 = vrot.slane %v7648_v27, 3  ;;  %v7666_v32 = vshll.u32 %v13658_v62, 16 }
 0x332   : > { %v13905_v28 = vadd.f32 %v13805_v13, %v10193_v11  ;;  %10419 = vmatmul.mubr.bf16.gmra.mxu1 %v13589_v21  ;;  %v7639_v13 = vshll.u32 %v13647_v37, 16  ;;  %v13918_v21 = vpop.f32.mrf.mxu0  ;;  %v7634_v11 = vsel %vm3208_vm5, %v7624_v15, %v7633_v36  ;;  %v7247_v53 = vsel %vm2407_vm3, %v7245_v51, %v7246_v50 }
 0x333   : > { %v5140_v63 = vpop.f32.mrf.mxu1  ;;  %10422 = vmatprep.mubr.bf16.mxu1 %v13593_v48  ;;  %v6480_v48 = vor.u32 %v6479_v33, %v6476_v24  ;;  %v7651_v24 = vor.u32 %v7650_v14, %v7647_v46 }
 0x334   : > { %v13912_v54 = vadd.f32 %v13810_v6, %v5140_v63  ;;  %v7625_v6 = vsel %vm3208_vm5, %v7615_v10, %v7624_v15  ;;  %v7641_v43 = vrot.slane %v7639_v13, 3  ;;  %v13926_v34 = vpop.f32.mrf.mxu0  ;;  %v7248_v10 = vrot.slane %v13633_v12, 2 }
 0x335   : > { %v6481_v17 = vsel %vm1936_vm2, %v13586_v35, %v6480_v48  ;;  %v7657_v35 = vshll.u32 %v13654_v57, 16  ;;  %v7663_v15 = vshrl.u32 %v13658_v62, 16  ;;  %v7250_v13 = vrot.slane %v13635_v59, 2 }
 0x336   : > { %v7642_v56 = vor.u32 %v7641_v43, %v7638_v4  ;;  %v7249_v48 = vsel %vm2407_vm3, %v7246_v50, %v7248_v10  ;;  %v7656_v4 = vrot.slane %v7654_v29, 2 }
 0x337   : > { %v7659_v43 = vrot.slane %v7657_v35, 3  ;;  %v7251_v50 = vsel %vm2407_vm3, %v7248_v10, %v7250_v13  ;;  %v7675_v10 = vshll.u32 %v13660_v47, 16  ;;  %v7254_v35 = vrot.slane %v13644_v44, 2 }
 0x338   : > { %10551 = vmatmul.mubr.bf16.gmra.mxu0 %v7625_v6  ;;  %v10892_v6 = vld [vmem:[%s14709_s5 + $0x230] sm:$0xff]   ;;  %v7652_v59 = vsel %vm3208_vm5, %v7642_v56, %v7651_v24 }
 0x339   : > { %10554 = vmatprep.mubr.bf16.mxu0 %v7634_v11  ;;  %v7668_v11 = vrot.slane %v7666_v32, 3 }
 0x33a   : > { %10423 = vmatmul.mubr.bf16.gmra.mxu1 %v6481_v17 }
 0x33b   : > { %10494 = vmatprep.mubr.bf16.mxu1 %v7247_v53  ;;  %v10896_v53 = vld [vmem:[%s14709_s5 + $0x228] sm:$0xff]  }
 0x33c   : > { %v10196_v19 = vpop.f32.mrf.mxu1  ;;  %v13935_v33 = vpop.f32.mrf.mxu0 }
 0x33d   : > { %v13933_v63 = vadd.f32 %v13819_v3, %v10196_v19  ;;  %v7643_v3 = vsel %vm3208_vm5, %v7633_v36, %v7642_v56  ;;  %v7672_v19 = vshrl.u32 %v13660_v47, 16  ;;  %v7252_v56 = vrot.slane %v13642_v5, 2 }
 0x33e   : > { %v5153_v52 = vpop.f32.mrf.mxu1  ;;  %v13943_v27 = vpop.f32.mrf.mxu0 }
 0x33f   : > { %v13941_v12 = vadd.f32 %v13829_v23, %v5153_v52  ;;  %v7665_v23 = vrot.slane %v7663_v15, 2  ;;  %v7674_v52 = vrot.slane %v7672_v19, 2  ;;  %v7253_v5 = vsel %vm2407_vm3, %v7250_v13, %v7252_v56  ;;  %v10902_v19 = vld [vmem:[%s14709_s5 + $0x218] sm:$0xff]  }
 0x340   : > { %v10197_v51 = vpop.f32.mrf.mxu1  ;;  %10555 = vmatmul.mubr.bf16.gmra.mxu0 %v7643_v3  ;;  %v13959_v14 = vpop.f32.mrf.mxu0  ;;  %v7256_v13 = vrot.slane %v13647_v37, 2  ;;  %v7702_v37 = vshll.u32 %v13675_v60, 16 }
 0x341   : > { %v13951_v17 = vadd.f32 %v13834_v45, %v10197_v51  ;;  %10558 = vmatprep.mubr.bf16.mxu0 %v7652_v59  ;;  %v7660_v45 = vor.u32 %v7659_v43, %v7656_v4  ;;  %v7669_v29 = vor.u32 %v7668_v11, %v7665_v23  ;;  %v10899_v51 = vld [vmem:[%s14709_s5 + $0x220] sm:$0xff]  }
 0x342   : > { %10495 = vmatmul.mubr.bf16.vlgmr.msra.gmra.mxu1 %v7249_v48  ;;  %v5156_v46 = vpop.f32.mrf.mxu1  ;;  %v13970_v15 = vpop.f32.mrf.mxu0  ;;  %v7677_v48 = vrot.slane %v7675_v10, 3 }
 0x343   : > { %10498 = vmatprep.mubr.bf16.mxu1 %v7251_v50  ;;  %10583 = vmatpush3.bf16.msra.mxu1 %v13827_v2  ;;  %v13957_v36 = vadd.f32 %v13841_v38, %v5156_v46  ;;  %v7681_v2 = vshrl.u32 %v13662_v31, 16  ;;  %v7684_v38 = vshll.u32 %v13662_v31, 16  ;;  %v7661_v32 = vsel %vm3208_vm5, %v7651_v24, %v7660_v45  ;;  %v14919_v50 = vld [vmem:[#allocation7_spill] sm:$0xff] }
 0x344   : > { %10584 = vmatprep.subr.bf16.mxu1 %v10892_v6  ;;  %v7670_v3 = vsel %vm3208_vm5, %v7660_v45, %v7669_v29  ;;  %v7678_v11 = vor.u32 %v7677_v48, %v7674_v52  ;;  %v7690_v46 = vshrl.u32 %v14919_v50, 16  ;;  %v7693_v45 = vshll.u32 %v14919_v50, 16 }
 0x345   : > { %v7683_v4 = vrot.slane %v7681_v2, 2  ;;  %v7686_v43 = vrot.slane %v7684_v38, 3  ;;  %v7258_v38 = vrot.slane %v13649_v58, 2  ;;  %v7257_v48 = vsel %vm2407_vm3, %v7254_v35, %v7256_v13 }
 0x347   : > { %10585 = vmatpush3.bf16.msra.mxu1 %v10892_v6  ;;  %v7255_v6 = vsel %vm2407_vm3, %v7252_v56, %v7254_v35  ;;  %v7687_v10 = vor.u32 %v7686_v43, %v7683_v4  ;;  %v7699_v56 = vshrl.u32 %v13675_v60, 16  ;;  %v10905_v4 = vld [vmem:[%s14709_s5 + $0x210] sm:$0xff]  }
 0x348   : > { %10586 = vmatprep.subr.bf16.mxu1 %v10896_v53  ;;  %10559 = vmatmul.mubr.bf16.gmra.mxu0 %v7661_v32 }
 0x349   : > { %10562 = vmatprep.mubr.bf16.mxu0 %v7670_v3  ;;  %v7695_v3 = vrot.slane %v7693_v45, 3  ;;  %v7688_v58 = vsel %vm3208_vm5, %v7678_v11, %v7687_v10  ;;  %v7711_v45 = vshll.u32 %v13677_v55, 16 }
 0x34a   : > { %v10200_v44 = vpop.f32.mrf.mxu1  ;;  %10499 = vmatmul.mubr.bf16.gmra.mxu1 %v7253_v5  ;;  %v13982_v59 = vpop.f32.mrf.mxu0  ;;  %v7692_v5 = vrot.slane %v7690_v46, 2 }
 0x34b   : > { %v13980_v24 = vadd.f32 %v13854_v25, %v10200_v44  ;;  %10502 = vmatprep.mubr.bf16.mxu1 %v7255_v6  ;;  %10587 = vmatpush3.bf16.msra.mxu1 %v10896_v53  ;;  %v7704_v44 = vrot.slane %v7702_v37, 3 }
 0x34c   : > { %v5169_v23 = vpop.f32.mrf.mxu1  ;;  %10588 = vmatprep.subr.bf16.mxu1 %v10899_v51  ;;  %v13993_v53 = vpop.f32.mrf.mxu0  ;;  %v7696_v46 = vor.u32 %v7695_v3, %v7692_v5 }
 0x34d   : > { %v13991_v25 = vadd.f32 %v13859_v8, %v5169_v23  ;;  %v7679_v8 = vsel %vm3208_vm5, %v7669_v29, %v7678_v11  ;;  %v7259_v29 = vsel %vm2407_vm3, %v7256_v13, %v7258_v38  ;;  %v7708_v11 = vshrl.u32 %v13677_v55, 16 }
 0x34e   : > { %v10201_v2 = vpop.f32.mrf.mxu1 }
 0x34f   : > { %v13999_v32 = vadd.f32 %v13871_v20, %v10201_v2  ;;  %10589 = vmatpush3.bf16.msra.mxu1 %v10899_v51  ;;  %v14010_v20 = vpop.f32.mrf.mxu0  ;;  %v7701_v51 = vrot.slane %v7699_v56, 2  ;;  %v10908_v56 = vld [vmem:[%s14709_s5 + $0x208] sm:$0xff]   ;;  %v7710_v3 = vrot.slane %v7708_v11, 2 }
 0x350   : > { %v5172_v52 = vpop.f32.mrf.mxu1  ;;  %10590 = vmatprep.subr.bf16.mxu1 %v10902_v19  ;;  %10563 = vmatmul.mubr.bf16.gmra.mxu0 %v7679_v8 }
 0x351   : > { %v14007_v43 = vadd.f32 %v13883_v16, %v5172_v52  ;;  %10566 = vmatprep.mubr.bf16.mxu0 %v7688_v58  ;;  %v7260_v16 = vrot.slane %v13654_v57, 2  ;;  %v7705_v37 = vor.u32 %v7704_v44, %v7701_v51  ;;  %v7720_v57 = vshll.u32 %v13679_v42, 16  ;;  %v10910_v51 = vld [vmem:[%s14709_s5 + $0x200] sm:$0xff]  }
 0x352   : > { %v10204_v35 = vpop.f32.mrf.mxu1  ;;  %10503 = vmatmul.mubr.bf16.gmra.mxu1 %v7257_v48  ;;  %v7262_v52 = vrot.slane %v13658_v62, 2  ;;  %v7713_v58 = vrot.slane %v7711_v45, 3  ;;  %v7726_v45 = vshrl.u32 %v13686_v40, 16 }
 0x353   : > { %v14014_v6 = vadd.f32 %v13897_v49, %v10204_v35  ;;  %10506 = vmatprep.mubr.bf16.mxu1 %v7259_v29  ;;  %10591 = vmatpush3.bf16.msra.mxu1 %v10902_v19  ;;  %v14025_v49 = vpop.f32.mrf.mxu0  ;;  %v7717_v19 = vshrl.u32 %v13679_v42, 16  ;;  %v7261_v5 = vsel %vm2407_vm3, %v7258_v38, %v7260_v16  ;;  %v7722_v35 = vrot.slane %v7720_v57, 3 }
 0x354   : > { %v5185_v23 = vpop.f32.mrf.mxu1  ;;  %10592 = vmatprep.subr.bf16.mxu1 %v10905_v4  ;;  %v7714_v11 = vor.u32 %v7713_v58, %v7710_v3  ;;  %v7738_v3 = vshll.u32 %v13700_v39, 16 }
 0x355   : > { %v14023_v13 = vadd.f32 %v13907_v41, %v5185_v23  ;;  %v7697_v41 = vsel %vm3208_vm5, %v7687_v10, %v7696_v46  ;;  %v7263_v10 = vsel %vm2407_vm3, %v7260_v16, %v7262_v52  ;;  %v7264_v16 = vrot.slane %v13660_v47, 2 }
 0x356   : > { %v10205_v2 = vpop.f32.mrf.mxu1 }
 0x357   : > { %v14031_v48 = vadd.f32 %v13918_v21, %v10205_v2  ;;  %10593 = vmatpush3.bf16.msra.mxu1 %v10905_v4  ;;  %v7706_v21 = vsel %vm3208_vm5, %v7696_v46, %v7705_v37  ;;  %v7719_v4 = vrot.slane %v7717_v19, 2  ;;  %v7729_v46 = vshll.u32 %v13686_v40, 16 }
 0x358   : > { %v5188_v8 = vpop.f32.mrf.mxu1  ;;  %10594 = vmatprep.subr.bf16.mxu1 %v10908_v56  ;;  %v14041_v62 = vpop.f32.mrf.mxu0  ;;  %10567 = vmatmul.mubr.bf16.gmra.mxu0 %v7697_v41  ;;  %v7735_v41 = vshrl.u32 %v13700_v39, 16 }
 0x359   : > { %v14039_v44 = vadd.f32 %v13926_v34, %v5188_v8  ;;  %10570 = vmatprep.mubr.bf16.mxu0 %v7706_v21  ;;  %v7723_v2 = vor.u32 %v7722_v35, %v7719_v4  ;;  %v7266_v8 = vrot.slane %v13662_v31, 2  ;;  %v7728_v21 = vrot.slane %v7726_v45, 2 }
 0x35a   : > { %v10208_v38 = vpop.f32.mrf.mxu1  ;;  %10507 = vmatmul.mubr.bf16.gmra.mxu1 %v7261_v5  ;;  %v14048_v23 = vpop.f32.mrf.mxu0  ;;  %v7265_v4 = vsel %vm2407_vm3, %v7262_v52, %v7264_v16  ;;  %v7744_v52 = vshrl.u32 %v13702_v0, 16 }
 0x35b   : > { %v14046_v29 = vadd.f32 %v13935_v33, %v10208_v38  ;;  %10510 = vmatprep.mubr.bf16.mxu1 %v7263_v10  ;;  %10595 = vmatpush3.bf16.msra.mxu1 %v10908_v56  ;;  %v7731_v38 = vrot.slane %v7729_v46, 3  ;;  %v7267_v10 = vsel %vm2407_vm3, %v7264_v16, %v7266_v8 }
 0x35c   : > { %v5201_v34 = vpop.f32.mrf.mxu1  ;;  %10596 = vmatprep.subr.bf16.mxu1 %v10910_v51  ;;  %v10269_v57 = vpop.f32.mrf.mxu0 }
 0x35d   : > { %v14053_v19 = vadd.f32 %v13943_v27, %v5201_v34  ;;  %v7715_v27 = vsel %vm3208_vm5, %v7705_v37, %v7714_v11  ;;  %v7737_v34 = vrot.slane %v7735_v41, 2  ;;  %v7732_v46 = vor.u32 %v7731_v38, %v7728_v21 }
 0x35e   : > { %v10209_v33 = vpop.f32.mrf.mxu1  ;;  %v5479_v56 = vpop.f32.mrf.mxu0  ;;  %v7746_v38 = vrot.slane %v7744_v52, 2 }
 0x35f   : > { %v14058_v5 = vadd.f32 %v13959_v14, %v10209_v33  ;;  %10597 = vmatpush3.bf16.msra.mxu1 %v10910_v51  ;;  %v7724_v14 = vsel %vm3208_vm5, %v7714_v11, %v7723_v2  ;;  %v7747_v33 = vshll.u32 %v13702_v0, 16  ;;  %v7733_v21 = vsel %vm3208_vm5, %v7723_v2, %v7732_v46 }
 0x360   : > { %v5204_v58 = vpop.f32.mrf.mxu1  ;;  %v14067_v31 = vpop.f32.mrf.mxu0  ;;  %10571 = vmatmul.mubr.bf16.gmra.mxu0 %v7715_v27 }
 0x361   : > { %v14064_v47 = vadd.f32 %v13970_v15, %v5204_v58  ;;  %10574 = vmatprep.mubr.bf16.mxu0 %v7724_v14  ;;  %v7740_v15 = vrot.slane %v7738_v3, 3  ;;  %v7268_v58 = vrot.slane %v14919_v50, 2 }
 0x362   : > { %v10212_v35 = vpop.f32.mrf.mxu1  ;;  %10511 = vmatmul.mubr.bf16.gmra.mxu1 %v7265_v4  ;;  %v6112_v37 = vpop.f32.mrf.mxu0 }
 0x363   : > { %v14072_v51 = vadd.f32 %v13982_v59, %v10212_v35  ;;  %10514 = vmatprep.mubr.bf16.mxu1 %v7267_v10  ;;  %v7270_v59 = vrot.slane %v13675_v60, 2  ;;  %v7741_v3 = vor.u32 %v7740_v15, %v7737_v34  ;;  %v7749_v35 = vrot.slane %v7747_v33, 3 }
 0x364   : > { %v5217_v45 = vpop.f32.mrf.mxu1  ;;  %v10341_v16 = vpop.f32.mrf.mxu0 }
 0x365   : > { %v14077_v11 = vadd.f32 %v13993_v53, %v5217_v45  ;;  %v7269_v53 = vsel %vm2407_vm3, %v7266_v8, %v7268_v58  ;;  %v7742_v10 = vsel %vm3208_vm5, %v7732_v46, %v7741_v3  ;;  %v7750_v45 = vor.u32 %v7749_v35, %v7746_v38 }
 0x366   : > { %v10213_v27 = vpop.f32.mrf.mxu1  ;;  %v6115_v41 = vpop.f32.mrf.mxu0  ;;  %v7272_v8 = vrot.slane %v13677_v55, 2  ;;  %v7274_v46 = vrot.slane %v13679_v42, 2 }
 0x367   : > { %v14082_v4 = vadd.f32 %v14010_v20, %v10213_v27  ;;  %v7271_v20 = vsel %vm2407_vm3, %v7268_v58, %v7270_v59 }
 0x368   : > { %v5220_v14 = vpop.f32.mrf.mxu1  ;;  %v10344_v50 = vpop.f32.mrf.mxu0  ;;  %10575 = vmatmul.mubr.bf16.gmra.mxu0 %v7733_v21  ;;  %v7275_v55 = vsel %vm2407_vm3, %v7272_v8, %v7274_v46 }
 0x369   : > { %v14086_v0 = vadd.f32 %v14025_v49, %v5220_v14  ;;  %10578 = vmatprep.mubr.bf16.mxu0 %v7742_v10 }
 0x36a   : > { %v10216_v60 = vpop.f32.mrf.mxu1  ;;  %10515 = vmatmul.mubr.bf16.gmra.mxu1 %v7269_v53  ;;  %v6128_v2 = vpop.f32.mrf.mxu0  ;;  %v7273_v53 = vsel %vm2407_vm3, %v7270_v59, %v7272_v8 }
 0x36b   : > { %v14092_v34 = vadd.f32 %v14041_v62, %v10216_v60  ;;  %10518 = vmatprep.mubr.bf16.mxu1 %v7271_v20  ;;  %v7751_v62 = vsel %vm3208_vm5, %v7741_v3, %v7750_v45  ;;  %v7276_v60 = vrot.slane %v13686_v40, 2 }
 0x36c   : > { %v5233_v15 = vpop.f32.mrf.mxu1  ;;  %v10345_v52 = vpop.f32.mrf.mxu0 }
 0x36d   : > { %v14095_v49 = vadd.f32 %v14048_v23, %v5233_v15 }
 0x36e   : > { %v10217_v33 = vpop.f32.mrf.mxu1  ;;  %v6131_v58 = vpop.f32.mrf.mxu0 }
 0x36f   : > { %v14099_v27 = vadd.f32 %v10269_v57, %v10217_v33  ;;  %v14920_v33 = vld [vmem:[#allocation28_spill] sm:$0xff] }
 0x370   : > { %v5236_v14 = vpop.f32.mrf.mxu1  ;;  %v10348_v38 = vpop.f32.mrf.mxu0  ;;  %10579 = vmatmul.mubr.bf16.gmra.mxu0 %v7751_v62  ;;  %v7277_v62 = vsel %vm2407_vm3, %v7274_v46, %v7276_v60 }
 0x371   : > { %v14102_v21 = vadd.f32 %v5479_v56, %v5236_v14 }
 0x372   : > { %v10288_v23 = vpop.f32.mrf.mxu1  ;;  %10519 = vmatmul.mubr.bf16.gmra.mxu1 %v7273_v53  ;;  %v6144_v42 = vpop.f32.mrf.mxu0 }
 0x373   : > { %v5794_v35 = vadd.f32 %v10288_v23, %v13822_v22  ;;  %10522 = vmatprep.mubr.bf16.mxu1 %v7275_v55  ;;  %v7278_v22 = vrot.slane %v13700_v39, 2  ;;  %v14921_v55 = vld [vmem:[#allocation29_spill] sm:$0xff] }
 0x374   : > { %v5649_v57 = vpop.f32.mrf.mxu1  ;;  %v10349_v3 = vpop.f32.mrf.mxu0 }
 0x375   : > { %v5792_v10 = vadd.f32 %v5649_v57, %v13832_v61  ;;  %v14110_v56 = vadd.f32 %v14067_v31, %v5794_v35  ;;  %v10911_v61 = vld [vmem:[#allocation2 + $0xa0] ss:$0 sps:$4 sm:$0x33]   ;;  %v7279_v31 = vsel %vm2407_vm3, %v7276_v60, %v7278_v22 }
 0x376   : > { %v10289_v59 = vpop.f32.mrf.mxu1  ;;  %v6147_v15 = vpop.f32.mrf.mxu0 }
 0x377   : > { %v5795_v20 = vadd.f32 %v10289_v59, %v13837_v18  ;;  %v14113_v45 = vadd.f32 %v6112_v37, %v5792_v10  ;;  %v7280_v10 = vrot.slane %v10911_v61, 2 }
 0x378   : > { %v5652_v8 = vpop.f32.mrf.mxu1  ;;  %v10352_v53 = vpop.f32.mrf.mxu0 }
 0x379   : > { %v5793_v14 = vadd.f32 %v5652_v8, %v14920_v33  ;;  %v14118_v40 = vadd.f32 %v10341_v16, %v5795_v20 }
 0x37a   : > { %v10292_v23 = vpop.f32.mrf.mxu1  ;;  %10523 = vmatmul.mubr.bf16.gmra.mxu1 %v7277_v62  ;;  %v6160_v37 = vpop.f32.mrf.mxu0 }
 0x37b   : > { %v5798_v18 = vadd.f32 %v10292_v23, %v14921_v55  ;;  %10526 = vmatprep.mubr.bf16.mxu1 %v7279_v31  ;;  %v14122_v35 = vadd.f32 %v6115_v41, %v5793_v14  ;;  %v7281_v23 = vsel %vm2407_vm3, %v7278_v22, %v7280_v10 }
 0x37c   : > { %v5665_v57 = vpop.f32.mrf.mxu1  ;;  %v10353_v59 = vpop.f32.mrf.mxu0 }
 0x37d   : > { %v5796_v39 = vadd.f32 %v5665_v57, %v13874_v9  ;;  %v14125_v46 = vadd.f32 %v10344_v50, %v5798_v18  ;;  %v14922_v50 = vld [vmem:[#allocation16_spill] sm:$0xff] }
 0x37e   : > { %v10293_v8 = vpop.f32.mrf.mxu1  ;;  %v6163_v20 = vpop.f32.mrf.mxu0 }
 0x37f   : > { %v5799_v16 = vadd.f32 %v10293_v8, %v13881_v7  ;;  %v14128_v33 = vadd.f32 %v6128_v2, %v5796_v39 }
 0x380   : > { %v5668_v60 = vpop.f32.mrf.mxu1  ;;  %v10356_v41 = vpop.f32.mrf.mxu0 }
 0x381   : > { %v5797_v62 = vadd.f32 %v5668_v60, %v13888_v26  ;;  %v14132_v14 = vadd.f32 %v10345_v52, %v5799_v16  ;;  %v14923_v60 = vld [vmem:[#allocation4_spill] sm:$0xff] }
 0x382   : > { %v10296_v31 = vpop.f32.mrf.mxu1  ;;  %10527 = vmatmul.mubr.bf16.gmra.mxu1 %v7281_v23  ;;  %v6176_v61 = vpop.f32.mrf.mxu0 }
 0x383   : > { %v5802_v9 = vadd.f32 %v10296_v31, %v13893_v1  ;;  %10598 = vmatprep.mubr.bf16.mxu1 %v14922_v50  ;;  %v14136_v55 = vadd.f32 %v6131_v58, %v5797_v62  ;;  %v14924_v62 = vld [vmem:[#allocation3_spill] sm:$0xff] }
 0x384   : > { %v5681_v7 = vpop.f32.mrf.mxu1  ;;  %v10357_v18 = vpop.f32.mrf.mxu0 }
 0x385   : > { %v5800_v2 = vadd.f32 %v5681_v7, %v13900_v30  ;;  %v14139_v57 = vadd.f32 %v10348_v38, %v5802_v9 }
 0x386   : > { %v10297_v26 = vpop.f32.mrf.mxu1  ;;  %v6179_v52 = vpop.f32.mrf.mxu0 }
 0x387   : > { %v5803_v22 = vadd.f32 %v10297_v26, %v13905_v28  ;;  %v14142_v39 = vadd.f32 %v6144_v42, %v5800_v2 }
 0x388   : > { %v5684_v10 = vpop.f32.mrf.mxu1  ;;  %v10360_v8 = vpop.f32.mrf.mxu0 }
 0x389   : > { %v5801_v1 = vadd.f32 %v5684_v10, %v13912_v54  ;;  %v14145_v16 = vadd.f32 %v10349_v3, %v5803_v22  ;;  %v14925_v10 = vld [vmem:[#allocation8_spill] sm:$0xff] }
 0x38a   : > { %v10300_v58 = vpop.f32.mrf.mxu1  ;;  %10599 = vmatmul.mubr.bf16.vlgmr.msra.gmra.mxu1 %v14923_v60  ;;  %v6192_v38 = vpop.f32.mrf.mxu0 }
 0x38b   : > { %v5806_v30 = vadd.f32 %v10300_v58, %v13933_v63  ;;  %10602 = vmatprep.mubr.bf16.mxu1 %v14924_v62  ;;  %v14150_v23 = vadd.f32 %v6147_v15, %v5801_v1  ;;  %v14926_v1 = vld [vmem:[#allocation11_spill] sm:$0xff] }
 0x38c   : > { %v5697_v28 = vpop.f32.mrf.mxu1  ;;  %v10361_v31 = vpop.f32.mrf.mxu0 }
 0x38d   : > { %v5804_v42 = vadd.f32 %v5697_v28, %v13941_v12  ;;  %v14153_v9 = vadd.f32 %v10352_v53, %v5806_v30 }
 0x38e   : > { %v10301_v54 = vpop.f32.mrf.mxu1  ;;  %v6195_v50 = vpop.f32.mrf.mxu0 }
 0x38f   : > { %v5807_v3 = vadd.f32 %v10301_v54, %v13951_v17  ;;  %v14156_v7 = vadd.f32 %v6160_v37, %v5804_v42 }
 0x390   : > { %v5700_v2 = vpop.f32.mrf.mxu1  ;;  %v10364_v26 = vpop.f32.mrf.mxu0 }
 0x391   : > { %v5805_v63 = vadd.f32 %v5700_v2, %v13957_v36  ;;  %v14159_v22 = vadd.f32 %v10353_v59, %v5807_v3  ;;  %v14927_v2 = vld [vmem:[#allocation12_spill] sm:$0xff] }
 0x392   : > { %v10304_v15 = vpop.f32.mrf.mxu1  ;;  %10603 = vmatmul.mubr.bf16.gmra.mxu1 %v14925_v10  ;;  %v6208_v53 = vpop.f32.mrf.mxu0 }
 0x393   : > { %v5810_v12 = vadd.f32 %v10304_v15, %v13980_v24  ;;  %10606 = vmatprep.mubr.bf16.mxu1 %v14926_v1  ;;  %v14164_v58 = vadd.f32 %v6163_v20, %v5805_v63  ;;  %v14928_v63 = vld [vmem:[#allocation15_spill] sm:$0xff] }
 0x394   : > { %v5713_v17 = vpop.f32.mrf.mxu1  ;;  %v10365_v60 = vpop.f32.mrf.mxu0 }
 0x395   : > { %v5808_v37 = vadd.f32 %v5713_v17, %v13991_v25  ;;  %v14167_v30 = vadd.f32 %v10356_v41, %v5810_v12 }
 0x396   : > { %v10305_v36 = vpop.f32.mrf.mxu1  ;;  %v6211_v62 = vpop.f32.mrf.mxu0 }
 0x397   : > { %v5811_v59 = vadd.f32 %v10305_v36, %v13999_v32  ;;  %v14170_v28 = vadd.f32 %v6176_v61, %v5808_v37 }
 0x398   : > { %v5716_v42 = vpop.f32.mrf.mxu1  ;;  %v10368_v54 = vpop.f32.mrf.mxu0 }
 0x399   : > { %v5809_v24 = vadd.f32 %v5716_v42, %v14007_v43  ;;  %v14173_v3 = vadd.f32 %v10357_v18, %v5811_v59  ;;  %v14929_v42 = vld [vmem:[#allocation9_spill] sm:$0xff] }
 0x39a   : > { %v10308_v20 = vpop.f32.mrf.mxu1  ;;  %10607 = vmatmul.mubr.bf16.gmra.mxu1 %v14927_v2  ;;  %v6224_v41 = vpop.f32.mrf.mxu0 }
 0x39b   : > { %v5814_v25 = vadd.f32 %v10308_v20, %v14014_v6  ;;  %10610 = vmatprep.mubr.bf16.mxu1 %v14928_v63  ;;  %v14178_v15 = vadd.f32 %v6179_v52, %v5809_v24  ;;  %v14930_v24 = vld [vmem:[#allocation13_spill] sm:$0xff] }
 0x39c   : > { %v5729_v32 = vpop.f32.mrf.mxu1  ;;  %v10369_v10 = vpop.f32.mrf.mxu0 }
 0x39d   : > { %v5812_v61 = vadd.f32 %v5729_v32, %v14023_v13  ;;  %v14181_v12 = vadd.f32 %v10360_v8, %v5814_v25 }
 0x39e   : > { %v10309_v43 = vpop.f32.mrf.mxu1  ;;  %v6227_v1 = vpop.f32.mrf.mxu0 }
 0x39f   : > { %v5815_v18 = vadd.f32 %v10309_v43, %v14031_v48  ;;  %v14184_v17 = vadd.f32 %v6192_v38, %v5812_v61 }
 0x3a0   : > { %v5732_v37 = vpop.f32.mrf.mxu1  ;;  %v10372_v36 = vpop.f32.mrf.mxu0 }
 0x3a1   : > { %v5813_v6 = vadd.f32 %v5732_v37, %v14039_v44  ;;  %v14187_v59 = vadd.f32 %v10361_v31, %v5815_v18  ;;  %v14931_v37 = vld [vmem:[#allocation20_spill] sm:$0xff] }
 0x3a2   : > { %v10312_v52 = vpop.f32.mrf.mxu1  ;;  %10611 = vmatmul.mubr.bf16.gmra.mxu1 %v14929_v42  ;;  %v6240_v8 = vpop.f32.mrf.mxu0 }
 0x3a3   : > { %v5818_v13 = vadd.f32 %v10312_v52, %v14046_v29  ;;  %10614 = vmatprep.mubr.bf16.mxu1 %v14930_v24  ;;  %v14192_v20 = vadd.f32 %v6195_v50, %v5813_v6  ;;  %v14932_v6 = vld [vmem:[#allocation21_spill] sm:$0xff] }
 0x3a4   : > { %v5745_v48 = vpop.f32.mrf.mxu1  ;;  %v10373_v2 = vpop.f32.mrf.mxu0 }
 0x3a5   : > { %v5816_v38 = vadd.f32 %v5745_v48, %v14053_v19  ;;  %v14195_v25 = vadd.f32 %v10364_v26, %v5818_v13 }
 0x3a6   : > { %v10313_v44 = vpop.f32.mrf.mxu1  ;;  %v6243_v63 = vpop.f32.mrf.mxu0 }
 0x3a7   : > { %v5819_v31 = vadd.f32 %v10313_v44, %v14058_v5  ;;  %v14198_v32 = vadd.f32 %v6208_v53, %v5816_v38 }
 0x3a8   : > { %v5748_v61 = vpop.f32.mrf.mxu1  ;;  %v10444_v43 = vpop.f32.mrf.mxu0 }
 0x3a9   : > { %v5817_v29 = vadd.f32 %v5748_v61, %v14064_v47  ;;  %v14201_v18 = vadd.f32 %v10365_v60, %v5819_v31  ;;  %v14933_v61 = vld [vmem:[#allocation18_spill] sm:$0xff] }
 0x3aa   : > { %v10316_v50 = vpop.f32.mrf.mxu1  ;;  %10615 = vmatmul.mubr.bf16.gmra.mxu1 %v14931_v37  ;;  %v6919_v26 = vpop.f32.mrf.mxu0 }
 0x3ab   : > { %v5822_v19 = vadd.f32 %v10316_v50, %v14072_v51  ;;  %10618 = vmatprep.mubr.bf16.mxu1 %v14932_v6  ;;  %v14206_v52 = vadd.f32 %v6211_v62, %v5817_v29  ;;  %v14934_v29 = vld [vmem:[#allocation22_spill] sm:$0xff] }
 0x3ac   : > { %v5761_v5 = vpop.f32.mrf.mxu1  ;;  %v10445_v42 = vpop.f32.mrf.mxu0 }
 0x3ad   : > { %v5820_v53 = vadd.f32 %v5761_v5, %v14077_v11  ;;  %v14209_v13 = vadd.f32 %v10368_v54, %v5822_v19 }
 0x3ae   : > { %v10317_v47 = vpop.f32.mrf.mxu1  ;;  %v6922_v24 = vpop.f32.mrf.mxu0 }
 0x3af   : > { %v5823_v60 = vadd.f32 %v10317_v47, %v14082_v4  ;;  %v14212_v48 = vadd.f32 %v6224_v41, %v5820_v53 }
 0x3b0   : > { %v5764_v38 = vpop.f32.mrf.mxu1  ;;  %v10448_v44 = vpop.f32.mrf.mxu0 }
 0x3b1   : > { %v5821_v51 = vadd.f32 %v5764_v38, %v14086_v0  ;;  %v14215_v31 = vadd.f32 %v10369_v10, %v5823_v60  ;;  %v14935_v38 = vld [vmem:[#allocation23_spill] sm:$0xff] }
 0x3b2   : > { %v10320_v62 = vpop.f32.mrf.mxu1  ;;  %10619 = vmatmul.mubr.bf16.gmra.mxu1 %v14933_v61  ;;  %v6935_v54 = vpop.f32.mrf.mxu0 }
 0x3b3   : > { %v5826_v11 = vadd.f32 %v10320_v62, %v14092_v34  ;;  %10622 = vmatprep.mubr.bf16.mxu1 %v14934_v29  ;;  %v14220_v50 = vadd.f32 %v6227_v1, %v5821_v51  ;;  %v14936_v51 = vld [vmem:[#allocation24_spill] sm:$0xff] }
 0x3b4   : > { %v5777_v4 = vpop.f32.mrf.mxu1  ;;  %v10449_v37 = vpop.f32.mrf.mxu0 }
 0x3b5   : > { %v5824_v41 = vadd.f32 %v5777_v4, %v14095_v49  ;;  %v14223_v19 = vadd.f32 %v10372_v36, %v5826_v11 }
 0x3b6   : > { %v10321_v0 = vpop.f32.mrf.mxu1  ;;  %v6938_v6 = vpop.f32.mrf.mxu0 }
 0x3b7   : > { %v5827_v10 = vadd.f32 %v10321_v0, %v14099_v27  ;;  %v14226_v5 = vadd.f32 %v6240_v8, %v5824_v41 }
 0x3b8   : > { %v5780_v53 = vpop.f32.mrf.mxu1  ;;  %v10452_v47 = vpop.f32.mrf.mxu0 }
 0x3b9   : > { %v5825_v34 = vadd.f32 %v5780_v53, %v14102_v21  ;;  %v14229_v60 = vadd.f32 %v10373_v2, %v5827_v10  ;;  %v14937_v53 = vld [vmem:[#allocation25_spill] sm:$0xff] }
 0x3ba   : > { %v10392_v1 = vpop.f32.mrf.mxu1  ;;  %10623 = vmatmul.mubr.bf16.gmra.mxu1 %v14935_v38  ;;  %v6951_v36 = vpop.f32.mrf.mxu0 }
 0x3bb   : > { %v6727_v49 = vadd.f32 %v10392_v1, %v14110_v56  ;;  %10626 = vmatprep.mubr.bf16.mxu1 %v14936_v51  ;;  %v14234_v62 = vadd.f32 %v6243_v63, %v5825_v34  ;;  %v14938_v34 = vld [vmem:[#allocation26_spill] sm:$0xff] }
 0x3bc   : > { %v6582_v27 = vpop.f32.mrf.mxu1  ;;  %v10453_v61 = vpop.f32.mrf.mxu0 }
 0x3bd   : > { %v6725_v8 = vadd.f32 %v6582_v27, %v14113_v45  ;;  %v14237_v11 = vadd.f32 %v10444_v43, %v6727_v49 }
 0x3be   : > { %v10393_v21 = vpop.f32.mrf.mxu1  ;;  %v6954_v29 = vpop.f32.mrf.mxu0 }
 0x3bf   : > { %v6728_v2 = vadd.f32 %v10393_v21, %v14118_v40  ;;  %v14240_v4 = vadd.f32 %v6919_v26, %v6725_v8 }
 0x3c0   : > { %v6585_v41 = vpop.f32.mrf.mxu1  ;;  %v10456_v0 = vpop.f32.mrf.mxu0 }
 0x3c1   : > { %v6726_v56 = vadd.f32 %v6585_v41, %v14122_v35  ;;  %v14243_v10 = vadd.f32 %v10445_v42, %v6728_v2  ;;  %v14939_v41 = vld [vmem:[#allocation27_spill] sm:$0xff] }
 0x3c2   : > { %v10396_v63 = vpop.f32.mrf.mxu1  ;;  %10627 = vmatmul.mubr.bf16.gmra.mxu1 %v14937_v53  ;;  %v6967_v43 = vpop.f32.mrf.mxu0 }
 0x3c3   : > { %v6731_v45 = vadd.f32 %v10396_v63, %v14125_v46  ;;  %10630 = vmatprep.mubr.bf16.mxu1 %v14938_v34  ;;  %v14248_v1 = vadd.f32 %v6922_v24, %v6726_v56 }
 0x3c4   : > { %v6598_v40 = vpop.f32.mrf.mxu1  ;;  %v10457_v38 = vpop.f32.mrf.mxu0 }
 0x3c5   : > { %v6729_v26 = vadd.f32 %v6598_v40, %v14128_v33  ;;  %v14251_v49 = vadd.f32 %v10448_v44, %v6731_v45 }
 0x3c6   : > { %v10397_v35 = vpop.f32.mrf.mxu1  ;;  %v6970_v51 = vpop.f32.mrf.mxu0 }
 0x3c7   : > { %v6732_v42 = vadd.f32 %v10397_v35, %v14132_v14  ;;  %v14254_v27 = vadd.f32 %v6935_v54, %v6729_v26 }
 0x3c8   : > { %v6601_v8 = vpop.f32.mrf.mxu1  ;;  %v10460_v21 = vpop.f32.mrf.mxu0 }
 0x3c9   : > { %v6730_v46 = vadd.f32 %v6601_v8, %v14136_v55  ;;  %v14257_v2 = vadd.f32 %v10449_v37, %v6732_v42 }
 0x3ca   : > { %v10400_v24 = vpop.f32.mrf.mxu1  ;;  %10631 = vmatmul.mubr.bf16.gmra.mxu1 %v14939_v41  ;;  %v6983_v56 = vpop.f32.mrf.mxu0 }
 0x3cb   : > { %v6735_v33 = vadd.f32 %v10400_v24, %v14139_v57  ;;  %v14261_v44 = vadd.f32 %v6938_v6, %v6730_v46 }
 0x3cc   : > { %v6614_v63 = vpop.f32.mrf.mxu1  ;;  %v10461_v53 = vpop.f32.mrf.mxu0 }
 0x3cd   : > { %v6733_v14 = vadd.f32 %v6614_v63, %v14142_v39  ;;  %v14264_v54 = vadd.f32 %v10452_v47, %v6735_v33 }
 0x3ce   : > { %v10401_v45 = vpop.f32.mrf.mxu1  ;;  %v6986_v34 = vpop.f32.mrf.mxu0 }
 0x3cf   : > { %v6736_v55 = vadd.f32 %v10401_v45, %v14145_v16  ;;  %v14267_v37 = vadd.f32 %v6951_v36, %v6733_v14 }
 0x3d0   : > { %v6617_v40 = vpop.f32.mrf.mxu1  ;;  %v10464_v35 = vpop.f32.mrf.mxu0 }
 0x3d1   : > { %v6734_v26 = vadd.f32 %v6617_v40, %v14150_v23  ;;  %v14270_v57 = vadd.f32 %v10453_v61, %v6736_v55 }
 0x3d2   : > { %v10404_v6 = vpop.f32.mrf.mxu1  ;;  %v6999_v8 = vpop.f32.mrf.mxu0 }
 0x3d3   : > { %v6739_v42 = vadd.f32 %v10404_v6, %v14153_v9  ;;  %v14273_v39 = vadd.f32 %v6954_v29, %v6734_v26 }
 0x3d4   : > { %v6630_v47 = vpop.f32.mrf.mxu1  ;;  %v10465_v24 = vpop.f32.mrf.mxu0 }
 0x3d5   : > { %v6737_v46 = vadd.f32 %v6630_v47, %v14156_v7  ;;  %v14276_v16 = vadd.f32 %v10456_v0, %v6739_v42 }
 0x3d6   : > { %v10405_v36 = vpop.f32.mrf.mxu1  ;;  %v7002_v33 = vpop.f32.mrf.mxu0 }
 0x3d7   : > { %v6740_v41 = vadd.f32 %v10405_v36, %v14159_v22  ;;  %v14279_v23 = vadd.f32 %v6967_v43, %v6737_v46 }
 0x3d8   : > { %v6633_v61 = vpop.f32.mrf.mxu1  ;;  %v10468_v14 = vpop.f32.mrf.mxu0 }
 0x3d9   : > { %v6738_v63 = vadd.f32 %v6633_v61, %v14164_v58  ;;  %v14282_v9 = vadd.f32 %v10457_v38, %v6740_v41 }
 0x3da   : > { %v10408_v29 = vpop.f32.mrf.mxu1  ;;  %v7015_v55 = vpop.f32.mrf.mxu0 }
 0x3db   : > { %v6743_v45 = vadd.f32 %v10408_v29, %v14167_v30  ;;  %v14285_v7 = vadd.f32 %v6970_v51, %v6738_v63 }
 0x3dc   : > { %v6646_v0 = vpop.f32.mrf.mxu1  ;;  %v10469_v26 = vpop.f32.mrf.mxu0 }
 0x3dd   : > { %v6741_v40 = vadd.f32 %v6646_v0, %v14170_v28  ;;  %v14288_v22 = vadd.f32 %v10460_v21, %v6743_v45 }
 0x3de   : > { %v10409_v43 = vpop.f32.mrf.mxu1  ;;  %v7018_v42 = vpop.f32.mrf.mxu0 }
 0x3df   : > { %v6744_v6 = vadd.f32 %v10409_v43, %v14173_v3  ;;  %v14291_v58 = vadd.f32 %v6983_v56, %v6741_v40 }
 0x3e0   : > { %v6649_v38 = vpop.f32.mrf.mxu1  ;;  %v10472_v46 = vpop.f32.mrf.mxu0 }
 0x3e1   : > { %v6742_v47 = vadd.f32 %v6649_v38, %v14178_v15  ;;  %v14294_v30 = vadd.f32 %v10461_v53, %v6744_v6 }
 0x3e2   : > { %v10412_v51 = vpop.f32.mrf.mxu1  ;;  %v7031_v61 = vpop.f32.mrf.mxu0 }
 0x3e3   : > { %v6747_v36 = vadd.f32 %v10412_v51, %v14181_v12  ;;  %v14297_v41 = vadd.f32 %v6986_v34, %v6742_v47 }
 0x3e4   : > { %v6662_v28 = vpop.f32.mrf.mxu1  ;;  %v10473_v45 = vpop.f32.mrf.mxu0 }
 0x3e5   : > { %v6745_v21 = vadd.f32 %v6662_v28, %v14184_v17  ;;  %v14300_v63 = vadd.f32 %v10464_v35, %v6747_v36 }
 0x3e6   : > { %v10413_v3 = vpop.f32.mrf.mxu1  ;;  %v7034_v43 = vpop.f32.mrf.mxu0 }
 0x3e7   : > { %v6748_v56 = vadd.f32 %v10413_v3, %v14187_v59  ;;  %v14303_v29 = vadd.f32 %v6999_v8, %v6745_v21 }
 0x3e8   : > { %v6665_v15 = vpop.f32.mrf.mxu1  ;;  %v10476_v47 = vpop.f32.mrf.mxu0 }
 0x3e9   : > { %v6746_v53 = vadd.f32 %v6665_v15, %v14192_v20  ;;  %v14306_v0 = vadd.f32 %v10465_v24, %v6748_v56 }
 0x3ea   : > { %v10416_v12 = vpop.f32.mrf.mxu1  ;;  %v7047_v28 = vpop.f32.mrf.mxu0 }
 0x3eb   : > { %v6751_v34 = vadd.f32 %v10416_v12, %v14195_v25  ;;  %v14309_v40 = vadd.f32 %v7002_v33, %v6746_v53 }
 0x3ec   : > { %v6678_v17 = vpop.f32.mrf.mxu1  ;;  %v10477_v56 = vpop.f32.mrf.mxu0 }
 0x3ed   : > { %v6749_v35 = vadd.f32 %v6678_v17, %v14198_v32  ;;  %v14312_v6 = vadd.f32 %v10468_v14, %v6751_v34 }
 0x3ee   : > { %v10417_v59 = vpop.f32.mrf.mxu1  ;;  %v7050_v12 = vpop.f32.mrf.mxu0 }
 0x3ef   : > { %v6752_v8 = vadd.f32 %v10417_v59, %v14201_v18  ;;  %v14315_v38 = vadd.f32 %v7015_v55, %v6749_v35 }
 0x3f0   : > { %v6681_v20 = vpop.f32.mrf.mxu1 }
 0x3f1   : > { %v6750_v24 = vadd.f32 %v6681_v20, %v14206_v52  ;;  %v14318_v51 = vadd.f32 %v10469_v26, %v6752_v8 }
 0x3f2   : > { %v10420_v25 = vpop.f32.mrf.mxu1 }
 0x3f3   : > { %v6755_v33 = vadd.f32 %v10420_v25, %v14209_v13  ;;  %v14321_v36 = vadd.f32 %v7018_v42, %v6750_v24 }
 0x3f4   : > { %v6694_v32 = vpop.f32.mrf.mxu1 }
 0x3f5   : > { %v6753_v14 = vadd.f32 %v6694_v32, %v14212_v48  ;;  %v14324_v21 = vadd.f32 %v10472_v46, %v6755_v33 }
 0x3f6   : > { %v10421_v18 = vpop.f32.mrf.mxu1 }
 0x3f7   : > { %v6756_v55 = vadd.f32 %v10421_v18, %v14215_v31  ;;  %v14327_v3 = vadd.f32 %v7031_v61, %v6753_v14 }
 0x3f8   : > { %v6697_v52 = vpop.f32.mrf.mxu1 }
 0x3f9   : > { %v6754_v26 = vadd.f32 %v6697_v52, %v14220_v50  ;;  %v14330_v15 = vadd.f32 %v10473_v45, %v6756_v55  ;;  %v14341_v50 = vpop.f32.mrf.mxu0 }
 0x3fa   : > { %v10424_v13 = vpop.f32.mrf.mxu1 }
 0x3fb   : > { %v6759_v42 = vadd.f32 %v10424_v13, %v14223_v19  ;;  %v14333_v53 = vadd.f32 %v7034_v43, %v6754_v26  ;;  %v14351_v20 = vpop.f32.mrf.mxu0 }
 0x3fc   : > { %v6710_v48 = vpop.f32.mrf.mxu1 }
 0x3fd   : > { %v6757_v46 = vadd.f32 %v6710_v48, %v14226_v5  ;;  %v14336_v34 = vadd.f32 %v10476_v47, %v6759_v42 }
 0x3fe   : > { %v10425_v31 = vpop.f32.mrf.mxu1 }
 0x3ff   : > { %v6760_v61 = vadd.f32 %v10425_v31, %v14229_v60  ;;  %v14339_v17 = vadd.f32 %v7047_v28, %v6757_v46 }
 0x400   : > { %v6713_v35 = vpop.f32.mrf.mxu1 }
 0x401   : > { %v6758_v45 = vadd.f32 %v6713_v35, %v14234_v62  ;;  %v14344_v59 = vadd.f32 %v10477_v56, %v6760_v61  ;;  %v14359_v62 = vpop.f32.mrf.mxu0 }
 0x402   : > { %v10496_v19 = vpop.f32.mrf.mxu1 }
 0x403   : > { %v14347_v43 = vadd.f32 %v10496_v19, %v14237_v11  ;;  %v14349_v8 = vadd.f32 %v7050_v12, %v6758_v45  ;;  %v14367_v28 = vpop.f32.mrf.mxu0 }
 0x404   : > { %v7382_v5 = vpop.f32.mrf.mxu1 }
 0x405   : > { %v14354_v60 = vadd.f32 %v7382_v5, %v14240_v4  ;;  %v14375_v52 = vpop.f32.mrf.mxu0 }
 0x406   : > { %v10497_v24 = vpop.f32.mrf.mxu1 }
 0x407   : > { %v14357_v47 = vadd.f32 %v10497_v24, %v14243_v10  ;;  %v14383_v13 = vpop.f32.mrf.mxu0 }
 0x408   : > { %v7385_v25 = vpop.f32.mrf.mxu1 }
 0x409   : > { %v14362_v33 = vadd.f32 %v7385_v25, %v14248_v1  ;;  %v14391_v12 = vpop.f32.mrf.mxu0 }
 0x40a   : > { %v10500_v11 = vpop.f32.mrf.mxu1 }
 0x40b   : > { %v14365_v32 = vadd.f32 %v10500_v11, %v14251_v49  ;;  %v14399_v61 = vpop.f32.mrf.mxu0 }
 0x40c   : > { %v7398_v14 = vpop.f32.mrf.mxu1 }
 0x40d   : > { %v14370_v4 = vadd.f32 %v7398_v14, %v14254_v27  ;;  %v14407_v19 = vpop.f32.mrf.mxu0 }
 0x40e   : > { %v10501_v18 = vpop.f32.mrf.mxu1 }
 0x40f   : > { %v14373_v10 = vadd.f32 %v10501_v18, %v14257_v2  ;;  %v14415_v25 = vpop.f32.mrf.mxu0 }
 0x410   : > { %v7401_v55 = vpop.f32.mrf.mxu1 }
 0x411   : > { %v14378_v1 = vadd.f32 %v7401_v55, %v14261_v44  ;;  %v14423_v18 = vpop.f32.mrf.mxu0 }
 0x412   : > { %v10504_v56 = vpop.f32.mrf.mxu1 }
 0x413   : > { %v14381_v49 = vadd.f32 %v10504_v56, %v14264_v54 }
 0x414   : > { %v7414_v26 = vpop.f32.mrf.mxu1 }
 0x415   : > { %v14386_v27 = vadd.f32 %v7414_v26, %v14267_v37  ;;  %v14431_v26 = vpop.f32.mrf.mxu0 }
 0x416   : > { %v10505_v42 = vpop.f32.mrf.mxu1 }
 0x417   : > { %v14389_v2 = vadd.f32 %v10505_v42, %v14270_v57 }
 0x418   : > { %v7417_v48 = vpop.f32.mrf.mxu1 }
 0x419   : > { %v14394_v44 = vadd.f32 %v7417_v48, %v14273_v39 }
 0x41a   : > { %v10508_v46 = vpop.f32.mrf.mxu1 }
 0x41b   : > { %v14397_v54 = vadd.f32 %v10508_v46, %v14276_v16  ;;  %v14439_v46 = vpop.f32.mrf.mxu0 }
 0x41c   : > { %v7430_v31 = vpop.f32.mrf.mxu1 }
 0x41d   : > { %v14402_v37 = vadd.f32 %v7430_v31, %v14279_v23 }
 0x41e   : > { %v10509_v35 = vpop.f32.mrf.mxu1 }
 0x41f   : > { %v14405_v57 = vadd.f32 %v10509_v35, %v14282_v9 }
 0x420   : > { %v7433_v45 = vpop.f32.mrf.mxu1 }
 0x421   : > { %v14410_v39 = vadd.f32 %v7433_v45, %v14285_v7  ;;  %v14447_v45 = vpop.f32.mrf.mxu0 }
 0x422   : > { %v10512_v5 = vpop.f32.mrf.mxu1 }
 0x423   : > { %v14413_v16 = vadd.f32 %v10512_v5, %v14288_v22 }
 0x424   : > { %v7446_v24 = vpop.f32.mrf.mxu1 }
 0x425   : > { %v14418_v23 = vadd.f32 %v7446_v24, %v14291_v58 }
 0x426   : > { %v10513_v11 = vpop.f32.mrf.mxu1 }
 0x427   : > { %v14421_v9 = vadd.f32 %v10513_v11, %v14294_v30  ;;  %v14455_v11 = vpop.f32.mrf.mxu0 }
 0x428   : > { %v7449_v14 = vpop.f32.mrf.mxu1 }
 0x429   : > { %v14426_v7 = vadd.f32 %v7449_v14, %v14297_v41 }
 0x42a   : > { %v10516_v55 = vpop.f32.mrf.mxu1 }
 0x42b   : > { %v14429_v22 = vadd.f32 %v10516_v55, %v14300_v63 }
 0x42c   : > { %v7462_v56 = vpop.f32.mrf.mxu1 }
 0x42d   : > { %v14434_v58 = vadd.f32 %v7462_v56, %v14303_v29  ;;  %v14463_v56 = vpop.f32.mrf.mxu0 }
 0x42e   : > { %v10517_v42 = vpop.f32.mrf.mxu1 }
 0x42f   : > { %v14437_v30 = vadd.f32 %v10517_v42, %v14306_v0 }
 0x430   : > { %v7465_v48 = vpop.f32.mrf.mxu1 }
 0x431   : > { %v14442_v41 = vadd.f32 %v7465_v48, %v14309_v40 }
 0x432   : > { %v10520_v31 = vpop.f32.mrf.mxu1 }
 0x433   : > { %v14445_v63 = vadd.f32 %v10520_v31, %v14312_v6  ;;  %v14471_v31 = vpop.f32.mrf.mxu0 }
 0x434   : > { %v7478_v35 = vpop.f32.mrf.mxu1 }
 0x435   : > { %v14450_v29 = vadd.f32 %v7478_v35, %v14315_v38 }
 0x436   : > { %v10521_v5 = vpop.f32.mrf.mxu1 }
 0x437   : > { %v14453_v0 = vadd.f32 %v10521_v5, %v14318_v51 }
 0x438   : > { %v7481_v24 = vpop.f32.mrf.mxu1 }
 0x439   : > { %v14458_v40 = vadd.f32 %v7481_v24, %v14321_v36  ;;  %v14479_v24 = vpop.f32.mrf.mxu0 }
 0x43a   : > { %v10524_v14 = vpop.f32.mrf.mxu1 }
 0x43b   : > { %v14461_v6 = vadd.f32 %v10524_v14, %v14324_v21 }
 0x43c   : > { %v7494_v55 = vpop.f32.mrf.mxu1 }
 0x43d   : > { %v14466_v38 = vadd.f32 %v7494_v55, %v14327_v3 }
 0x43e   : > { %v10525_v42 = vpop.f32.mrf.mxu1 }
 0x43f   : > { %v14469_v51 = vadd.f32 %v10525_v42, %v14330_v15  ;;  %v14488_v42 = vpop.f32.mrf.mxu0 }
 0x440   : > { %v7497_v48 = vpop.f32.mrf.mxu1 }
 0x441   : > { %v14474_v36 = vadd.f32 %v7497_v48, %v14333_v53 }
 0x442   : > { %v10528_v35 = vpop.f32.mrf.mxu1 }
 0x443   : > { %v14477_v21 = vadd.f32 %v10528_v35, %v14336_v34  ;;  %v7997_v34 = vadd.f32 %v14341_v50, %v14347_v43  ;;  %v8413_v35 = vld [vmem:[%s14496_s26 + $0x10] sm:$0xff]  ;;  %v7998_v50 = vadd.f32 %v14359_v62, %v14357_v47  ;;  %v8411_v43 = vld [vmem:[%s14496_s26] sm:$0xff]  ;;  %v8001_v47 = vadd.f32 %v14375_v52, %v14365_v32 }
 0x444   : > { %v7510_v5 = vpop.f32.mrf.mxu1 }
 0x445   : > { %14940 = vst [vmem:[#allocation30_spill] sm:$0xff] %v14477_v21  ;;  %v14482_v3 = vadd.f32 %v7510_v5, %v14339_v17 }
 0x446   : > { %v10529_v14 = vpop.f32.mrf.mxu1 }
 0x447   : > { %14941 = vst [vmem:[#allocation31_spill] sm:$0xff] %v14482_v3  ;;  %v14486_v15 = vadd.f32 %v10529_v14, %v14344_v59  ;;  %v14503_v59 = vld [vmem:[%s14710_s6] ss:$0 sm:$0xff]  ;;  %v14508_v14 = vpop.f32.mrf.mxu0 }
 0x448   : > { %v7513_v55 = vpop.f32.mrf.mxu1 }
 0x449   : > { %14942 = vst [vmem:[#allocation32_spill] sm:$0xff] %v14486_v15  ;;  %v14491_v53 = vadd.f32 %v7513_v55, %v14349_v8  ;;  %v7995_v8 = vadd.f32 %v14351_v20, %v14354_v60  ;;  %v7996_v20 = vadd.f32 %v14367_v28, %v14362_v33  ;;  %v8414_v60 = vld [vmem:[%s14496_s26 + $0x18] sm:$0xff]  ;;  %v14525_v62 = vpop.f32.mrf.mxu0  ;;  %v8412_v28 = vld [vmem:[%s14496_s26 + $0x8] sm:$0xff] }
 0x44a   : > { %v10600_v17 = vpop.f32.mrf.mxu1 }
 0x44b   : > { %14943 = vst [vmem:[#allocation33_spill] sm:$0xff] %v14491_v53  ;;  %v8334_v48 = vadd.f32 %v10600_v17, %v7997_v34 }
 0x44c   : > { %v8189_v5 = vpop.f32.mrf.mxu1 }
 0x44d   : > { %v8377_v55 = vadd.f32 %v14503_v59, %v8334_v48  ;;  %v8332_v53 = vadd.f32 %v8189_v5, %v7995_v8 }
 0x44e   : > { %v10601_v15 = vpop.f32.mrf.mxu1 }
 0x44f   : > { %v8449_v3 = vadd.f32 %v8413_v35, %v8377_v55  ;;  %v8375_v21 = vadd.f32 %v14503_v59, %v8332_v53  ;;  %v8335_v34 = vadd.f32 %v10601_v15, %v7998_v50  ;;  %v7999_v35 = vadd.f32 %v14383_v13, %v14370_v4  ;;  %v8417_v50 = vld [vmem:[%s14496_s26 + $0x30] sm:$0xff] }
 0x450   : > { %v8192_v17 = vpop.f32.mrf.mxu1 }
 0x451   : > { %v8485_v48 = vmax.f32 %v8449_v3, 0.0  ;;  %v8447_v15 = vadd.f32 %v8411_v43, %v8375_v21  ;;  %v8378_v53 = vadd.f32 %v14503_v59, %v8335_v34  ;;  %v8333_v33 = vadd.f32 %v8192_v17, %v7996_v20  ;;  %v14536_v43 = vpop.f32.mrf.mxu0  ;;  %v8415_v17 = vld [vmem:[%s14496_s26 + $0x20] sm:$0xff] }
 0x452   : > { %v10604_v8 = vpop.f32.mrf.mxu1  ;;  %v8002_v21 = vadd.f32 %v14391_v12, %v14373_v10 }
 0x453   : > { %8521 = vst [vmem:[%s14520_s8 + $0x10] sm:$0xff] %v8485_v48  ;;  %v8483_v5 = vmax.f32 %v8447_v15, 0.0  ;;  %v8450_v55 = vadd.f32 %v8414_v60, %v8378_v53  ;;  %v8376_v32 = vadd.f32 %v14503_v59, %v8333_v33  ;;  %v8338_v52 = vadd.f32 %v10604_v8, %v8001_v47  ;;  %v8418_v53 = vld [vmem:[%s14496_s26 + $0x38] sm:$0xff]  ;;  %v14548_v8 = vpop.f32.mrf.mxu0 }
 0x454   : > { %v8205_v3 = vpop.f32.mrf.mxu1  ;;  %v8000_v47 = vadd.f32 %v14399_v61, %v14378_v1 }
 0x455   : > { %8519 = vst [vmem:[%s14520_s8] sm:$0xff] %v8483_v5  ;;  %v8486_v34 = vmax.f32 %v8450_v55, 0.0  ;;  %v8448_v20 = vadd.f32 %v8412_v28, %v8376_v32  ;;  %v8381_v4 = vadd.f32 %v14503_v59, %v8338_v52  ;;  %v8336_v13 = vadd.f32 %v8205_v3, %v7999_v35  ;;  %v8416_v55 = vld [vmem:[%s14496_s26 + $0x28] sm:$0xff] }
 0x456   : > { %v10605_v60 = vpop.f32.mrf.mxu1  ;;  %v8005_v28 = vadd.f32 %v14407_v19, %v14381_v49  ;;  %v8003_v52 = vadd.f32 %v14415_v25, %v14386_v27 }
 0x457   : > { %8522 = vst [vmem:[%s14520_s8 + $0x18] sm:$0xff] %v8486_v34  ;;  %v8484_v48 = vmax.f32 %v8448_v20, 0.0  ;;  %v8453_v15 = vadd.f32 %v8417_v50, %v8381_v4  ;;  %v8379_v10 = vadd.f32 %v14503_v59, %v8336_v13  ;;  %v8339_v12 = vadd.f32 %v10605_v60, %v8002_v21  ;;  %v8421_v21 = vld [vmem:[%s14496_s26 + $0x50] sm:$0xff]  ;;  %v14560_v4 = vpop.f32.mrf.mxu0  ;;  %v8419_v60 = vld [vmem:[%s14496_s26 + $0x40] sm:$0xff] }
 0x458   : > { %v8208_v33 = vpop.f32.mrf.mxu1  ;;  %v8006_v20 = vadd.f32 %v14423_v18, %v14389_v2 }
 0x459   : > { %8520 = vst [vmem:[%s14520_s8 + $0x8] sm:$0xff] %v8484_v48  ;;  %v8489_v35 = vmax.f32 %v8453_v15, 0.0  ;;  %v8451_v5 = vadd.f32 %v8415_v17, %v8379_v10  ;;  %v8382_v1 = vadd.f32 %v14503_v59, %v8339_v12  ;;  %v8337_v61 = vadd.f32 %v8208_v33, %v8000_v47  ;;  %v8422_v12 = vld [vmem:[%s14496_s26 + $0x58] sm:$0xff] }
 0x45a   : > { %v10608_v32 = vpop.f32.mrf.mxu1  ;;  %v8004_v48 = vadd.f32 %v14431_v26, %v14394_v44  ;;  %v8009_v33 = vadd.f32 %v14439_v46, %v14397_v54 }
 0x45b   : > { %8525 = vst [vmem:[%s14520_s8 + $0x30] sm:$0xff] %v8489_v35  ;;  %v8487_v50 = vmax.f32 %v8451_v5, 0.0  ;;  %v8454_v3 = vadd.f32 %v8418_v53, %v8382_v1  ;;  %v8380_v49 = vadd.f32 %v14503_v59, %v8337_v61  ;;  %v8342_v19 = vadd.f32 %v10608_v32, %v8005_v28  ;;  %v14572_v28 = vpop.f32.mrf.mxu0  ;;  %v8420_v1 = vld [vmem:[%s14496_s26 + $0x48] sm:$0xff] }
 0x45c   : > { %v8221_v34 = vpop.f32.mrf.mxu1 }
 0x45d   : > { %8523 = vst [vmem:[%s14520_s8 + $0x20] sm:$0xff] %v8487_v50  ;;  %v8490_v13 = vmax.f32 %v8454_v3, 0.0  ;;  %v8452_v17 = vadd.f32 %v8416_v55, %v8380_v49  ;;  %v8385_v27 = vadd.f32 %v14503_v59, %v8342_v19  ;;  %v8340_v25 = vadd.f32 %v8221_v34, %v8003_v52  ;;  %v8425_v50 = vld [vmem:[%s14496_s26 + $0x70] sm:$0xff]  ;;  %v14584_v19 = vpop.f32.mrf.mxu0 }
 0x45e   : > { %v10609_v47 = vpop.f32.mrf.mxu1  ;;  %v8007_v55 = vadd.f32 %v14447_v45, %v14402_v37  ;;  %v8010_v49 = vadd.f32 %v14455_v11, %v14405_v57 }
 0x45f   : > { %8526 = vst [vmem:[%s14520_s8 + $0x38] sm:$0xff] %v8490_v13  ;;  %v8488_v15 = vmax.f32 %v8452_v17, 0.0  ;;  %v8457_v10 = vadd.f32 %v8421_v21, %v8385_v27  ;;  %v8383_v2 = vadd.f32 %v14503_v59, %v8340_v25  ;;  %v8343_v18 = vadd.f32 %v10609_v47, %v8006_v20  ;;  %v8423_v20 = vld [vmem:[%s14496_s26 + $0x60] sm:$0xff] }
 0x460   : > { %v8224_v53 = vpop.f32.mrf.mxu1  ;;  %v8008_v17 = vadd.f32 %v14463_v56, %v14410_v39 }
 0x461   : > { %8524 = vst [vmem:[%s14520_s8 + $0x28] sm:$0xff] %v8488_v15  ;;  %v8493_v35 = vmax.f32 %v8457_v10, 0.0  ;;  %v8455_v5 = vadd.f32 %v8419_v60, %v8383_v2  ;;  %v8386_v44 = vadd.f32 %v14503_v59, %v8343_v18  ;;  %v8341_v26 = vadd.f32 %v8224_v53, %v8004_v48  ;;  %v8426_v60 = vld [vmem:[%s14496_s26 + $0x78] sm:$0xff]  ;;  %v14596_v15 = vpop.f32.mrf.mxu0  ;;  %v8424_v18 = vld [vmem:[%s14496_s26 + $0x68] sm:$0xff] }
 0x462   : > { %v10612_v61 = vpop.f32.mrf.mxu1  ;;  %v8013_v48 = vadd.f32 %v14471_v31, %v14413_v16  ;;  %v8011_v53 = vadd.f32 %v14479_v24, %v14418_v23 }
 0x463   : > { %8529 = vst [vmem:[%s14520_s8 + $0x50] sm:$0xff] %v8493_v35  ;;  %v8491_v32 = vmax.f32 %v8455_v5, 0.0  ;;  %v8458_v52 = vadd.f32 %v8422_v12, %v8386_v44  ;;  %v8384_v54 = vadd.f32 %v14503_v59, %v8341_v26  ;;  %v8346_v46 = vadd.f32 %v10612_v61, %v8009_v33  ;;  %v8429_v5 = vld [vmem:[%s14496_s26 + $0x90] sm:$0xff] }
 0x464   : > { %v8237_v3 = vpop.f32.mrf.mxu1  ;;  %v8014_v26 = vadd.f32 %v14488_v42, %v14421_v9 }
 0x465   : > { %8527 = vst [vmem:[%s14520_s8 + $0x40] sm:$0xff] %v8491_v32  ;;  %v8494_v21 = vmax.f32 %v8458_v52, 0.0  ;;  %v8456_v34 = vadd.f32 %v8420_v1, %v8384_v54  ;;  %v8389_v37 = vadd.f32 %v14503_v59, %v8346_v46  ;;  %v8344_v45 = vadd.f32 %v8237_v3, %v8007_v55  ;;  %v14608_v1 = vpop.f32.mrf.mxu0  ;;  %v8427_v32 = vld [vmem:[%s14496_s26 + $0x80] sm:$0xff]  ;;  %v8430_v3 = vld [vmem:[%s14496_s26 + $0x98] sm:$0xff] }
 0x466   : > { %v10613_v13 = vpop.f32.mrf.mxu1  ;;  %v8012_v54 = vadd.f32 %v14508_v14, %v14426_v7 }
 0x467   : > { %8530 = vst [vmem:[%s14520_s8 + $0x58] sm:$0xff] %v8494_v21  ;;  %v8492_v27 = vmax.f32 %v8456_v34, 0.0  ;;  %v8461_v25 = vadd.f32 %v8425_v50, %v8389_v37  ;;  %v8387_v57 = vadd.f32 %v14503_v59, %v8344_v45  ;;  %v8347_v11 = vadd.f32 %v10613_v13, %v8010_v49  ;;  %v14620_v34 = vpop.f32.mrf.mxu0 }
 0x468   : > { %v8240_v47 = vpop.f32.mrf.mxu1  ;;  %v8017_v21 = vadd.f32 %v14525_v62, %v14429_v22 }
 0x469   : > { %8528 = vst [vmem:[%s14520_s8 + $0x48] sm:$0xff] %v8492_v27  ;;  %v8497_v10 = vmax.f32 %v8461_v25, 0.0  ;;  %v8459_v2 = vadd.f32 %v8423_v20, %v8387_v57  ;;  %v8390_v39 = vadd.f32 %v14503_v59, %v8347_v11  ;;  %v8345_v56 = vadd.f32 %v8240_v47, %v8008_v17  ;;  %v8428_v20 = vld [vmem:[%s14496_s26 + $0x88] sm:$0xff]  ;;  %v8433_v57 = vld [vmem:[%s14496_s26 + $0xb0] sm:$0xff]  ;;  %v7964_v47 = vpop.f32.mrf.mxu0 }
 0x46a   : > { %v10616_v12 = vpop.f32.mrf.mxu1  ;;  %v8015_v17 = vadd.f32 %v14536_v43, %v14434_v58 }
 0x46b   : > { %8533 = vst [vmem:[%s14520_s8 + $0x70] sm:$0xff] %v8497_v10  ;;  %v8495_v33 = vmax.f32 %v8459_v2, 0.0  ;;  %v8462_v35 = vadd.f32 %v8426_v60, %v8390_v39  ;;  %v8388_v16 = vadd.f32 %v14503_v59, %v8345_v56  ;;  %v8350_v31 = vadd.f32 %v10616_v12, %v8013_v48  ;;  %v8431_v2 = vld [vmem:[%s14496_s26 + $0xa0] sm:$0xff] }
 0x46c   : > { %v8253_v44 = vpop.f32.mrf.mxu1  ;;  %v8018_v60 = vadd.f32 %v14548_v8, %v14437_v30  ;;  %v8016_v56 = vadd.f32 %v14560_v4, %v14442_v41 }
 0x46d   : > { %8531 = vst [vmem:[%s14520_s8 + $0x60] sm:$0xff] %v8495_v33  ;;  %v8498_v61 = vmax.f32 %v8462_v35, 0.0  ;;  %v8460_v55 = vadd.f32 %v8424_v18, %v8388_v16  ;;  %v8393_v23 = vadd.f32 %v14503_v59, %v8350_v31  ;;  %v8348_v24 = vadd.f32 %v8253_v44, %v8011_v53  ;;  %v8434_v53 = vld [vmem:[%s14496_s26 + $0xb8] sm:$0xff]  ;;  %v10577_v16 = vpop.f32.mrf.mxu0  ;;  %v8432_v44 = vld [vmem:[%s14496_s26 + $0xa8] sm:$0xff] }
 0x46e   : > { %v10617_v52 = vpop.f32.mrf.mxu1  ;;  %v8021_v35 = vadd.f32 %v14572_v28, %v14445_v63 }
 0x46f   : > { %8534 = vst [vmem:[%s14520_s8 + $0x78] sm:$0xff] %v8498_v61  ;;  %v8496_v46 = vmax.f32 %v8460_v55, 0.0  ;;  %v8465_v50 = vadd.f32 %v8429_v5, %v8393_v23  ;;  %v8391_v9 = vadd.f32 %v14503_v59, %v8348_v24  ;;  %v8351_v42 = vadd.f32 %v10617_v52, %v8014_v26  ;;  %v8437_v24 = vld [vmem:[%s14496_s26 + $0xd0] sm:$0xff] }
 0x470   : > { %v8256_v49 = vpop.f32.mrf.mxu1  ;;  %v8019_v61 = vadd.f32 %v14584_v19, %v14450_v29  ;;  %v8022_v52 = vadd.f32 %v14596_v15, %v14453_v0 }
 0x471   : > { %8532 = vst [vmem:[%s14520_s8 + $0x68] sm:$0xff] %v8496_v46  ;;  %v8501_v37 = vmax.f32 %v8465_v50, 0.0  ;;  %v8463_v45 = vadd.f32 %v8427_v32, %v8391_v9  ;;  %v8394_v7 = vadd.f32 %v14503_v59, %v8351_v42  ;;  %v8349_v14 = vadd.f32 %v8256_v49, %v8012_v54  ;;  %v7967_v54 = vpop.f32.mrf.mxu0  ;;  %v8435_v9 = vld [vmem:[%s14496_s26 + $0xc0] sm:$0xff] }
 0x472   : > { %v10620_v13 = vpop.f32.mrf.mxu1 }
 0x473   : > { %8537 = vst [vmem:[%s14520_s8 + $0x90] sm:$0xff] %v8501_v37  ;;  %v8499_v27 = vmax.f32 %v8463_v45, 0.0  ;;  %v8466_v25 = vadd.f32 %v8430_v3, %v8394_v7  ;;  %v8392_v22 = vadd.f32 %v14503_v59, %v8349_v14  ;;  %v8354_v62 = vadd.f32 %v10620_v13, %v8017_v21  ;;  %v8438_v37 = vld [vmem:[%s14496_s26 + $0xd8] sm:$0xff]  ;;  %v10580_v14 = vpop.f32.mrf.mxu0 }
 0x474   : > { %v8269_v11 = vpop.f32.mrf.mxu1  ;;  %v8020_v3 = vadd.f32 %v14608_v1, %v14458_v40  ;;  %v8025_v7 = vadd.f32 %v14620_v34, %v14461_v6  ;;  %v8441_v34 = vld [vmem:[%s14496_s26 + $0xf0] sm:$0xff] }
 0x475   : > { %8535 = vst [vmem:[%s14520_s8 + $0x80] sm:$0xff] %v8499_v27  ;;  %v8502_v48 = vmax.f32 %v8466_v25, 0.0  ;;  %v8464_v10 = vadd.f32 %v8428_v20, %v8392_v22  ;;  %v8397_v58 = vadd.f32 %v14503_v59, %v8354_v62  ;;  %v8352_v43 = vadd.f32 %v8269_v11, %v8015_v17  ;;  %v8436_v17 = vld [vmem:[%s14496_s26 + $0xc8] sm:$0xff] }
 0x476   : > { %v10621_v39 = vpop.f32.mrf.mxu1  ;;  %v8023_v25 = vadd.f32 %v7964_v47, %v14466_v38  ;;  %v8439_v47 = vld [vmem:[%s14496_s26 + $0xe0] sm:$0xff] }
 0x477   : > { %8538 = vst [vmem:[%s14520_s8 + $0x98] sm:$0xff] %v8502_v48  ;;  %v8500_v18 = vmax.f32 %v8464_v10, 0.0  ;;  %v8469_v12 = vadd.f32 %v8433_v57, %v8397_v58  ;;  %v8395_v30 = vadd.f32 %v14503_v59, %v8352_v43  ;;  %v8355_v8 = vadd.f32 %v10621_v39, %v8018_v60  ;;  %v7980_v48 = vpop.f32.mrf.mxu0 }
 0x478   : > { %v8272_v33 = vpop.f32.mrf.mxu1  ;;  %v8026_v60 = vadd.f32 %v10577_v16, %v14469_v51  ;;  %v8024_v39 = vadd.f32 %v7967_v54, %v14474_v36 }
 0x479   : > { %8536 = vst [vmem:[%s14520_s8 + $0x88] sm:$0xff] %v8500_v18  ;;  %v8505_v31 = vmax.f32 %v8469_v12, 0.0  ;;  %v8467_v5 = vadd.f32 %v8431_v2, %v8395_v30  ;;  %v8398_v41 = vadd.f32 %v14503_v59, %v8355_v8  ;;  %v8353_v4 = vadd.f32 %v8272_v33, %v8016_v56  ;;  %v8442_v30 = vld [vmem:[%s14496_s26 + $0xf8] sm:$0xff] }
 0x47a   : > { %v10624_v26 = vpop.f32.mrf.mxu1 }
 0x47b   : > { %8541 = vst [vmem:[%s14520_s8 + $0xb0] sm:$0xff] %v8505_v31  ;;  %v8503_v55 = vmax.f32 %v8467_v5, 0.0  ;;  %v8470_v23 = vadd.f32 %v8434_v53, %v8398_v41  ;;  %v8396_v63 = vadd.f32 %v14503_v59, %v8353_v4  ;;  %v8358_v28 = vadd.f32 %v10624_v26, %v8021_v35  ;;  %v14944_v53 = vld [vmem:[#allocation30_spill] sm:$0xff]  ;;  %v10581_v35 = vpop.f32.mrf.mxu0  ;;  %v8440_v41 = vld [vmem:[%s14496_s26 + $0xe8] sm:$0xff] }
 0x47c   : > { %v8285_v32 = vpop.f32.mrf.mxu1  ;;  %v8029_v33 = vadd.f32 %v10580_v14, %v14944_v53 }
 0x47d   : > { %8539 = vst [vmem:[%s14520_s8 + $0xa0] sm:$0xff] %v8503_v55  ;;  %v8506_v46 = vmax.f32 %v8470_v23, 0.0  ;;  %v8468_v50 = vadd.f32 %v8432_v44, %v8396_v63  ;;  %v8401_v29 = vadd.f32 %v14503_v59, %v8358_v28  ;;  %v8356_v19 = vadd.f32 %v8285_v32, %v8019_v61  ;;  %v14945_v44 = vld [vmem:[#allocation31_spill] sm:$0xff]  ;;  %v8445_v28 = vld [vmem:[%s14496_s26 + $0x110] sm:$0xff]  ;;  %v7983_v54 = vpop.f32.mrf.mxu0 }
 0x47e   : > { %v10625_v42 = vpop.f32.mrf.mxu1  ;;  %v8027_v26 = vadd.f32 %v7980_v48, %v14945_v44  ;;  %v14946_v32 = vld [vmem:[#allocation32_spill] sm:$0xff] }
 0x47f   : > { %8542 = vst [vmem:[%s14520_s8 + $0xb8] sm:$0xff] %v8506_v46  ;;  %v8504_v49 = vmax.f32 %v8468_v50, 0.0  ;;  %v8473_v21 = vadd.f32 %v8437_v24, %v8401_v29  ;;  %v8399_v0 = vadd.f32 %v14503_v59, %v8356_v19  ;;  %v8359_v15 = vadd.f32 %v10625_v42, %v8022_v52 }
 0x480   : > { %v8288_v45 = vpop.f32.mrf.mxu1  ;;  %v8030_v52 = vadd.f32 %v10581_v35, %v14946_v32 }
 0x481   : > { %8540 = vst [vmem:[%s14520_s8 + $0xa8] sm:$0xff] %v8504_v49  ;;  %v8509_v20 = vmax.f32 %v8473_v21, 0.0  ;;  %v8471_v13 = vadd.f32 %v8435_v9, %v8399_v0  ;;  %v8402_v40 = vadd.f32 %v14503_v59, %v8359_v15  ;;  %v8357_v1 = vadd.f32 %v8288_v45, %v8020_v3  ;;  %v8443_v9 = vld [vmem:[%s14496_s26 + $0x100] sm:$0xff]  ;;  %v14947_v3 = vld [vmem:[#allocation33_spill] sm:$0xff] }
 0x482   : > { %v10628_v27 = vpop.f32.mrf.mxu1  ;;  %v8028_v49 = vadd.f32 %v7983_v54, %v14947_v3  ;;  %v8446_v45 = vld [vmem:[%s14496_s26 + $0x118] sm:$0xff] }
 0x483   : > { %8545 = vst [vmem:[%s14520_s8 + $0xd0] sm:$0xff] %v8509_v20  ;;  %v8507_v22 = vmax.f32 %v8471_v13, 0.0  ;;  %v8474_v62 = vadd.f32 %v8438_v37, %v8402_v40  ;;  %v8400_v57 = vadd.f32 %v14503_v59, %v8357_v1  ;;  %v8362_v6 = vadd.f32 %v10628_v27, %v8025_v7  ;;  %v8444_v1 = vld [vmem:[%s14496_s26 + $0x108] sm:$0xff] }
 0x484   : > { %v8301_v11 = vpop.f32.mrf.mxu1 }
 0x485   : > { %8543 = vst [vmem:[%s14520_s8 + $0xc0] sm:$0xff] %v8507_v22  ;;  %v8510_v10 = vmax.f32 %v8474_v62, 0.0  ;;  %v8472_v58 = vadd.f32 %v8436_v17, %v8400_v57  ;;  %v8405_v43 = vadd.f32 %v14503_v59, %v8362_v6  ;;  %v8360_v38 = vadd.f32 %v8301_v11, %v8023_v25 }
 0x486   : > { %v10629_v2 = vpop.f32.mrf.mxu1 }
 0x487   : > { %8546 = vst [vmem:[%s14520_s8 + $0xd8] sm:$0xff] %v8510_v10  ;;  %v8508_v56 = vmax.f32 %v8472_v58, 0.0  ;;  %v8477_v18 = vadd.f32 %v8441_v34, %v8405_v43  ;;  %v8403_v12 = vadd.f32 %v14503_v59, %v8360_v38  ;;  %v8363_v51 = vadd.f32 %v10629_v2, %v8026_v60 }
 0x488   : > { %v8304_v8 = vpop.f32.mrf.mxu1 }
 0x489   : > { %8544 = vst [vmem:[%s14520_s8 + $0xc8] sm:$0xff] %v8508_v56  ;;  %v8513_v16 = vmax.f32 %v8477_v18, 0.0  ;;  %v8475_v31 = vadd.f32 %v8439_v47, %v8403_v12  ;;  %v8406_v5 = vadd.f32 %v14503_v59, %v8363_v51  ;;  %v8361_v36 = vadd.f32 %v8304_v8, %v8024_v39 }
 0x48a   : > { %v10632_v4 = vpop.f32.mrf.mxu1 }
 0x48b   : > { %8549 = vst [vmem:[%s14520_s8 + $0xf0] sm:$0xff] %v8513_v16  ;;  %v8511_v61 = vmax.f32 %v8475_v31, 0.0  ;;  %v8478_v55 = vadd.f32 %v8442_v30, %v8406_v5  ;;  %v8404_v23 = vadd.f32 %v14503_v59, %v8361_v36  ;;  %v8366_v63 = vadd.f32 %v10632_v4, %v8029_v33 }
 0x48c   : > { %v8317_v24 = vpop.f32.mrf.mxu1 }
 0x48d   : > { %8547 = vst [vmem:[%s14520_s8 + $0xe0] sm:$0xff] %v8511_v61  ;;  %v8514_v46 = vmax.f32 %v8478_v55, 0.0  ;;  %v8476_v50 = vadd.f32 %v8440_v41, %v8404_v23  ;;  %v8409_v29 = vadd.f32 %v14503_v59, %v8366_v63  ;;  %v8364_v19 = vadd.f32 %v8317_v24, %v8027_v26 }
 0x48e   : > { %v10633_v42 = vpop.f32.mrf.mxu1 }
 0x48f   : > { %8550 = vst [vmem:[%s14520_s8 + $0xf8] sm:$0xff] %v8514_v46  ;;  %v8512_v21 = vmax.f32 %v8476_v50, 0.0  ;;  %v8481_v0 = vadd.f32 %v8445_v28, %v8409_v29  ;;  %v8407_v15 = vadd.f32 %v14503_v59, %v8364_v19  ;;  %v8367_v37 = vadd.f32 %v10633_v42, %v8030_v52 }
 0x490   : > { %v8320_v7 = vpop.f32.mrf.mxu1 }
 0x491   : > { %8548 = vst [vmem:[%s14520_s8 + $0xe8] sm:$0xff] %v8512_v21  ;;  %v8517_v14 = vmax.f32 %v8481_v0, 0.0  ;;  %v8479_v20 = vadd.f32 %v8443_v9, %v8407_v15  ;;  %v8410_v13 = vadd.f32 %v14503_v59, %v8367_v37  ;;  %v8365_v40 = vadd.f32 %v8320_v7, %v8028_v49 }
 0x493   : > { %8553 = vst [vmem:[%s14520_s8 + $0x110] sm:$0xff] %v8517_v14  ;;  %v8515_v17 = vmax.f32 %v8479_v20, 0.0  ;;  %v8482_v27 = vadd.f32 %v8446_v45, %v8410_v13  ;;  %v8408_v25 = vadd.f32 %v14503_v59, %v8365_v40 }
 0x495   : > { %8551 = vst [vmem:[%s14520_s8 + $0x100] sm:$0xff] %v8515_v17  ;;  %v8518_v22 = vmax.f32 %v8482_v27, 0.0  ;;  %v8480_v62 = vadd.f32 %v8444_v1, %v8408_v25 }
 0x497   : > { %8554 = vst [vmem:[%s14520_s8 + $0x118] sm:$0xff] %v8518_v22  ;;  %v8516_v57 = vmax.f32 %v8480_v62, 0.0 }
 0x499   : > { %8552 = vst [vmem:[%s14520_s8 + $0x108] sm:$0xff] %v8516_v57 }
 0x49a PF: > { %s17_s24 = sadd.s32 1, %s10929_s24  }
 0x49b   : > { %p14_p4 = scmp.ge.s32.totalorder %s17_s24, 4  }
 0x49d   :  { %16 = sbr.rel (!%p14_p4) target bundleno = 1 (0x1), region = 97 }

</bundles_post_ra>
